<compile_context>
chip_gen: v7x
topology: tpu7x:2x2x1
jax: 0.10.0
libtpu: 0.0.40
codegen_flags: <defaults>
</compile_context>

<pallas_src>
import math
import functools

import jax
import jax.numpy as jnp
from jax.experimental import pallas as pl
from jax.experimental.pallas import tpu as pltpu


def _encoder_block_kernel(xf_ref, mask_ref,
                          g1_ref, b1_ref,
                          wq_ref, wk_ref, wv_ref, wo_ref,
                          w1_ref, bf1_ref, w2_ref, bf2_ref,
                          out_ref,
                          k_sc, v_sc, o_sc,
                          *, heads: int, ff_chunk: int):
    TS, D = out_ref.shape          # query tile rows, d_model
    S = k_sc.shape[0]              # full sequence length
    hd = D // heads
    d_ff = w1_ref.shape[1]

    def layer_norm(x):             # eps=1e-5, biased variance, affine (f32)
        mu = jnp.mean(x, axis=-1, keepdims=True)
        var = jnp.mean((x - mu) ** 2, axis=-1, keepdims=True)
        return (x - mu) * jax.lax.rsqrt(var + 1e-5) * g1_ref[...] + b1_ref[...]

    # ---- K / V for the whole sequence: computed once per batch (first S-tile),
    #      cached in VMEM scratch across the S-tile grid axis. ----
    @pl.when(pl.program_id(1) == 0)
    def _():
        nf = layer_norm(xf_ref[...]).astype(jnp.bfloat16)          # (S, D)
        k_sc[...] = jnp.dot(nf, wk_ref[...],
                            preferred_element_type=jnp.float32).astype(jnp.bfloat16)
        v_sc[...] = jnp.dot(nf, wv_ref[...],
                            preferred_element_type=jnp.float32).astype(jnp.bfloat16)

    # ---- query tile sliced from the already-resident full-sequence buffer
    #      (no duplicate per-tile input stream). ----
    row0 = pl.multiple_of(pl.program_id(1) * TS, TS)
    x_t = xf_ref[pl.ds(row0, TS), :]                               # (TS, D) f32
    n_t = layer_norm(x_t).astype(jnp.bfloat16)
    q = jnp.dot(n_t, wq_ref[...],                                  # wq pre-scaled by 1/sqrt(hd)
                preferred_element_type=jnp.float32).astype(jnp.bfloat16)

    # additive key-padding bias (0 => masked), broadcast ONCE (not per head).
    bias = jnp.where(mask_ref[...] == 0.0, -1.0e9, 0.0)            # (1, S) f32
    bias = jnp.broadcast_to(bias, (TS, S))

    # ---- attention: per-head softmax, outputs written into o_sc slices ----
    dn = (((1,), (1,)), ((), ()))          # contract last dims (no explicit k.T)
    for h in range(heads):                 # static loop; heads is small
        lo = h * hd
        s = jax.lax.dot_general(q[:, lo:lo + hd], k_sc[:, lo:lo + hd], dn,
                                preferred_element_type=jnp.float32)   # (TS, S)
        s = s + bias
        s = s - jnp.max(s, axis=-1, keepdims=True)
        p = jnp.exp(s)
        p = p * pl.reciprocal(jnp.sum(p, axis=-1, keepdims=True), approx=True)
        o_sc[:, lo:lo + hd] = jnp.dot(p.astype(jnp.bfloat16), v_sc[:, lo:lo + hd],
                                      preferred_element_type=jnp.float32
                                      ).astype(jnp.bfloat16)

    # single D-wide contraction for the output projection (full MXU width)
    attn = jnp.dot(o_sc[...], wo_ref[...], preferred_element_type=jnp.float32)

    x2 = x_t + attn                                                # residual 1 (dropout1 = id)

    # LayerNorm2 / LayerNorm3 are unused by the torch forward -> skipped.

    # ---- FeedForward (exact-erf GELU in f32); chunk d_ff only when needed ----
    x2b = x2.astype(jnp.bfloat16)
    inv_sqrt2 = 1.0 / math.sqrt(2.0)
    if ff_chunk >= d_ff:
        h1 = jnp.dot(x2b, w1_ref[...],
                     preferred_element_type=jnp.float32) + bf1_ref[...]
        g = 0.5 * h1 * (1.0 + jax.lax.erf(h1 * inv_sqrt2))
        ff = jnp.dot(g.astype(jnp.bfloat16), w2_ref[...],
                     preferred_element_type=jnp.float32)
    else:
        ff = jnp.zeros((TS, D), jnp.float32)
        for c in range(d_ff // ff_chunk):
            c0 = c * ff_chunk
            h1 = jnp.dot(x2b, w1_ref[:, c0:c0 + ff_chunk],
                         preferred_element_type=jnp.float32) + bf1_ref[:, c0:c0 + ff_chunk]
            g = 0.5 * h1 * (1.0 + jax.lax.erf(h1 * inv_sqrt2))
            ff = ff + jnp.dot(g.astype(jnp.bfloat16), w2_ref[c0:c0 + ff_chunk, :],
                              preferred_element_type=jnp.float32)

    out_ref[...] = x2 + ff + bf2_ref[...]                          # residual 2 (dropout2 = id)


def encoder_block(x, src_mask, params, *, heads: int, block_s=None):
    """x: (B, S, D) f32.  src_mask: (B, 1, S, S) (or (B, S)) with 0 => masked.

    src_mask is treated as a key-padding mask broadcast over query positions
    (the standard encoder src_mask); only its key axis is shipped to the kernel.
    """
    B, S, D = x.shape
    d_ff = params["w1"].shape[1]
    assert D % heads == 0
    hd = D // heads

    # (B, 1, S) key-padding mask (O(S) DMA per batch instead of O(S^2)).
    if src_mask.ndim == 4:
        key_mask = src_mask[:, :, 0, :]
    else:
        key_mask = src_mask.reshape(B, 1, S)
    key_mask = key_mask.astype(jnp.float32)

    # ---- generation-aware VMEM budget ----
    vmem_cap = None
    try:
        info = pltpu.get_tpu_info()
        vmem_cap = int(getattr(info, "vmem_capacity_bytes"))
    except Exception:
        vmem_cap = None
    if not vmem_cap or vmem_cap <= 0:
        vmem_cap = 64 << 20                      # conservative (v7x per-core)
    vmem_budget = max(vmem_cap - (12 << 20), 16 << 20)

    # ---- S-tile size (multiple of 8 dividing S, or full S), budget-aware ----
    if block_s is None:
        if vmem_budget >= (96 << 20):
            cand = (1024, 512, 256, 128, 64, 32, 16, 8)
        elif vmem_budget >= (40 << 20):
            cand = (512, 256, 128, 64, 32, 16, 8)
        else:
            cand = (256, 128, 64, 32, 16, 8)
        chosen = None
        smallest_div = None
        for ts in cand:                          # largest -> smallest
            if S % ts == 0:
                smallest_div = ts
                ws = 4 * ts * (2 * S + 6 * D + 2 * min(d_ff, 1024))
                if chosen is None and ws * 3 <= vmem_budget:
                    chosen = ts
        block_s = chosen if chosen is not None else (
            smallest_div if smallest_div is not None else S)
    assert S % block_s == 0
    num_t = S // block_s

    # ---- d_ff chunk for the FFN: only chunk when the intermediate is large ----
    ff_chunk = d_ff
    if 4 * block_s * d_ff > (vmem_budget // 8) and d_ff % 512 == 0:
        ff_chunk = 512

    scale = 1.0 / math.sqrt(hd)
    bf16 = jnp.bfloat16
    weight_args = (
        params["ln1_g"].reshape(1, D).astype(jnp.float32),
        params["ln1_b"].reshape(1, D).astype(jnp.float32),
        (params["wq"] * scale).astype(bf16),     # 1/sqrt(hd) folded into wq
        params["wk"].astype(bf16),
        params["wv"].astype(bf16),
        params["wo"].astype(bf16),
        params["w1"].astype(bf16),
        params["b1"].reshape(1, d_ff).astype(jnp.float32),
        params["w2"].astype(bf16),
        params["b2"].reshape(1, D).astype(jnp.float32),
    )

    # ---- explicit VMEM limit (weights + pipelined IO + scratch + working set) ----
    weight_bytes = sum(int(a.size) * a.dtype.itemsize for a in weight_args)
    io_bytes = 2 * (4 * S * D + 4 * S) + 2 * 4 * block_s * D
    scratch_bytes = 2 * (2 * S * D) + 2 * block_s * D
    work_bytes = 4 * block_s * (8 * D + 2 * S + 2 * ff_chunk)
    vmem_limit = 2 * weight_bytes + io_bytes + scratch_bytes + work_bytes + (6 << 20)
    vmem_limit = int(min(max(vmem_limit, 16 << 20), vmem_budget))

    kernel = functools.partial(_encoder_block_kernel, heads=heads, ff_chunk=ff_chunk)

    def make_call(weight_pipeline_mode):
        def weight_spec(a):
            nd = a.ndim
            if weight_pipeline_mode is None:
                return pl.BlockSpec(a.shape, lambda b, t: (0,) * nd)
            return pl.BlockSpec(a.shape, lambda b, t: (0,) * nd,
                                pipeline_mode=weight_pipeline_mode)

        return pl.pallas_call(
            kernel,
            out_shape=jax.ShapeDtypeStruct((B, S, D), jnp.float32),
            grid_spec=pltpu.PrefetchScalarGridSpec(
                num_scalar_prefetch=0,
                grid=(B, num_t),
                in_specs=[
                    # full sequence of x (queries sliced from it; K/V built from it)
                    pl.BlockSpec((pl.Squeezed(), S, D), lambda b, t: (b, 0, 0)),
                    # key-padding mask
                    pl.BlockSpec((pl.Squeezed(), 1, S), lambda b, t: (b, 0, 0)),
                ] + [weight_spec(a) for a in weight_args],
                out_specs=pl.BlockSpec((pl.Squeezed(), block_s, D),
                                       lambda b, t: (b, t, 0)),
                scratch_shapes=[
                    pltpu.VMEM((S, D), jnp.bfloat16),        # K cache (per batch)
                    pltpu.VMEM((S, D), jnp.bfloat16),        # V cache (per batch)
                    pltpu.VMEM((block_s, D), jnp.bfloat16),  # per-head attn outputs
                ],
            ),
            compiler_params=pltpu.CompilerParams(
                dimension_semantics=("parallel", "arbitrary"),
                vmem_limit_bytes=vmem_limit,
            ),
        )

    # Prefer single-buffered invariant weights (halves weight VMEM, key on v7x);
    # fall back to default buffering if this JAX build rejects Buffered(1).
    try:
        return make_call(pl.Buffered(1))(x, key_mask, *weight_args)
    except Exception:
        return make_call(None)(x, key_mask, *weight_args)


def encoder_block_ref(x, src_mask, params, *, heads: int):
    """Pure-JAX f32 reference that mirrors the torch forward exactly."""
    B, S, D = x.shape
    hd = D // heads
    mu = x.mean(-1, keepdims=True)
    var = ((x - mu) ** 2).mean(-1, keepdims=True)
    norm = (x - mu) / jnp.sqrt(var + 1e-5) * params["ln1_g"] + params["ln1_b"]
    q = norm @ params["wq"]
    k = norm @ params["wk"]
    v = norm @ params["wv"]
    split = lambda t: t.reshape(B, S, heads, hd).transpose(0, 2, 1, 3)
    qh, kh, vh = split(q), split(k), split(v)
    att = (qh @ kh.transpose(0, 1, 3, 2)) / math.sqrt(hd)
    att = jnp.where(src_mask == 0, -1.0e9, att)
    att = jax.nn.softmax(att, axis=-1)
    ao = (att @ vh).transpose(0, 2, 1, 3).reshape(B, S, D) @ params["wo"]
    x2 = x + ao
    h1 = x2 @ params["w1"] + params["b1"]
    g = 0.5 * h1 * (1.0 + jax.lax.erf(h1 / math.sqrt(2.0)))
    return x2 + g @ params["w2"] + params["b2"]


def init_params(key, d_model: int, d_ff: int):
    ks = jax.random.split(key, 8)
    s = 0.05
    return {
        "ln1_g": jnp.ones((d_model,), jnp.float32),
        "ln1_b": jnp.zeros((d_model,), jnp.float32),
        # linear weights stored as (in, out)  == torch_weight.T
        "wq": s * jax.random.normal(ks[0], (d_model, d_model), jnp.float32),
        "wk": s * jax.random.normal(ks[1], (d_model, d_model), jnp.float32),
        "wv": s * jax.random.normal(ks[2], (d_model, d_model), jnp.float32),
        "wo": s * jax.random.normal(ks[3], (d_model, d_model), jnp.float32),
        "w1": s * jax.random.normal(ks[4], (d_model, d_ff), jnp.float32),
        "b1": s * jax.random.normal(ks[5], (d_ff,), jnp.float32),
        "w2": s * jax.random.normal(ks[6], (d_ff, d_model), jnp.float32),
        "b2": s * jax.random.normal(ks[7], (d_model,), jnp.float32),
    }


if __name__ == "__main__":
    # Small but lane-dense shapes (D a multiple of 128 per the perf review).
    # NOTE: ideal head_dim is >=128 for full MXU width; the demo uses hd=32.
    B, S, d_model, heads, d_ff = 2, 16, 128, 4, 256

    key = jax.random.PRNGKey(0)
    kx, kp = jax.random.split(key, 2)
    x = jax.random.normal(kx, (B, S, d_model), jnp.float32)

    # padding-style mask: batch 0 attends to first 10 tokens, batch 1 to all 16
    lengths = jnp.array([10, 16], dtype=jnp.int32)
    col = jnp.arange(S)[None, None, None, :]                  # (1,1,1,S)
    src_mask = (col < lengths[:, None, None, None]).astype(jnp.float32)
    src_mask = jnp.broadcast_to(src_mask, (B, 1, S, S))       # (B,1,S,S)

    params = init_params(kp, d_model, d_ff)

    # block_s=8 so the S-tiling / cached-K/V path (t > 0) is actually exercised.
    out = encoder_block(x, src_mask, params, heads=heads, block_s=8)
    out = jax.block_until_ready(out)

    ref = encoder_block_ref(x, src_mask, params, heads=heads)

    assert out.shape == (B, S, d_model)
    assert bool(jnp.all(jnp.isfinite(out)))
    # bf16 MXU operands + approx reciprocal => ~1e-2 abs tolerance vs f32 reference.
    assert bool(jnp.allclose(out, ref, atol=5e-2, rtol=5e-2)), \
        float(jnp.max(jnp.abs(out - ref)))
    print("KERNEL_OK")
</pallas_src>

<mosaic_0001>
module attributes {stable_mosaic.version = 11 : i64} {
  func.func @_encoder_block_kernel(%arg0: i32, %arg1: i32, %arg2: memref<1x16x128xf32, #tpu.memory_space<vmem>>, %arg3: memref<1x1x16xf32, #tpu.memory_space<vmem>>, %arg4: memref<1x128xf32, #tpu.memory_space<vmem>>, %arg5: memref<1x128xf32, #tpu.memory_space<vmem>>, %arg6: memref<128x128xbf16, #tpu.memory_space<vmem>>, %arg7: memref<128x128xbf16, #tpu.memory_space<vmem>>, %arg8: memref<128x128xbf16, #tpu.memory_space<vmem>>, %arg9: memref<128x128xbf16, #tpu.memory_space<vmem>>, %arg10: memref<128x256xbf16, #tpu.memory_space<vmem>>, %arg11: memref<1x256xf32, #tpu.memory_space<vmem>>, %arg12: memref<256x128xbf16, #tpu.memory_space<vmem>>, %arg13: memref<1x128xf32, #tpu.memory_space<vmem>>, %arg14: memref<1x8x128xf32, #tpu.memory_space<vmem>>, %arg15: memref<16x128xbf16, #tpu.memory_space<vmem>>, %arg16: memref<16x128xbf16, #tpu.memory_space<vmem>>, %arg17: memref<8x128xbf16, #tpu.memory_space<vmem>>) attributes {dimension_semantics = [#tpu.dimension_semantics<parallel>, #tpu.dimension_semantics<arbitrary>], iteration_bounds = array<i64: 2, 2>, scalar_prefetch = 0 : i64, scratch_operands = 3 : i64, tpu.core_type = #tpu.core_type<tc>, window_params = [{transform_indices = @transform_0, window_bounds = array<i64: 1, 16, 128>}, {transform_indices = @transform_1, window_bounds = array<i64: 1, 1, 16>}, {pipeline_mode = #tpu.pipeline_mode<synchronous>, transform_indices = @transform_2, window_bounds = array<i64: 1, 128>}, {pipeline_mode = #tpu.pipeline_mode<synchronous>, transform_indices = @transform_3, window_bounds = array<i64: 1, 128>}, {pipeline_mode = #tpu.pipeline_mode<synchronous>, transform_indices = @transform_4, window_bounds = array<i64: 128, 128>}, {pipeline_mode = #tpu.pipeline_mode<synchronous>, transform_indices = @transform_5, window_bounds = array<i64: 128, 128>}, {pipeline_mode = #tpu.pipeline_mode<synchronous>, transform_indices = @transform_6, window_bounds = array<i64: 128, 128>}, {pipeline_mode = #tpu.pipeline_mode<synchronous>, transform_indices = @transform_7, window_bounds = array<i64: 128, 128>}, {pipeline_mode = #tpu.pipeline_mode<synchronous>, transform_indices = @transform_8, window_bounds = array<i64: 128, 256>}, {pipeline_mode = #tpu.pipeline_mode<synchronous>, transform_indices = @transform_9, window_bounds = array<i64: 1, 256>}, {pipeline_mode = #tpu.pipeline_mode<synchronous>, transform_indices = @transform_10, window_bounds = array<i64: 256, 128>}, {pipeline_mode = #tpu.pipeline_mode<synchronous>, transform_indices = @transform_11, window_bounds = array<i64: 1, 128>}, {transform_indices = @transform_12, window_bounds = array<i64: 1, 8, 128>}]} {
    %c0_i32 = arith.constant 0 : i32
    %0 = arith.cmpi eq, %arg1, %c0_i32 : i32
    %1 = arith.extui %0 : i1 to i32
    %c0_i32_0 = arith.constant 0 : i32
    %2 = arith.cmpi ne, %1, %c0_i32_0 : i32
    scf.if %2 {
      %c0_77 = arith.constant 0 : index
      %c0_78 = arith.constant 0 : index
      %c0_79 = arith.constant 0 : index
      %149 = vector.load %arg2[%c0_77, %c0_78, %c0_79] : memref<1x16x128xf32, #tpu.memory_space<vmem>>, vector<1x16x128xf32>
      %150 = vector.shape_cast %149 : vector<1x16x128xf32> to vector<16x128xf32>
      %cst_80 = arith.constant dense<0.000000e+00> : vector<16xf32>
      %151 = vector.multi_reduction <add>, %150, %cst_80 [1] : vector<16x128xf32> to vector<16xf32>
      %152 = vector.shape_cast %151 : vector<16xf32> to vector<16x1xf32>
      %cst_81 = arith.constant 1.280000e+02 : f32
      %153 = vector.broadcast %cst_81 : f32 to vector<16x1xf32>
      %154 = arith.divf %152, %153 : vector<16x1xf32>
      %155 = vector.broadcast %154 : vector<16x1xf32> to vector<16x128xf32>
      %156 = arith.subf %150, %155 : vector<16x128xf32>
      %157 = arith.mulf %156, %156 : vector<16x128xf32>
      %cst_82 = arith.constant dense<0.000000e+00> : vector<16xf32>
      %158 = vector.multi_reduction <add>, %157, %cst_82 [1] : vector<16x128xf32> to vector<16xf32>
      %159 = vector.shape_cast %158 : vector<16xf32> to vector<16x1xf32>
      %cst_83 = arith.constant 1.280000e+02 : f32
      %160 = vector.broadcast %cst_83 : f32 to vector<16x1xf32>
      %161 = arith.divf %159, %160 : vector<16x1xf32>
      %162 = vector.broadcast %154 : vector<16x1xf32> to vector<16x128xf32>
      %163 = arith.subf %150, %162 : vector<16x128xf32>
      %cst_84 = arith.constant 9.99999974E-6 : f32
      %164 = vector.broadcast %cst_84 : f32 to vector<16x1xf32>
      %165 = arith.addf %161, %164 : vector<16x1xf32>
      %166 = math.rsqrt %165 : vector<16x1xf32>
      %167 = vector.broadcast %166 : vector<16x1xf32> to vector<16x128xf32>
      %168 = arith.mulf %163, %167 : vector<16x128xf32>
      %c0_85 = arith.constant 0 : index
      %c0_86 = arith.constant 0 : index
      %169 = vector.load %arg4[%c0_85, %c0_86] : memref<1x128xf32, #tpu.memory_space<vmem>>, vector<1x128xf32>
      %170 = vector.broadcast %169 : vector<1x128xf32> to vector<16x128xf32>
      %171 = arith.mulf %168, %170 : vector<16x128xf32>
      %c0_87 = arith.constant 0 : index
      %c0_88 = arith.constant 0 : index
      %172 = vector.load %arg5[%c0_87, %c0_88] : memref<1x128xf32, #tpu.memory_space<vmem>>, vector<1x128xf32>
      %173 = vector.broadcast %172 : vector<1x128xf32> to vector<16x128xf32>
      %174 = arith.addf %171, %173 : vector<16x128xf32>
      %175 = arith.truncf %174 : vector<16x128xf32> to vector<16x128xbf16>
      %c0_89 = arith.constant 0 : index
      %c0_90 = arith.constant 0 : index
      %176 = vector.load %arg7[%c0_89, %c0_90] : memref<128x128xbf16, #tpu.memory_space<vmem>>, vector<128x128xbf16>
      %cst_91 = arith.constant dense<0.000000e+00> : vector<16x128xf32>
      %177 = tpu.matmul %175, %176, %cst_91 {dimension_numbers = #tpu.dot_dimension_numbers<[1], [0], [0], [1], [0, 0, 1, 1], [], []>} : vector<16x128xbf16>, vector<128x128xbf16>, vector<16x128xf32> -> vector<16x128xf32>
      %178 = arith.truncf %177 : vector<16x128xf32> to vector<16x128xbf16>
      %c0_92 = arith.constant 0 : index
      %c0_93 = arith.constant 0 : index
      %179 = vector.load %arg15[%c0_92, %c0_93] : memref<16x128xbf16, #tpu.memory_space<vmem>>, vector<16x128xbf16>
      tpu.vector_store %arg15[%c0_92, %c0_93], %178 {strides = array<i32>} : memref<16x128xbf16, #tpu.memory_space<vmem>>, vector<16x128xbf16>,
      %c0_94 = arith.constant 0 : index
      %c0_95 = arith.constant 0 : index
      %180 = vector.load %arg8[%c0_94, %c0_95] : memref<128x128xbf16, #tpu.memory_space<vmem>>, vector<128x128xbf16>
      %cst_96 = arith.constant dense<0.000000e+00> : vector<16x128xf32>
      %181 = tpu.matmul %175, %180, %cst_96 {dimension_numbers = #tpu.dot_dimension_numbers<[1], [0], [0], [1], [0, 0, 1, 1], [], []>} : vector<16x128xbf16>, vector<128x128xbf16>, vector<16x128xf32> -> vector<16x128xf32>
      %182 = arith.truncf %181 : vector<16x128xf32> to vector<16x128xbf16>
      %c0_97 = arith.constant 0 : index
      %c0_98 = arith.constant 0 : index
      %183 = vector.load %arg16[%c0_97, %c0_98] : memref<16x128xbf16, #tpu.memory_space<vmem>>, vector<16x128xbf16>
      tpu.vector_store %arg16[%c0_97, %c0_98], %182 {strides = array<i32>} : memref<16x128xbf16, #tpu.memory_space<vmem>>, vector<16x128xbf16>,
    } else {
    }
    %c8_i32 = arith.constant 8 : i32
    %3 = arith.muli %arg1, %c8_i32 : i32
    %4 = tpu.assume_multiple %3, 8 : i32
    %c0 = arith.constant 0 : index
    %5 = arith.index_cast %4 : i32 to index
    %c0_1 = arith.constant 0 : index
    %6 = vector.load %arg2[%c0, %5, %c0_1] : memref<1x16x128xf32, #tpu.memory_space<vmem>>, vector<1x8x128xf32>
    %7 = vector.shape_cast %6 : vector<1x8x128xf32> to vector<8x128xf32>
    %cst = arith.constant dense<0.000000e+00> : vector<8xf32>
    %8 = vector.multi_reduction <add>, %7, %cst [1] : vector<8x128xf32> to vector<8xf32>
    %9 = vector.shape_cast %8 : vector<8xf32> to vector<8x1xf32>
    %cst_2 = arith.constant 1.280000e+02 : f32
    %10 = vector.broadcast %cst_2 : f32 to vector<8x1xf32>
    %11 = arith.divf %9, %10 : vector<8x1xf32>
    %12 = vector.broadcast %11 : vector<8x1xf32> to vector<8x128xf32>
    %13 = arith.subf %7, %12 : vector<8x128xf32>
    %14 = arith.mulf %13, %13 : vector<8x128xf32>
    %cst_3 = arith.constant dense<0.000000e+00> : vector<8xf32>
    %15 = vector.multi_reduction <add>, %14, %cst_3 [1] : vector<8x128xf32> to vector<8xf32>
    %16 = vector.shape_cast %15 : vector<8xf32> to vector<8x1xf32>
    %cst_4 = arith.constant 1.280000e+02 : f32
    %17 = vector.broadcast %cst_4 : f32 to vector<8x1xf32>
    %18 = arith.divf %16, %17 : vector<8x1xf32>
    %19 = vector.broadcast %11 : vector<8x1xf32> to vector<8x128xf32>
    %20 = arith.subf %7, %19 : vector<8x128xf32>
    %cst_5 = arith.constant 9.99999974E-6 : f32
    %21 = vector.broadcast %cst_5 : f32 to vector<8x1xf32>
    %22 = arith.addf %18, %21 : vector<8x1xf32>
    %23 = math.rsqrt %22 : vector<8x1xf32>
    %24 = vector.broadcast %23 : vector<8x1xf32> to vector<8x128xf32>
    %25 = arith.mulf %20, %24 : vector<8x128xf32>
    %c0_6 = arith.constant 0 : index
    %c0_7 = arith.constant 0 : index
    %26 = vector.load %arg4[%c0_6, %c0_7] : memref<1x128xf32, #tpu.memory_space<vmem>>, vector<1x128xf32>
    %27 = vector.broadcast %26 : vector<1x128xf32> to vector<8x128xf32>
    %28 = arith.mulf %25, %27 : vector<8x128xf32>
    %c0_8 = arith.constant 0 : index
    %c0_9 = arith.constant 0 : index
    %29 = vector.load %arg5[%c0_8, %c0_9] : memref<1x128xf32, #tpu.memory_space<vmem>>, vector<1x128xf32>
    %30 = vector.broadcast %29 : vector<1x128xf32> to vector<8x128xf32>
    %31 = arith.addf %28, %30 : vector<8x128xf32>
    %32 = arith.truncf %31 : vector<8x128xf32> to vector<8x128xbf16>
    %c0_10 = arith.constant 0 : index
    %c0_11 = arith.constant 0 : index
    %33 = vector.load %arg6[%c0_10, %c0_11] : memref<128x128xbf16, #tpu.memory_space<vmem>>, vector<128x128xbf16>
    %cst_12 = arith.constant dense<0.000000e+00> : vector<8x128xf32>
    %34 = tpu.matmul %32, %33, %cst_12 {dimension_numbers = #tpu.dot_dimension_numbers<[1], [0], [0], [1], [0, 0, 1, 1], [], []>} : vector<8x128xbf16>, vector<128x128xbf16>, vector<8x128xf32> -> vector<8x128xf32>
    %35 = arith.truncf %34 : vector<8x128xf32> to vector<8x128xbf16>
    %c0_13 = arith.constant 0 : index
    %c0_14 = arith.constant 0 : index
    %c0_15 = arith.constant 0 : index
    %36 = vector.load %arg3[%c0_13, %c0_14, %c0_15] : memref<1x1x16xf32, #tpu.memory_space<vmem>>, vector<1x1x16xf32>
    %37 = vector.shape_cast %36 : vector<1x1x16xf32> to vector<1x16xf32>
    %cst_16 = arith.constant 0.000000e+00 : f32
    %38 = vector.broadcast %cst_16 : f32 to vector<1x16xf32>
    %39 = arith.cmpf oeq, %37, %38 : vector<1x16xf32>
    %cst_17 = arith.constant -1.000000e+09 : f32
    %cst_18 = arith.constant 0.000000e+00 : f32
    %40 = vector.broadcast %cst_17 : f32 to vector<1x16xf32>
    %41 = vector.broadcast %cst_18 : f32 to vector<1x16xf32>
    %42 = arith.select %39, %40, %41 : vector<1x16xi1>, vector<1x16xf32>
    %43 = vector.shape_cast %42 : vector<1x16xf32> to vector<1x16xf32>
    %44 = vector.broadcast %43 : vector<1x16xf32> to vector<8x16xf32>
    %45 = vector.extract_strided_slice %35 {offsets = [0, 0], sizes = [8, 32], strides = [1, 1]} : vector<8x128xbf16> to vector<8x32xbf16>
    %c0_19 = arith.constant 0 : index
    %c0_20 = arith.constant 0 : index
    %46 = vector.load %arg15[%c0_19, %c0_20] : memref<16x128xbf16, #tpu.memory_space<vmem>>, vector<16x32xbf16>
    %cst_21 = arith.constant dense<0.000000e+00> : vector<8x16xf32>
    %47 = tpu.matmul %45, %46, %cst_21 {dimension_numbers = #tpu.dot_dimension_numbers<[1], [1], [0], [0], [0, 0, 1, 0], [], []>} : vector<8x32xbf16>, vector<16x32xbf16>, vector<8x16xf32> -> vector<8x16xf32>
    %48 = arith.addf %47, %44 : vector<8x16xf32>
    %cst_22 = arith.constant dense<0xFF800000> : vector<8xf32>
    %49 = vector.multi_reduction <maximumf>, %48, %cst_22 [1] : vector<8x16xf32> to vector<8xf32>
    %50 = vector.shape_cast %49 : vector<8xf32> to vector<8x1xf32>
    %51 = vector.broadcast %50 : vector<8x1xf32> to vector<8x16xf32>
    %52 = arith.subf %48, %51 : vector<8x16xf32>
    %53 = math.exp %52 : vector<8x16xf32>
    %cst_23 = arith.constant dense<0.000000e+00> : vector<8xf32>
    %54 = vector.multi_reduction <add>, %53, %cst_23 [1] : vector<8x16xf32> to vector<8xf32>
    %55 = vector.shape_cast %54 : vector<8xf32> to vector<8x1xf32>
    %56 = tpu.reciprocal %55 {approx = true} : vector<8x1xf32> -> vector<8x1xf32>
    %57 = vector.broadcast %56 : vector<8x1xf32> to vector<8x16xf32>
    %58 = arith.mulf %53, %57 : vector<8x16xf32>
    %59 = arith.truncf %58 : vector<8x16xf32> to vector<8x16xbf16>
    %c0_24 = arith.constant 0 : index
    %c0_25 = arith.constant 0 : index
    %60 = vector.load %arg16[%c0_24, %c0_25] : memref<16x128xbf16, #tpu.memory_space<vmem>>, vector<16x32xbf16>
    %cst_26 = arith.constant dense<0.000000e+00> : vector<8x32xf32>
    %61 = tpu.matmul %59, %60, %cst_26 {dimension_numbers = #tpu.dot_dimension_numbers<[1], [0], [0], [1], [0, 0, 1, 1], [], []>} : vector<8x16xbf16>, vector<16x32xbf16>, vector<8x32xf32> -> vector<8x32xf32>
    %62 = arith.truncf %61 : vector<8x32xf32> to vector<8x32xbf16>
    %c0_27 = arith.constant 0 : index
    %c0_28 = arith.constant 0 : index
    %63 = vector.load %arg17[%c0_27, %c0_28] : memref<8x128xbf16, #tpu.memory_space<vmem>>, vector<8x32xbf16>
    tpu.vector_store %arg17[%c0_27, %c0_28], %62 {strides = array<i32>} : memref<8x128xbf16, #tpu.memory_space<vmem>>, vector<8x32xbf16>,
    %64 = vector.extract_strided_slice %35 {offsets = [0, 32], sizes = [8, 32], strides = [1, 1]} : vector<8x128xbf16> to vector<8x32xbf16>
    %c0_29 = arith.constant 0 : index
    %c32 = arith.constant 32 : index
    %65 = vector.load %arg15[%c0_29, %c32] : memref<16x128xbf16, #tpu.memory_space<vmem>>, vector<16x32xbf16>
    %cst_30 = arith.constant dense<0.000000e+00> : vector<8x16xf32>
    %66 = tpu.matmul %64, %65, %cst_30 {dimension_numbers = #tpu.dot_dimension_numbers<[1], [1], [0], [0], [0, 0, 1, 0], [], []>} : vector<8x32xbf16>, vector<16x32xbf16>, vector<8x16xf32> -> vector<8x16xf32>
    %67 = arith.addf %66, %44 : vector<8x16xf32>
    %cst_31 = arith.constant dense<0xFF800000> : vector<8xf32>
    %68 = vector.multi_reduction <maximumf>, %67, %cst_31 [1] : vector<8x16xf32> to vector<8xf32>
    %69 = vector.shape_cast %68 : vector<8xf32> to vector<8x1xf32>
    %70 = vector.broadcast %69 : vector<8x1xf32> to vector<8x16xf32>
    %71 = arith.subf %67, %70 : vector<8x16xf32>
    %72 = math.exp %71 : vector<8x16xf32>
    %cst_32 = arith.constant dense<0.000000e+00> : vector<8xf32>
    %73 = vector.multi_reduction <add>, %72, %cst_32 [1] : vector<8x16xf32> to vector<8xf32>
    %74 = vector.shape_cast %73 : vector<8xf32> to vector<8x1xf32>
    %75 = tpu.reciprocal %74 {approx = true} : vector<8x1xf32> -> vector<8x1xf32>
    %76 = vector.broadcast %75 : vector<8x1xf32> to vector<8x16xf32>
    %77 = arith.mulf %72, %76 : vector<8x16xf32>
    %78 = arith.truncf %77 : vector<8x16xf32> to vector<8x16xbf16>
    %c0_33 = arith.constant 0 : index
    %c32_34 = arith.constant 32 : index
    %79 = vector.load %arg16[%c0_33, %c32_34] : memref<16x128xbf16, #tpu.memory_space<vmem>>, vector<16x32xbf16>
    %cst_35 = arith.constant dense<0.000000e+00> : vector<8x32xf32>
    %80 = tpu.matmul %78, %79, %cst_35 {dimension_numbers = #tpu.dot_dimension_numbers<[1], [0], [0], [1], [0, 0, 1, 1], [], []>} : vector<8x16xbf16>, vector<16x32xbf16>, vector<8x32xf32> -> vector<8x32xf32>
    %81 = arith.truncf %80 : vector<8x32xf32> to vector<8x32xbf16>
    %c0_36 = arith.constant 0 : index
    %c32_37 = arith.constant 32 : index
    %82 = vector.load %arg17[%c0_36, %c32_37] : memref<8x128xbf16, #tpu.memory_space<vmem>>, vector<8x32xbf16>
    tpu.vector_store %arg17[%c0_36, %c32_37], %81 {strides = array<i32>} : memref<8x128xbf16, #tpu.memory_space<vmem>>, vector<8x32xbf16>,
    %83 = vector.extract_strided_slice %35 {offsets = [0, 64], sizes = [8, 32], strides = [1, 1]} : vector<8x128xbf16> to vector<8x32xbf16>
    %c0_38 = arith.constant 0 : index
    %c64 = arith.constant 64 : index
    %84 = vector.load %arg15[%c0_38, %c64] : memref<16x128xbf16, #tpu.memory_space<vmem>>, vector<16x32xbf16>
    %cst_39 = arith.constant dense<0.000000e+00> : vector<8x16xf32>
    %85 = tpu.matmul %83, %84, %cst_39 {dimension_numbers = #tpu.dot_dimension_numbers<[1], [1], [0], [0], [0, 0, 1, 0], [], []>} : vector<8x32xbf16>, vector<16x32xbf16>, vector<8x16xf32> -> vector<8x16xf32>
    %86 = arith.addf %85, %44 : vector<8x16xf32>
    %cst_40 = arith.constant dense<0xFF800000> : vector<8xf32>
    %87 = vector.multi_reduction <maximumf>, %86, %cst_40 [1] : vector<8x16xf32> to vector<8xf32>
    %88 = vector.shape_cast %87 : vector<8xf32> to vector<8x1xf32>
    %89 = vector.broadcast %88 : vector<8x1xf32> to vector<8x16xf32>
    %90 = arith.subf %86, %89 : vector<8x16xf32>
    %91 = math.exp %90 : vector<8x16xf32>
    %cst_41 = arith.constant dense<0.000000e+00> : vector<8xf32>
    %92 = vector.multi_reduction <add>, %91, %cst_41 [1] : vector<8x16xf32> to vector<8xf32>
    %93 = vector.shape_cast %92 : vector<8xf32> to vector<8x1xf32>
    %94 = tpu.reciprocal %93 {approx = true} : vector<8x1xf32> -> vector<8x1xf32>
    %95 = vector.broadcast %94 : vector<8x1xf32> to vector<8x16xf32>
    %96 = arith.mulf %91, %95 : vector<8x16xf32>
    %97 = arith.truncf %96 : vector<8x16xf32> to vector<8x16xbf16>
    %c0_42 = arith.constant 0 : index
    %c64_43 = arith.constant 64 : index
    %98 = vector.load %arg16[%c0_42, %c64_43] : memref<16x128xbf16, #tpu.memory_space<vmem>>, vector<16x32xbf16>
    %cst_44 = arith.constant dense<0.000000e+00> : vector<8x32xf32>
    %99 = tpu.matmul %97, %98, %cst_44 {dimension_numbers = #tpu.dot_dimension_numbers<[1], [0], [0], [1], [0, 0, 1, 1], [], []>} : vector<8x16xbf16>, vector<16x32xbf16>, vector<8x32xf32> -> vector<8x32xf32>
    %100 = arith.truncf %99 : vector<8x32xf32> to vector<8x32xbf16>
    %c0_45 = arith.constant 0 : index
    %c64_46 = arith.constant 64 : index
    %101 = vector.load %arg17[%c0_45, %c64_46] : memref<8x128xbf16, #tpu.memory_space<vmem>>, vector<8x32xbf16>
    tpu.vector_store %arg17[%c0_45, %c64_46], %100 {strides = array<i32>} : memref<8x128xbf16, #tpu.memory_space<vmem>>, vector<8x32xbf16>,
    %102 = vector.extract_strided_slice %35 {offsets = [0, 96], sizes = [8, 32], strides = [1, 1]} : vector<8x128xbf16> to vector<8x32xbf16>
    %c0_47 = arith.constant 0 : index
    %c96 = arith.constant 96 : index
    %103 = vector.load %arg15[%c0_47, %c96] : memref<16x128xbf16, #tpu.memory_space<vmem>>, vector<16x32xbf16>
    %cst_48 = arith.constant dense<0.000000e+00> : vector<8x16xf32>
    %104 = tpu.matmul %102, %103, %cst_48 {dimension_numbers = #tpu.dot_dimension_numbers<[1], [1], [0], [0], [0, 0, 1, 0], [], []>} : vector<8x32xbf16>, vector<16x32xbf16>, vector<8x16xf32> -> vector<8x16xf32>
    %105 = arith.addf %104, %44 : vector<8x16xf32>
    %cst_49 = arith.constant dense<0xFF800000> : vector<8xf32>
    %106 = vector.multi_reduction <maximumf>, %105, %cst_49 [1] : vector<8x16xf32> to vector<8xf32>
    %107 = vector.shape_cast %106 : vector<8xf32> to vector<8x1xf32>
    %108 = vector.broadcast %107 : vector<8x1xf32> to vector<8x16xf32>
    %109 = arith.subf %105, %108 : vector<8x16xf32>
    %110 = math.exp %109 : vector<8x16xf32>
    %cst_50 = arith.constant dense<0.000000e+00> : vector<8xf32>
    %111 = vector.multi_reduction <add>, %110, %cst_50 [1] : vector<8x16xf32> to vector<8xf32>
    %112 = vector.shape_cast %111 : vector<8xf32> to vector<8x1xf32>
    %113 = tpu.reciprocal %112 {approx = true} : vector<8x1xf32> -> vector<8x1xf32>
    %114 = vector.broadcast %113 : vector<8x1xf32> to vector<8x16xf32>
    %115 = arith.mulf %110, %114 : vector<8x16xf32>
    %116 = arith.truncf %115 : vector<8x16xf32> to vector<8x16xbf16>
    %c0_51 = arith.constant 0 : index
    %c96_52 = arith.constant 96 : index
    %117 = vector.load %arg16[%c0_51, %c96_52] : memref<16x128xbf16, #tpu.memory_space<vmem>>, vector<16x32xbf16>
    %cst_53 = arith.constant dense<0.000000e+00> : vector<8x32xf32>
    %118 = tpu.matmul %116, %117, %cst_53 {dimension_numbers = #tpu.dot_dimension_numbers<[1], [0], [0], [1], [0, 0, 1, 1], [], []>} : vector<8x16xbf16>, vector<16x32xbf16>, vector<8x32xf32> -> vector<8x32xf32>
    %119 = arith.truncf %118 : vector<8x32xf32> to vector<8x32xbf16>
    %c0_54 = arith.constant 0 : index
    %c96_55 = arith.constant 96 : index
    %120 = vector.load %arg17[%c0_54, %c96_55] : memref<8x128xbf16, #tpu.memory_space<vmem>>, vector<8x32xbf16>
    tpu.vector_store %arg17[%c0_54, %c96_55], %119 {strides = array<i32>} : memref<8x128xbf16, #tpu.memory_space<vmem>>, vector<8x32xbf16>,
    %c0_56 = arith.constant 0 : index
    %c0_57 = arith.constant 0 : index
    %121 = vector.load %arg17[%c0_56, %c0_57] : memref<8x128xbf16, #tpu.memory_space<vmem>>, vector<8x128xbf16>
    %c0_58 = arith.constant 0 : index
    %c0_59 = arith.constant 0 : index
    %122 = vector.load %arg9[%c0_58, %c0_59] : memref<128x128xbf16, #tpu.memory_space<vmem>>, vector<128x128xbf16>
    %cst_60 = arith.constant dense<0.000000e+00> : vector<8x128xf32>
    %123 = tpu.matmul %121, %122, %cst_60 {dimension_numbers = #tpu.dot_dimension_numbers<[1], [0], [0], [1], [0, 0, 1, 1], [], []>} : vector<8x128xbf16>, vector<128x128xbf16>, vector<8x128xf32> -> vector<8x128xf32>
    %124 = arith.addf %7, %123 : vector<8x128xf32>
    %125 = arith.truncf %124 : vector<8x128xf32> to vector<8x128xbf16>
    %c0_61 = arith.constant 0 : index
    %c0_62 = arith.constant 0 : index
    %126 = vector.load %arg10[%c0_61, %c0_62] : memref<128x256xbf16, #tpu.memory_space<vmem>>, vector<128x256xbf16>
    %cst_63 = arith.constant dense<0.000000e+00> : vector<8x256xf32>
    %127 = tpu.matmul %125, %126, %cst_63 {dimension_numbers = #tpu.dot_dimension_numbers<[1], [0], [0], [1], [0, 0, 1, 1], [], []>} : vector<8x128xbf16>, vector<128x256xbf16>, vector<8x256xf32> -> vector<8x256xf32>
    %c0_64 = arith.constant 0 : index
    %c0_65 = arith.constant 0 : index
    %128 = vector.load %arg11[%c0_64, %c0_65] : memref<1x256xf32, #tpu.memory_space<vmem>>, vector<1x256xf32>
    %129 = vector.broadcast %128 : vector<1x256xf32> to vector<8x256xf32>
    %130 = arith.addf %127, %129 : vector<8x256xf32>
    %cst_66 = arith.constant 5.000000e-01 : f32
    %131 = vector.broadcast %cst_66 : f32 to vector<8x256xf32>
    %132 = arith.mulf %131, %130 : vector<8x256xf32>
    %cst_67 = arith.constant 0.707106769 : f32
    %133 = vector.broadcast %cst_67 : f32 to vector<8x256xf32>
    %134 = arith.mulf %130, %133 : vector<8x256xf32>
    %135 = math.erf %134 : vector<8x256xf32>
    %cst_68 = arith.constant 1.000000e+00 : f32
    %136 = vector.broadcast %cst_68 : f32 to vector<8x256xf32>
    %137 = arith.addf %136, %135 : vector<8x256xf32>
    %138 = arith.mulf %132, %137 : vector<8x256xf32>
    %139 = arith.truncf %138 : vector<8x256xf32> to vector<8x256xbf16>
    %c0_69 = arith.constant 0 : index
    %c0_70 = arith.constant 0 : index
    %140 = vector.load %arg12[%c0_69, %c0_70] : memref<256x128xbf16, #tpu.memory_space<vmem>>, vector<256x128xbf16>
    %cst_71 = arith.constant dense<0.000000e+00> : vector<8x128xf32>
    %141 = tpu.matmul %139, %140, %cst_71 {dimension_numbers = #tpu.dot_dimension_numbers<[1], [0], [0], [1], [0, 0, 1, 1], [], []>} : vector<8x256xbf16>, vector<256x128xbf16>, vector<8x128xf32> -> vector<8x128xf32>
    %142 = arith.addf %124, %141 : vector<8x128xf32>
    %c0_72 = arith.constant 0 : index
    %c0_73 = arith.constant 0 : index
    %143 = vector.load %arg13[%c0_72, %c0_73] : memref<1x128xf32, #tpu.memory_space<vmem>>, vector<1x128xf32>
    %144 = vector.broadcast %143 : vector<1x128xf32> to vector<8x128xf32>
    %145 = arith.addf %142, %144 : vector<8x128xf32>
    %c0_74 = arith.constant 0 : index
    %c0_75 = arith.constant 0 : index
    %c0_76 = arith.constant 0 : index
    %146 = vector.load %arg14[%c0_74, %c0_75, %c0_76] : memref<1x8x128xf32, #tpu.memory_space<vmem>>, vector<1x8x128xf32>
    %147 = vector.shape_cast %146 : vector<1x8x128xf32> to vector<8x128xf32>
    %148 = vector.shape_cast %145 : vector<8x128xf32> to vector<1x8x128xf32>
    tpu.vector_store %arg14[%c0_74, %c0_75, %c0_76], %148 {strides = array<i32>} : memref<1x8x128xf32, #tpu.memory_space<vmem>>, vector<1x8x128xf32>,
    return
  }
  func.func @transform_0(%arg0: i32, %arg1: i32) -> (i32, i32, i32) {
    %c0_i32 = arith.constant 0 : i32
    %c0_i32_0 = arith.constant 0 : i32
    %c0_i32_1 = arith.constant 0 : i32
    return %arg0, %c0_i32, %c0_i32_0 : i32, i32, i32
  }
  func.func @transform_1(%arg0: i32, %arg1: i32) -> (i32, i32, i32) {
    %c0_i32 = arith.constant 0 : i32
    %c0_i32_0 = arith.constant 0 : i32
    %c0_i32_1 = arith.constant 0 : i32
    return %arg0, %c0_i32, %c0_i32_0 : i32, i32, i32
  }
  func.func @transform_2(%arg0: i32, %arg1: i32) -> (i32, i32) {
    %c0_i32 = arith.constant 0 : i32
    %c0_i32_0 = arith.constant 0 : i32
    %c0_i32_1 = arith.constant 0 : i32
    return %c0_i32, %c0_i32_0 : i32, i32
  }
  func.func @transform_3(%arg0: i32, %arg1: i32) -> (i32, i32) {
    %c0_i32 = arith.constant 0 : i32
    %c0_i32_0 = arith.constant 0 : i32
    %c0_i32_1 = arith.constant 0 : i32
    return %c0_i32, %c0_i32_0 : i32, i32
  }
  func.func @transform_4(%arg0: i32, %arg1: i32) -> (i32, i32) {
    %c0_i32 = arith.constant 0 : i32
    %c0_i32_0 = arith.constant 0 : i32
    %c0_i32_1 = arith.constant 0 : i32
    return %c0_i32, %c0_i32_0 : i32, i32
  }
  func.func @transform_5(%arg0: i32, %arg1: i32) -> (i32, i32) {
    %c0_i32 = arith.constant 0 : i32
    %c0_i32_0 = arith.constant 0 : i32
    %c0_i32_1 = arith.constant 0 : i32
    return %c0_i32, %c0_i32_0 : i32, i32
  }
  func.func @transform_6(%arg0: i32, %arg1: i32) -> (i32, i32) {
    %c0_i32 = arith.constant 0 : i32
    %c0_i32_0 = arith.constant 0 : i32
    %c0_i32_1 = arith.constant 0 : i32
    return %c0_i32, %c0_i32_0 : i32, i32
  }
  func.func @transform_7(%arg0: i32, %arg1: i32) -> (i32, i32) {
    %c0_i32 = arith.constant 0 : i32
    %c0_i32_0 = arith.constant 0 : i32
    %c0_i32_1 = arith.constant 0 : i32
    return %c0_i32, %c0_i32_0 : i32, i32
  }
  func.func @transform_8(%arg0: i32, %arg1: i32) -> (i32, i32) {
    %c0_i32 = arith.constant 0 : i32
    %c0_i32_0 = arith.constant 0 : i32
    %c0_i32_1 = arith.constant 0 : i32
    return %c0_i32, %c0_i32_0 : i32, i32
  }
  func.func @transform_9(%arg0: i32, %arg1: i32) -> (i32, i32) {
    %c0_i32 = arith.constant 0 : i32
    %c0_i32_0 = arith.constant 0 : i32
    %c0_i32_1 = arith.constant 0 : i32
    return %c0_i32, %c0_i32_0 : i32, i32
  }
  func.func @transform_10(%arg0: i32, %arg1: i32) -> (i32, i32) {
    %c0_i32 = arith.constant 0 : i32
    %c0_i32_0 = arith.constant 0 : i32
    %c0_i32_1 = arith.constant 0 : i32
    return %c0_i32, %c0_i32_0 : i32, i32
  }
  func.func @transform_11(%arg0: i32, %arg1: i32) -> (i32, i32) {
    %c0_i32 = arith.constant 0 : i32
    %c0_i32_0 = arith.constant 0 : i32
    %c0_i32_1 = arith.constant 0 : i32
    return %c0_i32, %c0_i32_0 : i32, i32
  }
  func.func @transform_12(%arg0: i32, %arg1: i32) -> (i32, i32, i32) {
    %c0_i32 = arith.constant 0 : i32
    %c0_i32_0 = arith.constant 0 : i32
    return %arg0, %arg1, %c0_i32 : i32, i32, i32
  }
}

module attributes {stable_mosaic.version = 11 : i64} {
  func.func @_encoder_block_kernel(%arg0: i32, %arg1: i32, %arg2: memref<1x16x128xf32, #tpu.memory_space<vmem>>, %arg3: memref<1x1x16xf32, #tpu.memory_space<vmem>>, %arg4: memref<1x128xf32, #tpu.memory_space<vmem>>, %arg5: memref<1x128xf32, #tpu.memory_space<vmem>>, %arg6: memref<128x128xbf16, #tpu.memory_space<vmem>>, %arg7: memref<128x128xbf16, #tpu.memory_space<vmem>>, %arg8: memref<128x128xbf16, #tpu.memory_space<vmem>>, %arg9: memref<128x128xbf16, #tpu.memory_space<vmem>>, %arg10: memref<128x256xbf16, #tpu.memory_space<vmem>>, %arg11: memref<1x256xf32, #tpu.memory_space<vmem>>, %arg12: memref<256x128xbf16, #tpu.memory_space<vmem>>, %arg13: memref<1x128xf32, #tpu.memory_space<vmem>>, %arg14: memref<1x8x128xf32, #tpu.memory_space<vmem>>, %arg15: memref<16x128xbf16, #tpu.memory_space<vmem>>, %arg16: memref<16x128xbf16, #tpu.memory_space<vmem>>, %arg17: memref<8x128xbf16, #tpu.memory_space<vmem>>) attributes {dimension_semantics = [#tpu.dimension_semantics<parallel>, #tpu.dimension_semantics<arbitrary>], iteration_bounds = array<i64: 2, 2>, scalar_prefetch = 0 : i64, scratch_operands = 3 : i64, tpu.core_type = #tpu.core_type<tc>, window_params = [{transform_indices = @transform_0, window_bounds = array<i64: 1, 16, 128>}, {transform_indices = @transform_1, window_bounds = array<i64: 1, 1, 16>}, {pipeline_mode = #tpu.pipeline_mode<synchronous>, transform_indices = @transform_2, window_bounds = array<i64: 1, 128>}, {pipeline_mode = #tpu.pipeline_mode<synchronous>, transform_indices = @transform_3, window_bounds = array<i64: 1, 128>}, {pipeline_mode = #tpu.pipeline_mode<synchronous>, transform_indices = @transform_4, window_bounds = array<i64: 128, 128>}, {pipeline_mode = #tpu.pipeline_mode<synchronous>, transform_indices = @transform_5, window_bounds = array<i64: 128, 128>}, {pipeline_mode = #tpu.pipeline_mode<synchronous>, transform_indices = @transform_6, window_bounds = array<i64: 128, 128>}, {pipeline_mode = #tpu.pipeline_mode<synchronous>, transform_indices = @transform_7, window_bounds = array<i64: 128, 128>}, {pipeline_mode = #tpu.pipeline_mode<synchronous>, transform_indices = @transform_8, window_bounds = array<i64: 128, 256>}, {pipeline_mode = #tpu.pipeline_mode<synchronous>, transform_indices = @transform_9, window_bounds = array<i64: 1, 256>}, {pipeline_mode = #tpu.pipeline_mode<synchronous>, transform_indices = @transform_10, window_bounds = array<i64: 256, 128>}, {pipeline_mode = #tpu.pipeline_mode<synchronous>, transform_indices = @transform_11, window_bounds = array<i64: 1, 128>}, {transform_indices = @transform_12, window_bounds = array<i64: 1, 8, 128>}]} {
    %c0_i32 = arith.constant 0 : i32
    %0 = arith.cmpi eq, %arg1, %c0_i32 : i32
    %1 = arith.extui %0 : i1 to i32
    %c0_i32_0 = arith.constant 0 : i32
    %2 = arith.cmpi ne, %1, %c0_i32_0 : i32
    scf.if %2 {
      %c0_77 = arith.constant 0 : index
      %c0_78 = arith.constant 0 : index
      %c0_79 = arith.constant 0 : index
      %149 = vector.load %arg2[%c0_77, %c0_78, %c0_79] : memref<1x16x128xf32, #tpu.memory_space<vmem>>, vector<1x16x128xf32>
      %150 = vector.shape_cast %149 : vector<1x16x128xf32> to vector<16x128xf32>
      %cst_80 = arith.constant dense<0.000000e+00> : vector<16xf32>
      %151 = vector.multi_reduction <add>, %150, %cst_80 [1] : vector<16x128xf32> to vector<16xf32>
      %152 = vector.shape_cast %151 : vector<16xf32> to vector<16x1xf32>
      %cst_81 = arith.constant 1.280000e+02 : f32
      %153 = vector.broadcast %cst_81 : f32 to vector<16x1xf32>
      %154 = arith.divf %152, %153 : vector<16x1xf32>
      %155 = vector.broadcast %154 : vector<16x1xf32> to vector<16x128xf32>
      %156 = arith.subf %150, %155 : vector<16x128xf32>
      %157 = arith.mulf %156, %156 : vector<16x128xf32>
      %cst_82 = arith.constant dense<0.000000e+00> : vector<16xf32>
      %158 = vector.multi_reduction <add>, %157, %cst_82 [1] : vector<16x128xf32> to vector<16xf32>
      %159 = vector.shape_cast %158 : vector<16xf32> to vector<16x1xf32>
      %cst_83 = arith.constant 1.280000e+02 : f32
      %160 = vector.broadcast %cst_83 : f32 to vector<16x1xf32>
      %161 = arith.divf %159, %160 : vector<16x1xf32>
      %162 = vector.broadcast %154 : vector<16x1xf32> to vector<16x128xf32>
      %163 = arith.subf %150, %162 : vector<16x128xf32>
      %cst_84 = arith.constant 9.99999974E-6 : f32
      %164 = vector.broadcast %cst_84 : f32 to vector<16x1xf32>
      %165 = arith.addf %161, %164 : vector<16x1xf32>
      %166 = math.rsqrt %165 : vector<16x1xf32>
      %167 = vector.broadcast %166 : vector<16x1xf32> to vector<16x128xf32>
      %168 = arith.mulf %163, %167 : vector<16x128xf32>
      %c0_85 = arith.constant 0 : index
      %c0_86 = arith.constant 0 : index
      %169 = vector.load %arg4[%c0_85, %c0_86] : memref<1x128xf32, #tpu.memory_space<vmem>>, vector<1x128xf32>
      %170 = vector.broadcast %169 : vector<1x128xf32> to vector<16x128xf32>
      %171 = arith.mulf %168, %170 : vector<16x128xf32>
      %c0_87 = arith.constant 0 : index
      %c0_88 = arith.constant 0 : index
      %172 = vector.load %arg5[%c0_87, %c0_88] : memref<1x128xf32, #tpu.memory_space<vmem>>, vector<1x128xf32>
      %173 = vector.broadcast %172 : vector<1x128xf32> to vector<16x128xf32>
      %174 = arith.addf %171, %173 : vector<16x128xf32>
      %175 = arith.truncf %174 : vector<16x128xf32> to vector<16x128xbf16>
      %c0_89 = arith.constant 0 : index
      %c0_90 = arith.constant 0 : index
      %176 = vector.load %arg7[%c0_89, %c0_90] : memref<128x128xbf16, #tpu.memory_space<vmem>>, vector<128x128xbf16>
      %cst_91 = arith.constant dense<0.000000e+00> : vector<16x128xf32>
      %177 = tpu.matmul %175, %176, %cst_91 {dimension_numbers = #tpu.dot_dimension_numbers<[1], [0], [0], [1], [0, 0, 1, 1], [], []>} : vector<16x128xbf16>, vector<128x128xbf16>, vector<16x128xf32> -> vector<16x128xf32>
      %178 = arith.truncf %177 : vector<16x128xf32> to vector<16x128xbf16>
      %c0_92 = arith.constant 0 : index
      %c0_93 = arith.constant 0 : index
      %179 = vector.load %arg15[%c0_92, %c0_93] : memref<16x128xbf16, #tpu.memory_space<vmem>>, vector<16x128xbf16>
      tpu.vector_store %arg15[%c0_92, %c0_93], %178 {strides = array<i32>} : memref<16x128xbf16, #tpu.memory_space<vmem>>, vector<16x128xbf16>,
      %c0_94 = arith.constant 0 : index
      %c0_95 = arith.constant 0 : index
      %180 = vector.load %arg8[%c0_94, %c0_95] : memref<128x128xbf16, #tpu.memory_space<vmem>>, vector<128x128xbf16>
      %cst_96 = arith.constant dense<0.000000e+00> : vector<16x128xf32>
      %181 = tpu.matmul %175, %180, %cst_96 {dimension_numbers = #tpu.dot_dimension_numbers<[1], [0], [0], [1], [0, 0, 1, 1], [], []>} : vector<16x128xbf16>, vector<128x128xbf16>, vector<16x128xf32> -> vector<16x128xf32>
      %182 = arith.truncf %181 : vector<16x128xf32> to vector<16x128xbf16>
      %c0_97 = arith.constant 0 : index
      %c0_98 = arith.constant 0 : index
      %183 = vector.load %arg16[%c0_97, %c0_98] : memref<16x128xbf16, #tpu.memory_space<vmem>>, vector<16x128xbf16>
      tpu.vector_store %arg16[%c0_97, %c0_98], %182 {strides = array<i32>} : memref<16x128xbf16, #tpu.memory_space<vmem>>, vector<16x128xbf16>,
    } else {
    }
    %c8_i32 = arith.constant 8 : i32
    %3 = arith.muli %arg1, %c8_i32 : i32
    %4 = tpu.assume_multiple %3, 8 : i32
    %c0 = arith.constant 0 : index
    %5 = arith.index_cast %4 : i32 to index
    %c0_1 = arith.constant 0 : index
    %6 = vector.load %arg2[%c0, %5, %c0_1] : memref<1x16x128xf32, #tpu.memory_space<vmem>>, vector<1x8x128xf32>
    %7 = vector.shape_cast %6 : vector<1x8x128xf32> to vector<8x128xf32>
    %cst = arith.constant dense<0.000000e+00> : vector<8xf32>
    %8 = vector.multi_reduction <add>, %7, %cst [1] : vector<8x128xf32> to vector<8xf32>
    %9 = vector.shape_cast %8 : vector<8xf32> to vector<8x1xf32>
    %cst_2 = arith.constant 1.280000e+02 : f32
    %10 = vector.broadcast %cst_2 : f32 to vector<8x1xf32>
    %11 = arith.divf %9, %10 : vector<8x1xf32>
    %12 = vector.broadcast %11 : vector<8x1xf32> to vector<8x128xf32>
    %13 = arith.subf %7, %12 : vector<8x128xf32>
    %14 = arith.mulf %13, %13 : vector<8x128xf32>
    %cst_3 = arith.constant dense<0.000000e+00> : vector<8xf32>
    %15 = vector.multi_reduction <add>, %14, %cst_3 [1] : vector<8x128xf32> to vector<8xf32>
    %16 = vector.shape_cast %15 : vector<8xf32> to vector<8x1xf32>
    %cst_4 = arith.constant 1.280000e+02 : f32
    %17 = vector.broadcast %cst_4 : f32 to vector<8x1xf32>
    %18 = arith.divf %16, %17 : vector<8x1xf32>
    %19 = vector.broadcast %11 : vector<8x1xf32> to vector<8x128xf32>
    %20 = arith.subf %7, %19 : vector<8x128xf32>
    %cst_5 = arith.constant 9.99999974E-6 : f32
    %21 = vector.broadcast %cst_5 : f32 to vector<8x1xf32>
    %22 = arith.addf %18, %21 : vector<8x1xf32>
    %23 = math.rsqrt %22 : vector<8x1xf32>
    %24 = vector.broadcast %23 : vector<8x1xf32> to vector<8x128xf32>
    %25 = arith.mulf %20, %24 : vector<8x128xf32>
    %c0_6 = arith.constant 0 : index
    %c0_7 = arith.constant 0 : index
    %26 = vector.load %arg4[%c0_6, %c0_7] : memref<1x128xf32, #tpu.memory_space<vmem>>, vector<1x128xf32>
    %27 = vector.broadcast %26 : vector<1x128xf32> to vector<8x128xf32>
    %28 = arith.mulf %25, %27 : vector<8x128xf32>
    %c0_8 = arith.constant 0 : index
    %c0_9 = arith.constant 0 : index
    %29 = vector.load %arg5[%c0_8, %c0_9] : memref<1x128xf32, #tpu.memory_space<vmem>>, vector<1x128xf32>
    %30 = vector.broadcast %29 : vector<1x128xf32> to vector<8x128xf32>
    %31 = arith.addf %28, %30 : vector<8x128xf32>
    %32 = arith.truncf %31 : vector<8x128xf32> to vector<8x128xbf16>
    %c0_10 = arith.constant 0 : index
    %c0_11 = arith.constant 0 : index
    %33 = vector.load %arg6[%c0_10, %c0_11] : memref<128x128xbf16, #tpu.memory_space<vmem>>, vector<128x128xbf16>
    %cst_12 = arith.constant dense<0.000000e+00> : vector<8x128xf32>
    %34 = tpu.matmul %32, %33, %cst_12 {dimension_numbers = #tpu.dot_dimension_numbers<[1], [0], [0], [1], [0, 0, 1, 1], [], []>} : vector<8x128xbf16>, vector<128x128xbf16>, vector<8x128xf32> -> vector<8x128xf32>
    %35 = arith.truncf %34 : vector<8x128xf32> to vector<8x128xbf16>
    %c0_13 = arith.constant 0 : index
    %c0_14 = arith.constant 0 : index
    %c0_15 = arith.constant 0 : index
    %36 = vector.load %arg3[%c0_13, %c0_14, %c0_15] : memref<1x1x16xf32, #tpu.memory_space<vmem>>, vector<1x1x16xf32>
    %37 = vector.shape_cast %36 : vector<1x1x16xf32> to vector<1x16xf32>
    %cst_16 = arith.constant 0.000000e+00 : f32
    %38 = vector.broadcast %cst_16 : f32 to vector<1x16xf32>
    %39 = arith.cmpf oeq, %37, %38 : vector<1x16xf32>
    %cst_17 = arith.constant -1.000000e+09 : f32
    %cst_18 = arith.constant 0.000000e+00 : f32
    %40 = vector.broadcast %cst_17 : f32 to vector<1x16xf32>
    %41 = vector.broadcast %cst_18 : f32 to vector<1x16xf32>
    %42 = arith.select %39, %40, %41 : vector<1x16xi1>, vector<1x16xf32>
    %43 = vector.shape_cast %42 : vector<1x16xf32> to vector<1x16xf32>
    %44 = vector.broadcast %43 : vector<1x16xf32> to vector<8x16xf32>
    %45 = vector.extract_strided_slice %35 {offsets = [0, 0], sizes = [8, 32], strides = [1, 1]} : vector<8x128xbf16> to vector<8x32xbf16>
    %c0_19 = arith.constant 0 : index
    %c0_20 = arith.constant 0 : index
    %46 = vector.load %arg15[%c0_19, %c0_20] : memref<16x128xbf16, #tpu.memory_space<vmem>>, vector<16x32xbf16>
    %cst_21 = arith.constant dense<0.000000e+00> : vector<8x16xf32>
    %47 = tpu.matmul %45, %46, %cst_21 {dimension_numbers = #tpu.dot_dimension_numbers<[1], [1], [0], [0], [0, 0, 1, 0], [], []>} : vector<8x32xbf16>, vector<16x32xbf16>, vector<8x16xf32> -> vector<8x16xf32>
    %48 = arith.addf %47, %44 : vector<8x16xf32>
    %cst_22 = arith.constant dense<0xFF800000> : vector<8xf32>
    %49 = vector.multi_reduction <maximumf>, %48, %cst_22 [1] : vector<8x16xf32> to vector<8xf32>
    %50 = vector.shape_cast %49 : vector<8xf32> to vector<8x1xf32>
    %51 = vector.broadcast %50 : vector<8x1xf32> to vector<8x16xf32>
    %52 = arith.subf %48, %51 : vector<8x16xf32>
    %53 = math.exp %52 : vector<8x16xf32>
    %cst_23 = arith.constant dense<0.000000e+00> : vector<8xf32>
    %54 = vector.multi_reduction <add>, %53, %cst_23 [1] : vector<8x16xf32> to vector<8xf32>
    %55 = vector.shape_cast %54 : vector<8xf32> to vector<8x1xf32>
    %56 = tpu.reciprocal %55 {approx = true} : vector<8x1xf32> -> vector<8x1xf32>
    %57 = vector.broadcast %56 : vector<8x1xf32> to vector<8x16xf32>
    %58 = arith.mulf %53, %57 : vector<8x16xf32>
    %59 = arith.truncf %58 : vector<8x16xf32> to vector<8x16xbf16>
    %c0_24 = arith.constant 0 : index
    %c0_25 = arith.constant 0 : index
    %60 = vector.load %arg16[%c0_24, %c0_25] : memref<16x128xbf16, #tpu.memory_space<vmem>>, vector<16x32xbf16>
    %cst_26 = arith.constant dense<0.000000e+00> : vector<8x32xf32>
    %61 = tpu.matmul %59, %60, %cst_26 {dimension_numbers = #tpu.dot_dimension_numbers<[1], [0], [0], [1], [0, 0, 1, 1], [], []>} : vector<8x16xbf16>, vector<16x32xbf16>, vector<8x32xf32> -> vector<8x32xf32>
    %62 = arith.truncf %61 : vector<8x32xf32> to vector<8x32xbf16>
    %c0_27 = arith.constant 0 : index
    %c0_28 = arith.constant 0 : index
    %63 = vector.load %arg17[%c0_27, %c0_28] : memref<8x128xbf16, #tpu.memory_space<vmem>>, vector<8x32xbf16>
    tpu.vector_store %arg17[%c0_27, %c0_28], %62 {strides = array<i32>} : memref<8x128xbf16, #tpu.memory_space<vmem>>, vector<8x32xbf16>,
    %64 = vector.extract_strided_slice %35 {offsets = [0, 32], sizes = [8, 32], strides = [1, 1]} : vector<8x128xbf16> to vector<8x32xbf16>
    %c0_29 = arith.constant 0 : index
    %c32 = arith.constant 32 : index
    %65 = vector.load %arg15[%c0_29, %c32] : memref<16x128xbf16, #tpu.memory_space<vmem>>, vector<16x32xbf16>
    %cst_30 = arith.constant dense<0.000000e+00> : vector<8x16xf32>
    %66 = tpu.matmul %64, %65, %cst_30 {dimension_numbers = #tpu.dot_dimension_numbers<[1], [1], [0], [0], [0, 0, 1, 0], [], []>} : vector<8x32xbf16>, vector<16x32xbf16>, vector<8x16xf32> -> vector<8x16xf32>
    %67 = arith.addf %66, %44 : vector<8x16xf32>
    %cst_31 = arith.constant dense<0xFF800000> : vector<8xf32>
    %68 = vector.multi_reduction <maximumf>, %67, %cst_31 [1] : vector<8x16xf32> to vector<8xf32>
    %69 = vector.shape_cast %68 : vector<8xf32> to vector<8x1xf32>
    %70 = vector.broadcast %69 : vector<8x1xf32> to vector<8x16xf32>
    %71 = arith.subf %67, %70 : vector<8x16xf32>
    %72 = math.exp %71 : vector<8x16xf32>
    %cst_32 = arith.constant dense<0.000000e+00> : vector<8xf32>
    %73 = vector.multi_reduction <add>, %72, %cst_32 [1] : vector<8x16xf32> to vector<8xf32>
    %74 = vector.shape_cast %73 : vector<8xf32> to vector<8x1xf32>
    %75 = tpu.reciprocal %74 {approx = true} : vector<8x1xf32> -> vector<8x1xf32>
    %76 = vector.broadcast %75 : vector<8x1xf32> to vector<8x16xf32>
    %77 = arith.mulf %72, %76 : vector<8x16xf32>
    %78 = arith.truncf %77 : vector<8x16xf32> to vector<8x16xbf16>
    %c0_33 = arith.constant 0 : index
    %c32_34 = arith.constant 32 : index
    %79 = vector.load %arg16[%c0_33, %c32_34] : memref<16x128xbf16, #tpu.memory_space<vmem>>, vector<16x32xbf16>
    %cst_35 = arith.constant dense<0.000000e+00> : vector<8x32xf32>
    %80 = tpu.matmul %78, %79, %cst_35 {dimension_numbers = #tpu.dot_dimension_numbers<[1], [0], [0], [1], [0, 0, 1, 1], [], []>} : vector<8x16xbf16>, vector<16x32xbf16>, vector<8x32xf32> -> vector<8x32xf32>
    %81 = arith.truncf %80 : vector<8x32xf32> to vector<8x32xbf16>
    %c0_36 = arith.constant 0 : index
    %c32_37 = arith.constant 32 : index
    %82 = vector.load %arg17[%c0_36, %c32_37] : memref<8x128xbf16, #tpu.memory_space<vmem>>, vector<8x32xbf16>
    tpu.vector_store %arg17[%c0_36, %c32_37], %81 {strides = array<i32>} : memref<8x128xbf16, #tpu.memory_space<vmem>>, vector<8x32xbf16>,
    %83 = vector.extract_strided_slice %35 {offsets = [0, 64], sizes = [8, 32], strides = [1, 1]} : vector<8x128xbf16> to vector<8x32xbf16>
    %c0_38 = arith.constant 0 : index
    %c64 = arith.constant 64 : index
    %84 = vector.load %arg15[%c0_38, %c64] : memref<16x128xbf16, #tpu.memory_space<vmem>>, vector<16x32xbf16>
    %cst_39 = arith.constant dense<0.000000e+00> : vector<8x16xf32>
    %85 = tpu.matmul %83, %84, %cst_39 {dimension_numbers = #tpu.dot_dimension_numbers<[1], [1], [0], [0], [0, 0, 1, 0], [], []>} : vector<8x32xbf16>, vector<16x32xbf16>, vector<8x16xf32> -> vector<8x16xf32>
    %86 = arith.addf %85, %44 : vector<8x16xf32>
    %cst_40 = arith.constant dense<0xFF800000> : vector<8xf32>
    %87 = vector.multi_reduction <maximumf>, %86, %cst_40 [1] : vector<8x16xf32> to vector<8xf32>
    %88 = vector.shape_cast %87 : vector<8xf32> to vector<8x1xf32>
    %89 = vector.broadcast %88 : vector<8x1xf32> to vector<8x16xf32>
    %90 = arith.subf %86, %89 : vector<8x16xf32>
    %91 = math.exp %90 : vector<8x16xf32>
    %cst_41 = arith.constant dense<0.000000e+00> : vector<8xf32>
    %92 = vector.multi_reduction <add>, %91, %cst_41 [1] : vector<8x16xf32> to vector<8xf32>
    %93 = vector.shape_cast %92 : vector<8xf32> to vector<8x1xf32>
    %94 = tpu.reciprocal %93 {approx = true} : vector<8x1xf32> -> vector<8x1xf32>
    %95 = vector.broadcast %94 : vector<8x1xf32> to vector<8x16xf32>
    %96 = arith.mulf %91, %95 : vector<8x16xf32>
    %97 = arith.truncf %96 : vector<8x16xf32> to vector<8x16xbf16>
    %c0_42 = arith.constant 0 : index
    %c64_43 = arith.constant 64 : index
    %98 = vector.load %arg16[%c0_42, %c64_43] : memref<16x128xbf16, #tpu.memory_space<vmem>>, vector<16x32xbf16>
    %cst_44 = arith.constant dense<0.000000e+00> : vector<8x32xf32>
    %99 = tpu.matmul %97, %98, %cst_44 {dimension_numbers = #tpu.dot_dimension_numbers<[1], [0], [0], [1], [0, 0, 1, 1], [], []>} : vector<8x16xbf16>, vector<16x32xbf16>, vector<8x32xf32> -> vector<8x32xf32>
    %100 = arith.truncf %99 : vector<8x32xf32> to vector<8x32xbf16>
    %c0_45 = arith.constant 0 : index
    %c64_46 = arith.constant 64 : index
    %101 = vector.load %arg17[%c0_45, %c64_46] : memref<8x128xbf16, #tpu.memory_space<vmem>>, vector<8x32xbf16>
    tpu.vector_store %arg17[%c0_45, %c64_46], %100 {strides = array<i32>} : memref<8x128xbf16, #tpu.memory_space<vmem>>, vector<8x32xbf16>,
    %102 = vector.extract_strided_slice %35 {offsets = [0, 96], sizes = [8, 32], strides = [1, 1]} : vector<8x128xbf16> to vector<8x32xbf16>
    %c0_47 = arith.constant 0 : index
    %c96 = arith.constant 96 : index
    %103 = vector.load %arg15[%c0_47, %c96] : memref<16x128xbf16, #tpu.memory_space<vmem>>, vector<16x32xbf16>
    %cst_48 = arith.constant dense<0.000000e+00> : vector<8x16xf32>
    %104 = tpu.matmul %102, %103, %cst_48 {dimension_numbers = #tpu.dot_dimension_numbers<[1], [1], [0], [0], [0, 0, 1, 0], [], []>} : vector<8x32xbf16>, vector<16x32xbf16>, vector<8x16xf32> -> vector<8x16xf32>
    %105 = arith.addf %104, %44 : vector<8x16xf32>
    %cst_49 = arith.constant dense<0xFF800000> : vector<8xf32>
    %106 = vector.multi_reduction <maximumf>, %105, %cst_49 [1] : vector<8x16xf32> to vector<8xf32>
    %107 = vector.shape_cast %106 : vector<8xf32> to vector<8x1xf32>
    %108 = vector.broadcast %107 : vector<8x1xf32> to vector<8x16xf32>
    %109 = arith.subf %105, %108 : vector<8x16xf32>
    %110 = math.exp %109 : vector<8x16xf32>
    %cst_50 = arith.constant dense<0.000000e+00> : vector<8xf32>
    %111 = vector.multi_reduction <add>, %110, %cst_50 [1] : vector<8x16xf32> to vector<8xf32>
    %112 = vector.shape_cast %111 : vector<8xf32> to vector<8x1xf32>
    %113 = tpu.reciprocal %112 {approx = true} : vector<8x1xf32> -> vector<8x1xf32>
    %114 = vector.broadcast %113 : vector<8x1xf32> to vector<8x16xf32>
    %115 = arith.mulf %110, %114 : vector<8x16xf32>
    %116 = arith.truncf %115 : vector<8x16xf32> to vector<8x16xbf16>
    %c0_51 = arith.constant 0 : index
    %c96_52 = arith.constant 96 : index
    %117 = vector.load %arg16[%c0_51, %c96_52] : memref<16x128xbf16, #tpu.memory_space<vmem>>, vector<16x32xbf16>
    %cst_53 = arith.constant dense<0.000000e+00> : vector<8x32xf32>
    %118 = tpu.matmul %116, %117, %cst_53 {dimension_numbers = #tpu.dot_dimension_numbers<[1], [0], [0], [1], [0, 0, 1, 1], [], []>} : vector<8x16xbf16>, vector<16x32xbf16>, vector<8x32xf32> -> vector<8x32xf32>
    %119 = arith.truncf %118 : vector<8x32xf32> to vector<8x32xbf16>
    %c0_54 = arith.constant 0 : index
    %c96_55 = arith.constant 96 : index
    %120 = vector.load %arg17[%c0_54, %c96_55] : memref<8x128xbf16, #tpu.memory_space<vmem>>, vector<8x32xbf16>
    tpu.vector_store %arg17[%c0_54, %c96_55], %119 {strides = array<i32>} : memref<8x128xbf16, #tpu.memory_space<vmem>>, vector<8x32xbf16>,
    %c0_56 = arith.constant 0 : index
    %c0_57 = arith.constant 0 : index
    %121 = vector.load %arg17[%c0_56, %c0_57] : memref<8x128xbf16, #tpu.memory_space<vmem>>, vector<8x128xbf16>
    %c0_58 = arith.constant 0 : index
    %c0_59 = arith.constant 0 : index
    %122 = vector.load %arg9[%c0_58, %c0_59] : memref<128x128xbf16, #tpu.memory_space<vmem>>, vector<128x128xbf16>
    %cst_60 = arith.constant dense<0.000000e+00> : vector<8x128xf32>
    %123 = tpu.matmul %121, %122, %cst_60 {dimension_numbers = #tpu.dot_dimension_numbers<[1], [0], [0], [1], [0, 0, 1, 1], [], []>} : vector<8x128xbf16>, vector<128x128xbf16>, vector<8x128xf32> -> vector<8x128xf32>
    %124 = arith.addf %7, %123 : vector<8x128xf32>
    %125 = arith.truncf %124 : vector<8x128xf32> to vector<8x128xbf16>
    %c0_61 = arith.constant 0 : index
    %c0_62 = arith.constant 0 : index
    %126 = vector.load %arg10[%c0_61, %c0_62] : memref<128x256xbf16, #tpu.memory_space<vmem>>, vector<128x256xbf16>
    %cst_63 = arith.constant dense<0.000000e+00> : vector<8x256xf32>
    %127 = tpu.matmul %125, %126, %cst_63 {dimension_numbers = #tpu.dot_dimension_numbers<[1], [0], [0], [1], [0, 0, 1, 1], [], []>} : vector<8x128xbf16>, vector<128x256xbf16>, vector<8x256xf32> -> vector<8x256xf32>
    %c0_64 = arith.constant 0 : index
    %c0_65 = arith.constant 0 : index
    %128 = vector.load %arg11[%c0_64, %c0_65] : memref<1x256xf32, #tpu.memory_space<vmem>>, vector<1x256xf32>
    %129 = vector.broadcast %128 : vector<1x256xf32> to vector<8x256xf32>
    %130 = arith.addf %127, %129 : vector<8x256xf32>
    %cst_66 = arith.constant 5.000000e-01 : f32
    %131 = vector.broadcast %cst_66 : f32 to vector<8x256xf32>
    %132 = arith.mulf %131, %130 : vector<8x256xf32>
    %cst_67 = arith.constant 0.707106769 : f32
    %133 = vector.broadcast %cst_67 : f32 to vector<8x256xf32>
    %134 = arith.mulf %130, %133 : vector<8x256xf32>
    %135 = math.erf %134 : vector<8x256xf32>
    %cst_68 = arith.constant 1.000000e+00 : f32
    %136 = vector.broadcast %cst_68 : f32 to vector<8x256xf32>
    %137 = arith.addf %136, %135 : vector<8x256xf32>
    %138 = arith.mulf %132, %137 : vector<8x256xf32>
    %139 = arith.truncf %138 : vector<8x256xf32> to vector<8x256xbf16>
    %c0_69 = arith.constant 0 : index
    %c0_70 = arith.constant 0 : index
    %140 = vector.load %arg12[%c0_69, %c0_70] : memref<256x128xbf16, #tpu.memory_space<vmem>>, vector<256x128xbf16>
    %cst_71 = arith.constant dense<0.000000e+00> : vector<8x128xf32>
    %141 = tpu.matmul %139, %140, %cst_71 {dimension_numbers = #tpu.dot_dimension_numbers<[1], [0], [0], [1], [0, 0, 1, 1], [], []>} : vector<8x256xbf16>, vector<256x128xbf16>, vector<8x128xf32> -> vector<8x128xf32>
    %142 = arith.addf %124, %141 : vector<8x128xf32>
    %c0_72 = arith.constant 0 : index
    %c0_73 = arith.constant 0 : index
    %143 = vector.load %arg13[%c0_72, %c0_73] : memref<1x128xf32, #tpu.memory_space<vmem>>, vector<1x128xf32>
    %144 = vector.broadcast %143 : vector<1x128xf32> to vector<8x128xf32>
    %145 = arith.addf %142, %144 : vector<8x128xf32>
    %c0_74 = arith.constant 0 : index
    %c0_75 = arith.constant 0 : index
    %c0_76 = arith.constant 0 : index
    %146 = vector.load %arg14[%c0_74, %c0_75, %c0_76] : memref<1x8x128xf32, #tpu.memory_space<vmem>>, vector<1x8x128xf32>
    %147 = vector.shape_cast %146 : vector<1x8x128xf32> to vector<8x128xf32>
    %148 = vector.shape_cast %145 : vector<8x128xf32> to vector<1x8x128xf32>
    tpu.vector_store %arg14[%c0_74, %c0_75, %c0_76], %148 {strides = array<i32>} : memref<1x8x128xf32, #tpu.memory_space<vmem>>, vector<1x8x128xf32>,
    return
  }
  func.func @transform_0(%arg0: i32, %arg1: i32) -> (i32, i32, i32) {
    %c0_i32 = arith.constant 0 : i32
    %c0_i32_0 = arith.constant 0 : i32
    %c0_i32_1 = arith.constant 0 : i32
    return %arg0, %c0_i32, %c0_i32_0 : i32, i32, i32
  }
  func.func @transform_1(%arg0: i32, %arg1: i32) -> (i32, i32, i32) {
    %c0_i32 = arith.constant 0 : i32
    %c0_i32_0 = arith.constant 0 : i32
    %c0_i32_1 = arith.constant 0 : i32
    return %arg0, %c0_i32, %c0_i32_0 : i32, i32, i32
  }
  func.func @transform_2(%arg0: i32, %arg1: i32) -> (i32, i32) {
    %c0_i32 = arith.constant 0 : i32
    %c0_i32_0 = arith.constant 0 : i32
    %c0_i32_1 = arith.constant 0 : i32
    return %c0_i32, %c0_i32_0 : i32, i32
  }
  func.func @transform_3(%arg0: i32, %arg1: i32) -> (i32, i32) {
    %c0_i32 = arith.constant 0 : i32
    %c0_i32_0 = arith.constant 0 : i32
    %c0_i32_1 = arith.constant 0 : i32
    return %c0_i32, %c0_i32_0 : i32, i32
  }
  func.func @transform_4(%arg0: i32, %arg1: i32) -> (i32, i32) {
    %c0_i32 = arith.constant 0 : i32
    %c0_i32_0 = arith.constant 0 : i32
    %c0_i32_1 = arith.constant 0 : i32
    return %c0_i32, %c0_i32_0 : i32, i32
  }
  func.func @transform_5(%arg0: i32, %arg1: i32) -> (i32, i32) {
    %c0_i32 = arith.constant 0 : i32
    %c0_i32_0 = arith.constant 0 : i32
    %c0_i32_1 = arith.constant 0 : i32
    return %c0_i32, %c0_i32_0 : i32, i32
  }
  func.func @transform_6(%arg0: i32, %arg1: i32) -> (i32, i32) {
    %c0_i32 = arith.constant 0 : i32
    %c0_i32_0 = arith.constant 0 : i32
    %c0_i32_1 = arith.constant 0 : i32
    return %c0_i32, %c0_i32_0 : i32, i32
  }
  func.func @transform_7(%arg0: i32, %arg1: i32) -> (i32, i32) {
    %c0_i32 = arith.constant 0 : i32
    %c0_i32_0 = arith.constant 0 : i32
    %c0_i32_1 = arith.constant 0 : i32
    return %c0_i32, %c0_i32_0 : i32, i32
  }
  func.func @transform_8(%arg0: i32, %arg1: i32) -> (i32, i32) {
    %c0_i32 = arith.constant 0 : i32
    %c0_i32_0 = arith.constant 0 : i32
    %c0_i32_1 = arith.constant 0 : i32
    return %c0_i32, %c0_i32_0 : i32, i32
  }
  func.func @transform_9(%arg0: i32, %arg1: i32) -> (i32, i32) {
    %c0_i32 = arith.constant 0 : i32
    %c0_i32_0 = arith.constant 0 : i32
    %c0_i32_1 = arith.constant 0 : i32
    return %c0_i32, %c0_i32_0 : i32, i32
  }
  func.func @transform_10(%arg0: i32, %arg1: i32) -> (i32, i32) {
    %c0_i32 = arith.constant 0 : i32
    %c0_i32_0 = arith.constant 0 : i32
    %c0_i32_1 = arith.constant 0 : i32
    return %c0_i32, %c0_i32_0 : i32, i32
  }
  func.func @transform_11(%arg0: i32, %arg1: i32) -> (i32, i32) {
    %c0_i32 = arith.constant 0 : i32
    %c0_i32_0 = arith.constant 0 : i32
    %c0_i32_1 = arith.constant 0 : i32
    return %c0_i32, %c0_i32_0 : i32, i32
  }
  func.func @transform_12(%arg0: i32, %arg1: i32) -> (i32, i32, i32) {
    %c0_i32 = arith.constant 0 : i32
    %c0_i32_0 = arith.constant 0 : i32
    return %arg0, %arg1, %c0_i32 : i32, i32, i32
  }
}

</mosaic_0001>

<bundles_post_ra>
// kernel: tpu_custom_call.1
= control target key start
LH: loop header
LB: loop body
LE: loop exit
PB: predicated region body
PF: predicated region fallthrough
CT: control target
= control target key end

     0   :  { %s3641_s0 = inlined_call_operand.hbm [shape: f32[2,16,128], index: 0, kind: input, shape index: {}]   ;;  %s3642_s1 = inlined_call_operand.vmem [shape: f32[2,1,16], index: 1, kind: input, shape index: {}]   ;;  %s3643_s2 = inlined_call_operand.vmem [shape: f32[1,128], index: 2, kind: input, shape index: {}]   ;;  %s3644_s3 = inlined_call_operand.vmem [shape: f32[1,128], index: 3, kind: input, shape index: {}]   ;;  %s3645_s4 = inlined_call_operand.hbm [shape: bf16[128,128], index: 4, kind: input, shape index: {}]   ;;  %s3646_s5 = inlined_call_operand.hbm [shape: bf16[128,128], index: 5, kind: input, shape index: {}]   ;;  %s3647_s6 = inlined_call_operand.hbm [shape: bf16[128,128], index: 6, kind: input, shape index: {}]   ;;  %s3648_s7 = inlined_call_operand.hbm [shape: bf16[128,128], index: 7, kind: input, shape index: {}]   ;;  %s3649_s8 = inlined_call_operand.hbm [shape: bf16[128,256], index: 8, kind: input, shape index: {}]   ;;  %s3650_s9 = inlined_call_operand.vmem [shape: f32[1,256], index: 9, kind: input, shape index: {}]   ;;  %s3651_s10 = inlined_call_operand.hbm [shape: bf16[256,128], index: 10, kind: input, shape index: {}]   ;;  %s3652_s11 = inlined_call_operand.vmem [shape: f32[1,128], index: 11, kind: input, shape index: {}]   ;;  %s3653_s12 = inlined_call_operand.hbm [shape: f32[2,16,128], index: 12, kind: output, shape index: {}]  }
   0x1   :  { %3671 = sst [smem:[#allocation28_spill]] %s3641_s0 }
   0x2   :  { %3672 = sst [smem:[#allocation29_spill]] %s3642_s1 }
   0x3   :  { %3673 = sst [smem:[#allocation30_spill]] %s3643_s2 }
   0x4   :  { %3674 = sst [smem:[#allocation31_spill]] %s3644_s3 }
   0x5   :  { %3675 = sst [smem:[#allocation32_spill]] %s3645_s4 }
   0x6   :  { %3676 = sst [smem:[#allocation33_spill]] %s3646_s5 }
   0x7   :  { %3677 = sst [smem:[#allocation34_spill]] %s3647_s6 }
   0x8   :  { %3678 = sst [smem:[#allocation35_spill]] %s3650_s9 }
   0x9   :  { %3679 = sst [smem:[#allocation36_spill]] %s3652_s11 }
   0xa   :  { %3680 = sst [smem:[#allocation37_spill]] %s3653_s12 }
   0xb   :  { %17 = vsyncpa [#allocation6], 0 }
   0xc   :  { %19 = vsyncpa [#allocation6 + $0x1], 0 }
   0xd   :  { %20 = vsyncpa [#allocation9], 0 }
   0xe   :  { %21 = vsyncpa [#allocation12], 0 }
   0xf   :  { %22 = vsyncpa [#allocation15], 0 }
  0x10   :  { %23 = vsyncpa [#allocation7], 0 }
  0x11   :  { %25 = vsyncpa [#allocation7 + $0x1], 0  ;;  %s3048_s21 = smov 0   ;;  %s3050_s22 = smov 0  }
  0x12   :  { %s3052_s23 = smov 0   ;;  %s3054_s24 = smov 0  }
  0x13   :  { %s3056_s25 = smov 0   ;;  %s3058_s26 = smov 0  }
  0x14   :  { %s3060_s27 = smov 0   ;;  %s3062_s28 = smov 0  }
  0x15   :  { %s3064_s29 = smov 0   ;;  %s3066_s30 = smov 0  }
  0x16   :  { %s3068_s13 = smov 0  }
  0x17 LB: > { %3681 = sst [smem:[#allocation23_spill]] %s2921_s21  ;;  %s2041_s14 = sadd.s32 4294967295, %s2961_s13   ;;  %s2961_s13 = sphi %s3068_s13, %s31_s13   ;;  %s2957_s30 = sphi %s3066_s30, %s3737_s30   ;;  %s2953_s29 = sphi %s3064_s29, %s3736_s29   ;;  %s2949_s28 = sphi %s3062_s28, %s3735_s28   ;;  %s2945_s27 = sphi %s3060_s27, %s3734_s27   ;;  %s2941_s26 = sphi %s3058_s26, %s3733_s26   ;;  %s2937_s25 = sphi %s3056_s25, %s3732_s25   ;;  %s2933_s24 = sphi %s3054_s24, %s3731_s24   ;;  %s2929_s23 = sphi %s3052_s23, %s3730_s23   ;;  %s2925_s22 = sphi %s3050_s22, %s3729_s22   ;;  %s2921_s21 = sphi %s3048_s21, %s3728_s21  }
  0x18   : > { %3682 = sst [smem:[#allocation24_spill]] %s2945_s27  ;;  %p2043_p0 = scmp.ge.s32.totalorder %s2961_s13, 1 }
  0x19   : > { %3683 = sst [smem:[#allocation25_spill]] %s2949_s28  ;;  %p3105_p1 = scmp.eq.s32.totalorder %s2041_s14, 0 }
  0x1a   : > { %p3109_p2 = scmp.eq.s32.totalorder %s2041_s14, 3  ;;  %p338_p3 = scmp.lt.s32.totalorder %s2961_s13, 5 }
  0x1b   : > { %s3684_s15 = scalar_select %p3105_p1, 1, 0 }
  0x1c   : > { %s3685_s16 = scalar_select %p3109_p2, 1, 0 }
  0x1d   : > { %p3114_p4 = pnand %p2043_p0, %p338_p3  ;;  %s2963_s18 = smov [#allocation8]  }
  0x1e   : > { %3686 = sst [smem:[#allocation26_spill]] %s3685_s16  ;;  %s356_s19 = sshll.u32 %s2963_s18, 4  ;;  %s3118_s19 = int_to_ptr.vmem [resolvable:$true] %s356_s19 }
  0x1f   : > { %s3687_s17 = scalar_select %p3114_p4, 1, 0 }
  0x20   : > { %p2384_p5 = pneg %p3114_p4  ;;  %s2964_s14 = smov [#allocation11]  }
  0x21   : > { %3688 = sst [smem:[#allocation27_spill]] %s3687_s17  ;;  %s382_s12 = sshll.u32 %s2964_s14, 4  ;;  %s3128_s12 = int_to_ptr.vmem [resolvable:$true] %s382_s12 }
  0x22   : > { %p3124_p6 = pnand %p2384_p5, %p3105_p1  ;;  %s2965_s11 = smov [#allocation14]  }
  0x23   : > { %s408_s9 = sshll.u32 %s2965_s11, 4  ;;  %s3690_s4 = sld [smem:[#allocation32_spill]]  ;;  %s3130_s9 = int_to_ptr.vmem [resolvable:$true] %s408_s9 }
  0x24   : > { %p3140_p8 = pneg %p3124_p6 }
  0x29   : > { %s2629_s2 = scalar_lea.hbm %s3690_s4, 1024 }
  0x2a   : > { %p2630_p7 = scmp.ne.s32.totalorder %s3690_s4, %s2629_s2  ;;  %p2636_p11 = scmp.lt.u32.totalorder %s2629_s2, %s3690_s4 }
  0x2c   : > { %p2632_p9 = pnand %p3140_p8, %p2630_p7 }
  0x2e   : > { %p2633_p10 = pneg %p2632_p9 }
  0x30   : > { %p2638_p12 = pnand %p2636_p11, %p2633_p10 }
  0x32   : > { %2641 = shalt.err (!%p2638_p12)
}
  0x33   : > { %s2642_s1 = scalar_lea.vmem %s3118_s19, 1024  ;;  %p2650_p5 = scmp.lt.s32.totalorder %s3118_s19, %s3118_s19 }
  0x34   : > { %p2643_p13 = scmp.ne.s32.totalorder %s3118_s19, %s2642_s1  ;;  %p2651_p4 = scmp.lt.s32.totalorder %s2642_s1, %s2642_s1 }
  0x36   : > { %p2645_p0 = pnand %p2643_p13, %p3140_p8  ;;  %p2652_p7 = por %p2651_p4, %p2650_p5 }
  0x38   : > { %p2646_p3 = pneg %p2645_p0 }
  0x3a   : > { %p2653_p9 = pnand %p2652_p7, %p2646_p3 }
  0x3c   : > { %2656 = shalt.err (!%p2653_p9)
}
  0x3d   : > { %s3661_s3 = smov 64   ;;  %s3663_s2 = smov 4  }
  0x3e   : > { %2387 = dma.hbm_to_vmem [thread:$0]  (!%p3124_p6), %s3690_s4, 1024, %s3118_s19, [#allocation9], %s3661_s3, %s3661_s3, %s3663_s2  }
  0x3f   : > { %s3692_s6 = sld [smem:[#allocation34_spill]] }
  0x45   : > { %s2657_s1 = scalar_lea.hbm %s3692_s6, 1024 }
  0x46   : > { %p2658_p4 = scmp.ne.s32.totalorder %s3692_s6, %s2657_s1  ;;  %p2664_p12 = scmp.lt.u32.totalorder %s2657_s1, %s3692_s6 }
  0x48   : > { %p2660_p10 = pnand %p2658_p4, %p3140_p8 }
  0x4a   : > { %p2661_p11 = pneg %p2660_p10 }
  0x4c   : > { %p2666_p13 = pnand %p2664_p12, %p2661_p11 }
  0x4e   : > { %2669 = shalt.err (!%p2666_p13)
}
  0x4f   : > { %s2670_s19 = scalar_lea.vmem %s3128_s12, 1024  ;;  %p2678_p7 = scmp.lt.s32.totalorder %s3128_s12, %s3128_s12 }
  0x50   : > { %p2671_p0 = scmp.ne.s32.totalorder %s3128_s12, %s2670_s19  ;;  %p2679_p9 = scmp.lt.s32.totalorder %s2670_s19, %s2670_s19 }
  0x52   : > { %p2673_p3 = pnand %p2671_p0, %p3140_p8  ;;  %p2680_p4 = por %p2679_p9, %p2678_p7 }
  0x54   : > { %p2674_p5 = pneg %p2673_p3 }
  0x56   : > { %p2681_p10 = pnand %p2680_p4, %p2674_p5 }
  0x58   : > { %2684 = shalt.err (!%p2681_p10)
}
  0x59   : > { %2393 = dma.hbm_to_vmem [thread:$0]  (!%p3124_p6), %s3692_s6, 1024, %s3128_s12, [#allocation12], %s3661_s3, %s3661_s3, %s3663_s2  }
  0x5a   : > { %s2685_s27 = scalar_lea.hbm %s3649_s8, 2048 }
  0x5b   : > { %p2686_p11 = scmp.ne.s32.totalorder %s3649_s8, %s2685_s27  ;;  %p2692_p0 = scmp.lt.u32.totalorder %s2685_s27, %s3649_s8 }
  0x5d   : > { %p2688_p12 = pnand %p2686_p11, %p3140_p8 }
  0x5f   : > { %p2689_p13 = pneg %p2688_p12 }
  0x61   : > { %p2694_p3 = pnand %p2692_p0, %p2689_p13 }
  0x63   : > { %2697 = shalt.err (!%p2694_p3)
}
  0x64   : > { %s2698_s12 = scalar_lea.vmem %s3130_s9, 2048  ;;  %p2706_p4 = scmp.lt.s32.totalorder %s3130_s9, %s3130_s9 }
  0x65   : > { %p2699_p5 = scmp.ne.s32.totalorder %s3130_s9, %s2698_s12  ;;  %p2707_p10 = scmp.lt.s32.totalorder %s2698_s12, %s2698_s12 }
  0x67   : > { %p2701_p7 = pnand %p2699_p5, %p3140_p8  ;;  %p2708_p11 = por %p2707_p10, %p2706_p4 }
  0x69   : > { %p2702_p9 = pneg %p2701_p7 }
  0x6b   : > { %p2709_p12 = pnand %p2708_p11, %p2702_p9 }
  0x6d   : > { %2712 = shalt.err (!%p2709_p12)
}
  0x6e   : > { %s3667_s19 = smov 128   ;;  %s3668_s0 = smov 8  }
  0x6f   : > { %2399 = dma.hbm_to_vmem [thread:$0]  (!%p3124_p6), %s3649_s8, 2048, %s3130_s9, [#allocation15], %s3667_s19, %s3667_s19, %s3668_s0  }
  0x70   : > { %s2970_s17 = smov [#allocation10]   ;;  %s2971_s18 = smov [#allocation13]  }
  0x71   : > { %s369_s27 = sshll.u32 %s2970_s17, 4  ;;  %s395_s11 = sshll.u32 %s2971_s18, 4  ;;  %s370_s27 = int_to_ptr.vmem [resolvable:$true] %s369_s27  ;;  %s3216_s11 = int_to_ptr.vmem [resolvable:$true] %s395_s11 }
  0x72   : > { %s3693_s5 = sld [smem:[#allocation33_spill]] }
  0x78   : > { %s2713_s12 = scalar_lea.hbm %s3693_s5, 1024 }
  0x79   : > { %p2714_p13 = scmp.ne.s32.totalorder %s3693_s5, %s2713_s12  ;;  %p2720_p5 = scmp.lt.u32.totalorder %s2713_s12, %s3693_s5 }
  0x7b   : > { %p2716_p0 = pnand %p2714_p13, %p3140_p8 }
  0x7d   : > { %p2717_p3 = pneg %p2716_p0 }
  0x7f   : > { %p2722_p7 = pnand %p2720_p5, %p2717_p3 }
  0x81   : > { %2725 = shalt.err (!%p2722_p7)
}
  0x82   : > { %s2726_s16 = scalar_lea.vmem %s370_s27, 1024  ;;  %p2734_p11 = scmp.lt.s32.totalorder %s370_s27, %s370_s27 }
  0x83   : > { %p2727_p9 = scmp.ne.s32.totalorder %s370_s27, %s2726_s16  ;;  %p2735_p12 = scmp.lt.s32.totalorder %s2726_s16, %s2726_s16 }
  0x85   : > { %p2729_p4 = pnand %p2727_p9, %p3140_p8  ;;  %p2736_p2 = por %p2735_p12, %p2734_p11 }
  0x87   : > { %p2730_p10 = pneg %p2729_p4 }
  0x89   : > { %p2737_p1 = pnand %p2736_p2, %p2730_p10 }
  0x8b   : > { %2740 = shalt.err (!%p2737_p1)
}
  0x8c   : > { %s3694_s3 = smov 4   ;;  %s3695_s2 = smov 64  }
  0x8d   : > { %2390 = dma.hbm_to_vmem [thread:$0]  (!%p3124_p6), %s3693_s5, 1024, %s370_s27, [#allocation9], %s3695_s2, %s3695_s2, %s3694_s3  }
  0x8e   : > { %s2741_s12 = scalar_lea.hbm %s3648_s7, 1024 }
  0x8f   : > { %p2742_p13 = scmp.ne.s32.totalorder %s3648_s7, %s2741_s12  ;;  %p2748_p0 = scmp.lt.u32.totalorder %s2741_s12, %s3648_s7 }
  0x91   : > { %p2744_p1 = pnand %p2742_p13, %p3140_p8 }
  0x93   : > { %p2745_p2 = pneg %p2744_p1 }
  0x95   : > { %p2750_p3 = pnand %p2748_p0, %p2745_p2 }
  0x97   : > { %2753 = shalt.err (!%p2750_p3)
}
  0x98   : > { %s2754_s27 = scalar_lea.vmem %s3216_s11, 1024  ;;  %p2762_p4 = scmp.lt.s32.totalorder %s3216_s11, %s3216_s11 }
  0x99   : > { %p2755_p5 = scmp.ne.s32.totalorder %s3216_s11, %s2754_s27  ;;  %p2763_p10 = scmp.lt.s32.totalorder %s2754_s27, %s2754_s27 }
  0x9b   : > { %p2757_p7 = pnand %p2755_p5, %p3140_p8  ;;  %p2764_p11 = por %p2763_p10, %p2762_p4 }
  0x9d   : > { %p2758_p9 = pneg %p2757_p7 }
  0x9f   : > { %p2765_p12 = pnand %p2764_p11, %p2758_p9 }
  0xa1   : > { %2768 = shalt.err (!%p2765_p12)
}
  0xa2   : > { %2396 = dma.hbm_to_vmem [thread:$0]  (!%p3124_p6), %s3648_s7, 1024, %s3216_s11, [#allocation12], %s3695_s2, %s3695_s2, %s3694_s3  }
  0xa3   : > { %s2972_s18 = smov [#allocation16]   ;;  %s2769_s21 = scalar_lea.hbm %s3651_s10, 2048 }
  0xa4   : > { %s424_s14 = sshll.u32 %s2972_s18, 4  ;;  %p2770_p13 = scmp.ne.s32.totalorder %s3651_s10, %s2769_s21  ;;  %s425_s14 = int_to_ptr.vmem [resolvable:$true] %s424_s14 }
  0xa5   : > { %p2776_p0 = scmp.lt.u32.totalorder %s2769_s21, %s3651_s10 }
  0xa6   : > { %p2772_p1 = pnand %p2770_p13, %p3140_p8 }
  0xa8   : > { %p2773_p2 = pneg %p2772_p1 }
  0xaa   : > { %p2778_p3 = pnand %p2776_p0, %p2773_p2 }
  0xac   : > { %2781 = shalt.err (!%p2778_p3)
}
  0xad   : > { %s2782_s11 = scalar_lea.vmem %s425_s14, 2048  ;;  %p2790_p4 = scmp.lt.s32.totalorder %s425_s14, %s425_s14 }
  0xae   : > { %p2783_p5 = scmp.ne.s32.totalorder %s425_s14, %s2782_s11  ;;  %p2791_p10 = scmp.lt.s32.totalorder %s2782_s11, %s2782_s11 }
  0xb0   : > { %p2785_p7 = pnand %p2783_p5, %p3140_p8  ;;  %p2792_p11 = por %p2791_p10, %p2790_p4 }
  0xb2   : > { %p2786_p9 = pneg %p2785_p7 }
  0xb4   : > { %p2793_p12 = pnand %p2792_p11, %p2786_p9 }
  0xb6   : > { %2796 = shalt.err (!%p2793_p12)
}
  0xb7   : > { %2402 = dma.hbm_to_vmem [thread:$0]  (!%p3124_p6), %s3651_s10, 2048, %s425_s14, [#allocation15], %s3695_s2, %s3695_s2, %s3694_s3  }
  0xb8   : > { %s2042_s28 = sadd.s32 4294967294, %s2961_s13   ;;  %s40_s20 = sadd.s32 1, %s2953_s29 }
  0xb9   : > { %s3696_s17 = sld [smem:[#allocation23_spill]]  ;;  %s43_s18 = sadd.s32 1, %s2957_s30 }
  0xba   : > { %p41_p8 = scmp.ge.s32.totalorder %s40_s20, 2  ;;  %s50_s1 = sadd.s32 1, %s2941_s26 }
  0xbb   : > { %p57_p13 = scmp.ne.s32.totalorder %s2941_s26, %s2937_s25  ;;  %p58_p1 = scmp.eq.s32.totalorder %s2961_s13, 0 }
  0xbc   : > { %s3739_s20 = smov (%p41_p8, %s40_s20), 0  ;;  %s3697_s12 = sld [smem:[#allocation26_spill]] }
  0xbd   : > { %s3741_s18 = smov (!%p41_p8, %s43_s18), %s2957_s30  ;;  %p3296_p2 = por %p58_p1, %p57_p13 }
  0xbe   : > { %p63_p6 = scmp.ne.s32.totalorder %s2937_s25, %s2933_s24  ;;  %p45_p0 = scmp.ge.s32.totalorder %s3741_s18, 2 }
  0xbf   : > { %s310_s2 = ssub.s32 %s2953_s29, %s3739_s20  ;;  %p3699_p3 = scmp.ne.s32.totalorder %s3684_s15, 0 }
  0xc0   : > { %s314_s21 = sadd.s32 1, %s2929_s23  ;;  %s3743_s18 = smov (%p45_p0, %s3741_s18), 0 }
  0xc1   : > { %p3306_p5 = por %p3699_p3, %p63_p6  ;;  %p324_p7 = scmp.ne.s32.totalorder %s2929_s23, %s2925_s22 }
  0xc2   : > { %p330_p9 = scmp.ne.s32.totalorder %s2925_s22, %s3696_s17  ;;  %s47_s9 = ssub.s32 %s2957_s30, %s3743_s18 }
  0xc3   : > { %p331_p4 = scmp.eq.s32.totalorder %s2042_s28, 3  ;;  %p48_p10 = scmp.eq.s32.totalorder %s47_s9, 0 }
  0xc4   : > { %s311_s24 = sor.u32 %s310_s2, %s47_s9  ;;  %p3701_p12 = scmp.ne.s32.totalorder %s3697_s12, 0 }
  0xc5   : > { %p312_p11 = scmp.eq.s32.totalorder %s311_s24, 0  ;;  %p3331_p13 = por %p331_p4, %p330_p9 }
  0xc6   : > { %p3321_p8 = por %p3701_p12, %p324_p7  ;;  %p2417_p1 = scmp.lt.s32.totalorder %s2961_s13, 4 }
  0xc7   : > { %s3326_s27 = scalar_select %p48_p10, %s2941_s26, %s50_s1  }
  0xc8   : > { %s3702_s16 = scalar_select %p3321_p8, 1, 0 }
  0xc9   : > { %s3329_s11 = scalar_select %p312_p11, %s2929_s23, %s314_s21  }
  0xca   : > { %s3703_s0 = scalar_select %p3331_p13, 1, 0 }
  0xcb   : > { %s441_s19 = sand.u32 1, %s2941_s26   ;;  %s2150_s17 = sshll.u32 %s2957_s30, 8 }
  0xcc   : > { %s2051_s28 = sshll.u32 %s441_s19, 4  ;;  %s3704_s9 = sld [smem:[#allocation28_spill]] }
  0xcd   : > { %s445_s1 = scalar_lea.vmem [#allocation5], %s2051_s28  ;;  %p3345_p6 = pnand %p2417_p1, %p3296_p2 }
  0xce   : > { %s452_s21 = sshll.u32 %s445_s1, 4  ;;  %s3351_s5 = scalar_lea.sflag [#allocation6], %s441_s19  ;;  %s3349_s21 = int_to_ptr.vmem [resolvable:$true] %s452_s21 }
  0xcf   : > { %p2799_p3 = pneg %p3345_p6 }
  0xd2   : > { %s3341_s12 = scalar_lea.hbm %s3704_s9, %s2150_s17  ;;  %s2802_s28 = scalar_lea.hbm %s3704_s9, 512 }
  0xd3   : > { %s2797_s4 = scalar_lea.hbm %s3341_s12, 256  ;;  %p2803_p2 = scmp.lt.u32.totalorder %s3341_s12, %s3704_s9 }
  0xd4   : > { %p2798_p0 = scmp.ne.s32.totalorder %s3341_s12, %s2797_s4  ;;  %p2804_p4 = scmp.lt.u32.totalorder %s2802_s28, %s2797_s4 }
  0xd5   : > { %p2806_p11 = scmp.lt.u32.totalorder %s2797_s4, %s3341_s12 }
  0xd6   : > { %p2800_p7 = pnand %p2799_p3, %p2798_p0  ;;  %p2805_p10 = por %p2804_p4, %p2803_p2 }
  0xd8   : > { %p2801_p9 = pneg %p2800_p7  ;;  %p2807_p12 = por %p2806_p11, %p2805_p10 }
  0xda   : > { %p2808_p1 = pnand %p2807_p12, %p2801_p9 }
  0xdc   : > { %2811 = shalt.err (!%p2808_p1)
}
  0xdd   : > { %s2812_s19 = scalar_lea.vmem %s3349_s21, 256  ;;  %s2973_s17 = smov [#allocation5]  }
  0xde   : > { %p2813_p0 = scmp.ne.s32.totalorder %s3349_s21, %s2812_s19  ;;  %s2817_s3 = sshll.u32 %s2973_s17, 4  ;;  %s2818_s3 = int_to_ptr.vmem [resolvable:$false] %s2817_s3 }
  0xdf   : > { %s2819_s2 = scalar_lea.vmem %s2818_s3, 512  ;;  %p2820_p8 = scmp.lt.s32.totalorder %s3349_s21, %s2818_s3 }
  0xe0   : > { %p2815_p7 = pnand %p2813_p0, %p2799_p3  ;;  %p2821_p2 = scmp.lt.s32.totalorder %s2819_s2, %s2812_s19 }
  0xe2   : > { %p2816_p13 = pneg %p2815_p7  ;;  %p2822_p4 = por %p2821_p2, %p2820_p8 }
  0xe4   : > { %p2823_p10 = pnand %p2822_p4, %p2816_p13 }
  0xe6   : > { %2826 = shalt.err (!%p2823_p10)
}
  0xe7   : > { %s3706_s4 = smov 8   ;;  %s3707_s28 = smov 128  }
  0xe8   : > { %2406 = dma.hbm_to_vmem [thread:$0]  (!%p3345_p6), %s3341_s12, 256, %s3349_s21, %s3351_s5, %s3707_s28, %s3707_s28, %s3706_s4  }
  0xe9   : > { %s3708_s1 = sld [smem:[#allocation27_spill]] }
  0xef   : > { %p3709_p3 = scmp.ne.s32.totalorder %s3708_s1, 0 }
  0xf0   : > { %s472_s17 = sand.u32 (!%p3709_p3), 1, %s2937_s25  }
  0xf1   : > { %470 = sbr.rel (%p3709_p3) target bundleno = 4501 (0x1195), region = 68  ;;  %s2055_s3 = sshll.u32 (!%p3709_p3), %s472_s17, 4 }
  0xf2   : > { %s473_s19 = scalar_lea.sflag (!%p3709_p3), [#allocation6], %s472_s17  ;;  %s3385_s2 = scalar_lea.vmem (!%p3709_p3), [#allocation5], %s2055_s3 }
  0xf8   : > { %2900 = dma.done.wait (%p3306_p5), %s473_s19, 256  }
  0xf9   : > { %2902 = vsyncadd (%p3306_p5), %s473_s19, 4294967040  ;;  %p3710_p8 = scmp.ne.s32.totalorder %s3684_s15, 0 }
  0xfb   : > { %2904 = dma.done.wait (%p3710_p8), [#allocation9], 2048  }
  0xfc   : > { %2906 = vsyncadd (%p3710_p8), [#allocation9], 4294965248 }
  0xfd   : > { %2908 = dma.done.wait (%p3710_p8), [#allocation12], 2048  }
  0xfe   : > { %2910 = vsyncadd (%p3710_p8), [#allocation12], 4294965248 }
  0xff   : > { %2912 = dma.done.wait (%p3710_p8), [#allocation15], 4096  }
 0x100   : > { %2914 = vsyncadd (%p3710_p8), [#allocation15], 4294963200  ;;  %s3711_s5 = sld [smem:[#allocation25_spill]]  ;;  %s3670_s14 = sand.u32 1, %s2925_s22  }
 0x101   : > { %s3407_s12 = sshll.u32 %s3670_s14, 3  ;;  %s3712_s4 = sld [smem:[#allocation29_spill]] }
 0x102   : > { %s543_s1 = scalar_lea.vmem [#allocation17], %s3407_s12  ;;  %s3713_s15 = sld [smem:[#allocation24_spill]] }
 0x106   : > { %p544_p5 = scmp.lt.s32.totalorder %s3711_s5, 1 }
 0x108   : > { %s3745_s5 = smov (!%p544_p5, %s3711_s5), 1  ;;  %p2063_p13 = scmp.ne.s32.totalorder %s3713_s15, 0 }
 0x109   : > { %s546_s28 = scalar_lea.vmem %s3712_s4, %s3745_s5  ;;  %v552_v0 = vld [vmem:[%s3385_s2] sm:$0xff] (!%p2063_p13)  ;;  %v553_v1 = vld [vmem:[%s3385_s2 + $0x8] sm:$0xff] (!%p2063_p13)  ;;  %v2974_v4 = vmov (!%p2063_p13), 0.0   ;;  %vm2975_vm0 = vmmov (!%p2063_p13), 0   ;;  %s3714_s19 = sld [smem:[#allocation30_spill]] (!%p2063_p13) }
 0x10a   : > { %551 = sbr.rel (%p2063_p13) target bundleno = 800 (0x320), region = 100  ;;  %554 = vadd.xlane.f32.xlu0 (!%p2063_p13), %v552_v0  ;;  %v2531_v2 = vld [vmem:[#allocation10] sm:$0xff] (!%p2063_p13)   ;;  %2228 = vmatprep.subr.bf16.mxu0 (!%p2063_p13), %v2974_v4  ;;  %v2533_v13 = vld [vmem:[#allocation10 + $0x8] sm:$0xff] (!%p2063_p13)   ;;  %v2535_v15 = vld [vmem:[#allocation10 + $0x10] sm:$0xff] (!%p2063_p13)   ;;  %s3715_s4 = sld [smem:[#allocation31_spill]] (!%p2063_p13) }
 0x10b   : > { %v2532_v3 = vld [vmem:[#allocation11] sm:$0xff] (!%p2063_p13)   ;;  %2248 = vmatprep.subr.bf16.mxu1 (!%p2063_p13), %v2974_v4  ;;  %2229 = vmatpush3.bf16.msra.mxu0 (!%p2063_p13), %v2531_v2  ;;  %v2534_v14 = vld [vmem:[#allocation11 + $0x8] sm:$0xff] (!%p2063_p13)   ;;  %v2536_v16 = vld [vmem:[#allocation11 + $0x10] sm:$0xff] (!%p2063_p13)  }
 0x10c   : > { %2249 = vmatpush3.bf16.msra.mxu1 (!%p2063_p13), %v2532_v3  ;;  %2230 = vmatprep.subr.bf16.mxu0 (!%p2063_p13), %v2974_v4  ;;  %v2537_v17 = vld [vmem:[#allocation10 + $0x18] sm:$0xff] (!%p2063_p13)   ;;  %v2539_v19 = vld [vmem:[#allocation10 + $0x20] sm:$0xff] (!%p2063_p13)   ;;  %v2541_v21 = vld [vmem:[#allocation10 + $0x28] sm:$0xff] (!%p2063_p13)  }
 0x10d   : > { %2250 = vmatprep.subr.bf16.mxu1 (!%p2063_p13), %v2974_v4  ;;  %v2538_v18 = vld [vmem:[#allocation11 + $0x18] sm:$0xff] (!%p2063_p13)   ;;  %v2540_v20 = vld [vmem:[#allocation11 + $0x20] sm:$0xff] (!%p2063_p13)   ;;  %2244 = vmatprep.mubr.msk.bf16.mxu0 (!%p2063_p13), %vm2975_vm0, %v2974_v4  ;;  %v2542_v22 = vld [vmem:[#allocation11 + $0x28] sm:$0xff] (!%p2063_p13)  }
 0x10e   : > { %556 = vadd.xlane.f32.xlu0 (!%p2063_p13), %v553_v1  ;;  %2264 = vmatprep.mubr.msk.bf16.mxu1 (!%p2063_p13), %vm2975_vm0, %v2974_v4  ;;  %v2543_v23 = vld [vmem:[#allocation10 + $0x30] sm:$0xff] (!%p2063_p13)   ;;  %v2545_v25 = vld [vmem:[#allocation10 + $0x38] sm:$0xff] (!%p2063_p13)  }
 0x10f   : > { %2231 = vmatpush3.bf16.msra.mxu0 (!%p2063_p13), %v2533_v13  ;;  %v2544_v24 = vld [vmem:[#allocation11 + $0x30] sm:$0xff] (!%p2063_p13)   ;;  %v2546_v26 = vld [vmem:[#allocation11 + $0x38] sm:$0xff] (!%p2063_p13)   ;;  %v2064_v35 = vld [vmem:[%s3714_s19] ss:$0 sm:$0xff] (!%p2063_p13) }
 0x110   : > { %2251 = vmatpush3.bf16.msra.mxu1 (!%p2063_p13), %v2534_v14  ;;  %2232 = vmatprep.subr.bf16.mxu0 (!%p2063_p13), %v2974_v4  ;;  %v2065_v39 = vld [vmem:[%s3715_s4] ss:$0 sm:$0xff] (!%p2063_p13) }
 0x111   : > { %2252 = vmatprep.subr.bf16.mxu1 %v2974_v4 }
 0x113   : > { %2233 = vmatpush3.bf16.msra.mxu0 %v2535_v15 }
 0x114   : > { %2253 = vmatpush3.bf16.msra.mxu1 %v2536_v16  ;;  %2234 = vmatprep.subr.bf16.mxu0 %v2974_v4 }
 0x115   : > { %2254 = vmatprep.subr.bf16.mxu1 %v2974_v4 }
 0x117   : > { %2235 = vmatpush3.bf16.msra.mxu0 %v2537_v17 }
 0x118   : > { %2255 = vmatpush3.bf16.msra.mxu1 %v2538_v18  ;;  %2236 = vmatprep.subr.bf16.mxu0 %v2974_v4 }
 0x119   : > { %2256 = vmatprep.subr.bf16.mxu1 %v2974_v4 }
 0x11b   : > { %2237 = vmatpush3.bf16.msra.mxu0 %v2539_v19 }
 0x11c   : > { %2257 = vmatpush3.bf16.msra.mxu1 %v2540_v20  ;;  %2238 = vmatprep.subr.bf16.mxu0 %v2974_v4 }
 0x11d   : > { %2258 = vmatprep.subr.bf16.mxu1 %v2974_v4 }
 0x11f   : > { %2239 = vmatpush3.bf16.msra.mxu0 %v2541_v21 }
 0x120   : > { %2259 = vmatpush3.bf16.msra.mxu1 %v2542_v22  ;;  %2240 = vmatprep.subr.bf16.mxu0 %v2974_v4 }
 0x121   : > { %2260 = vmatprep.subr.bf16.mxu1 %v2974_v4 }
 0x123   : > { %2241 = vmatpush3.bf16.msra.mxu0 %v2543_v23 }
 0x124   : > { %2261 = vmatpush3.bf16.msra.mxu1 %v2544_v24  ;;  %2242 = vmatprep.subr.bf16.mxu0 %v2974_v4 }
 0x125   : > { %2262 = vmatprep.subr.bf16.mxu1 %v2974_v4 }
 0x127   : > { %2243 = vmatpush3.bf16.msra.mxu0 %v2545_v25 }
 0x128   : > { %2263 = vmatpush3.bf16.msra.mxu1 %v2546_v26 }
 0x197   : > { %v555_v5 = vpop.xlane.xlu0 %554 }
 0x198   : > { %v559_v6 = vmul.f32 0.0078125, %v555_v5 }
 0x19a   : > { %v561_v7 = vsub.f32 %v552_v0, %v559_v6 }
 0x19b   : > { %v557_v8 = vpop.xlane.xlu0 %556 }
 0x19c   : > { %v560_v9 = vmul.f32 0.0078125, %v557_v8  ;;  %v563_v10 = vmul.f32 %v561_v7, %v561_v7 }
 0x19e   : > { %v562_v11 = vsub.f32 %v553_v1, %v560_v9  ;;  %565 = vadd.xlane.f32.xlu1 %v563_v10 }
 0x1a0   : > { %v564_v12 = vmul.f32 %v562_v11, %v562_v11 }
 0x1a2   : > { %567 = vadd.xlane.f32.xlu1 %v564_v12 }
 0x22b   : > { %v566_v27 = vpop.xlane.xlu1 %565 }
 0x22c   : > { %v569_v28 = vmul.f32 0.0078125, %v566_v27 }
 0x22e   : > { %v571_v29 = vadd.f32 1e-05, %v569_v28 }
 0x22f   : > { %v568_v30 = vpop.xlane.xlu1 %567 }
 0x230   : > { %2547 = vrsqrt.f32 %v571_v29  ;;  %v570_v31 = vmul.f32 0.0078125, %v568_v30 }
 0x232   : > { %v572_v32 = vadd.f32 1e-05, %v570_v31 }
 0x234   : > { %2549 = vrsqrt.f32 %v572_v32 }
 0x23a   : > { %v2548_v33 = vpop.eup %2547 }
 0x23b   : > { %v575_v34 = vmul.f32 %v2548_v33, %v561_v7 }
 0x23d   : > { %v584_v38 = vmul.f32 %v2064_v35, %v575_v34 }
 0x23e   : > { %v2550_v36 = vpop.eup %2549 }
 0x23f   : > { %v576_v37 = vmul.f32 %v2550_v36, %v562_v11  ;;  %v593_v41 = vadd.f32 %v2065_v39, %v584_v38 }
 0x241   : > { %v585_v40 = vmul.f32 %v2064_v35, %v576_v37 }
 0x243   : > { %v594_v42 = vadd.f32 %v2065_v39, %v585_v40 }
 0x245   : > { %v595_v43 = vpack.c.bf16 %v594_v42, %v593_v41 }
 0x247   : > { %2245 = vmatmul.mubr.bf16.vlgmr.msra.gmra.mrb[0].mxu0 %v595_v43  ;;  %2265 = vmatmul.mubr.bf16.vlgmr.msra.gmra.mrb[0].mxu1 %v595_v43 }
 0x31a   : > { %v694_v44 = vpop.f32.mrb[0].mxu0  ;;  %v801_v45 = vpop.f32.mrb[0].mxu1 }
 0x31b   : > { %v2246_v46 = vpop.f32.mrb[1].mxu0  ;;  %v2266_v47 = vpop.f32.mrb[1].mxu1 }
 0x31c   : > { %v697_v48 = vpop.f32.mrb[2].mxu0  ;;  %v804_v49 = vpop.f32.mrb[2].mxu1 }
 0x31d   : > { %v701_v50 = vpack.c.bf16 %v697_v48, %v694_v44  ;;  %v808_v51 = vpack.c.bf16 %v804_v49, %v801_v45  ;;  %v2247_v52 = vpop.f32.mrb[3].mxu0  ;;  %v2267_v53 = vpop.f32.mrb[3].mxu1 }
 0x31f   : > { %702 = vst [vmem:[#allocation2] sm:$0xff] %v701_v50  ;;  %809 = vst [vmem:[#allocation3] sm:$0xff] %v808_v51 }
 0x320 PF: > { %s3716_s15 = sld [smem:[#allocation24_spill]]  ;;  %v2551_v55 = vld [vmem:[#allocation8] sm:$0xff]   ;;  %v2552_v56 = vld [vmem:[#allocation8 + $0x8] sm:$0xff]   ;;  %v2976_v57 = vmov 0.0   ;;  %v2553_v62 = vld [vmem:[#allocation8 + $0x10] sm:$0xff]   ;;  %vm2977_vm1 = vmmov 0   ;;  %v951_v21 = vlaneseq }
 0x321   : > { %2268 = vmatprep.subr.bf16.mxu0 %v2976_v57  ;;  %2288 = vmatprep.subr.bf16.mxu1 %v2976_v57  ;;  %v2554_v63 = vld [vmem:[#allocation8 + $0x18] sm:$0xff]   ;;  %v2555_v0 = vld [vmem:[#allocation8 + $0x20] sm:$0xff]   ;;  %v2556_v1 = vld [vmem:[#allocation8 + $0x28] sm:$0xff]   ;;  %vm957_vm2 = vcmask 261120   ;;  %s3717_s21 = sld [smem:[#allocation30_spill]]  ;;  %vm1004_vm4 = vcmask 130048  }
 0x322   : > { %2269 = vmatpush3.bf16.msra.mxu0 %v2551_v55  ;;  %2284 = vmatprep.mubr.msk.bf16.mxu0 %vm2977_vm1, %v2976_v57  ;;  %v2557_v2 = vld [vmem:[#allocation8 + $0x30] sm:$0xff]   ;;  %v2558_v3 = vld [vmem:[#allocation8 + $0x38] sm:$0xff]   ;;  %v947_v22 = vld [vmem:[%s546_s28] sm:$0x1]  ;;  %v3470_v23 = vshrl.u32 %v951_v21, 7  ;;  %s2978_s5 = smov 96  }
 0x323   : > { %2270 = vmatprep.subr.bf16.mxu0 %v2976_v57  ;;  %2290 = vmatprep.mubr.msk.bf16.mxu1 %vm2977_vm1, %v2976_v57  ;;  %vm948_vm3 = vcmp.eq.f32.partialorder %v947_v22, 0.0  ;;  %vm1062_vm5 = vcmask 257024   ;;  %s2979_s28 = smov 64   ;;  %vm1184_vm6 = vcmask 519424   ;;  %vm1305_vm7 = vcmask 781824   ;;  %s1890_s4 = sshll.u32 %s543_s1, 4  ;;  %s3577_s4 = int_to_ptr.vmem [resolvable:$true] %s1890_s4 }
 0x324   : > { %v953_v24 = vsub.s32 0, %v3470_v23  ;;  %v949_v25 = vsel %vm948_vm3, -1e+09, %v2976_v57  ;;  %vm1426_vm8 = vcmask 1044224   ;;  %p3725_p9 = scmp.ne.s32.totalorder %s3702_s16, 0 }
 0x326   : > { %s2082_s17 = sshll.u32 %s3716_s15, 3  ;;  %2271 = vmatpush3.bf16.msra.mxu0 %v2552_v56  ;;  %v3446_v4 = vld [vmem:[#allocation2] sm:$0xff]  ;;  %v3476_v26 = vrot.slane %v949_v25, %v953_v24  ;;  %v3485_v38 = vld [vmem:[#allocation3] sm:$0xff] }
 0x327   : > { %s811_s3 = scalar_lea.vmem %s3385_s2, %s2082_s17 [#allocation5]  ;;  %2272 = vmatprep.subr.bf16.mxu0 %v2976_v57  ;;  %v962_v5 = vsel %vm957_vm2, %v3446_v4, 0  ;;  %v2083_v10 = vld [vmem:[%s3717_s21] ss:$0 sm:$0xff]  ;;  %s3718_s17 = sld [smem:[#allocation31_spill]] }
 0x328   : > { %v3428_v54 = vld [vmem:[%s811_s3] sm:$0xff]  ;;  %2289 = vmatpush3.bf16.xpose.msra.mxu1 %v962_v5  ;;  %s2980_s21 = smov 32   ;;  %s3721_s3 = sld [smem:[#allocation25_spill]] }
 0x329   : > { %813 = vadd.xlane.f32.xlu0 %v3428_v54  ;;  %2294 = vmatprep.subr.bf16.mxu1 %v2976_v57 }
 0x32a   : > { %2273 = vmatpush3.bf16.msra.mxu0 %v2553_v62 }
 0x32b   : > { %2274 = vmatprep.subr.bf16.mxu0 %v2976_v57 }
 0x32d   : > { %v2084_v12 = vld [vmem:[%s3718_s17] ss:$0 sm:$0xff]  ;;  %s3720_s17 = sld [smem:[#allocation35_spill]] }
 0x32e   : > { %2275 = vmatpush3.bf16.msra.mxu0 %v2554_v63  ;;  %s2146_s2 = sshll.u32 %s3721_s3, 1  ;;  %s3723_s3 = sld [smem:[#allocation37_spill]] }
 0x32f   : > { %2276 = vmatprep.subr.bf16.mxu0 %v2976_v57  ;;  %s1886_s19 = sadd.s32 %s3716_s15, %s2146_s2  ;;  %s3724_s15 = sand.u32 1, %s2925_s22  }
 0x330   : > { %s2147_s24 = sshll.u32 %s1886_s19, 7  ;;  %s1875_s2 = scalar_lea.sflag [#allocation7], %s3724_s15 }
 0x331   : > { %s2827_s19 = scalar_lea.vmem %s3577_s4, 128 }
 0x332   : > { %2277 = vmatpush3.bf16.msra.mxu0 %v2555_v0  ;;  %p2828_p6 = scmp.ne.s32.totalorder %s3577_s4, %s2827_s19 }
 0x333   : > { %2278 = vmatprep.subr.bf16.mxu0 %v2976_v57 }
 0x334   : > { %s3575_s6 = scalar_lea.hbm %s3723_s3, %s2147_s24  ;;  %p2829_p11 = pnand %p2828_p6, %p3725_p9 }
 0x336   : > { %2279 = vmatpush3.bf16.msra.mxu0 %v2556_v1  ;;  %p2830_p12 = pneg %p2829_p11 }
 0x337   : > { %2280 = vmatprep.subr.bf16.mxu0 %v2976_v57 }
 0x33a   : > { %2281 = vmatpush3.bf16.msra.mxu0 %v2557_v2 }
 0x33b   : > { %2282 = vmatprep.subr.bf16.mxu0 %v2976_v57 }
 0x33e   : > { %2283 = vmatpush3.bf16.msra.mxu0 %v2558_v3 }
 0x33f   : > { %2336 = vmatprep.subr.bf16.mxu0 %v2976_v57 }
 0x3b6   : > { %v814_v58 = vpop.xlane.xlu0 %813 }
 0x3b7   : > { %v816_v59 = vmul.f32 0.0078125, %v814_v58 }
 0x3b9   : > { %v817_v60 = vsub.f32 %v3428_v54, %v816_v59 }
 0x3bb   : > { %v818_v61 = vmul.f32 %v817_v60, %v817_v60 }
 0x3bd   : > { %819 = vadd.xlane.f32.xlu0 %v818_v61 }
 0x3d3   : > { %1069 = vrot.lane.b32.xlu0 %v3446_v4, %s2978_s5 }
 0x44a   : > { %v820_v6 = vpop.xlane.xlu0 %819 }
 0x44b   : > { %v821_v7 = vmul.f32 0.0078125, %v820_v6 }
 0x44d   : > { %v822_v8 = vadd.f32 1e-05, %v821_v7 }
 0x44e   : > { %v1070_v41 = vpop.permute.xlu0 %1069 }
 0x44f   : > { %2607 = vrsqrt.f32 %v822_v8  ;;  %v1075_v43 = vsel %vm957_vm2, %v1070_v41, 0 }
 0x459   : > { %v2608_v9 = vpop.eup %2607 }
 0x45a   : > { %v824_v11 = vmul.f32 %v2608_v9, %v817_v60 }
 0x45c   : > { %v832_v13 = vmul.f32 %v2083_v10, %v824_v11 }
 0x45e   : > { %v840_v14 = vadd.f32 %v2084_v12, %v832_v13 }
 0x460   : > { %v841_v15 = vpack.c.bf16 %v840_v14, %v840_v14 }
 0x462   : > { %2285 = vmatmul.mubr.bf16.vlgmr.msra.gmra.mrb[0].mxu0 %v841_v15 }
 0x463   : > { %2352 = vmatprep.mubr.msk.bf16.mxu0 %vm2977_vm1, %v2976_v57 }
 0x535   : > { %v940_v16 = vpop.f32.mrb[0].mxu0 }
 0x536   : > { %v3459_v17 = vpack.c.bf16 %v940_v16, %v940_v16  ;;  %v2286_v18 = vpop.f32.mrb[1].mxu0 }
 0x537   : > { %v943_v19 = vpop.f32.mrb[2].mxu0 }
 0x538   : > { %v2287_v20 = vpop.f32.mrb[3].mxu0  ;;  %2291 = vmatmul.mubr.msk.bf16.vlgmr.msra.gmra.mrb[0].mxu1 %vm957_vm2, %v3459_v17 }
 0x539   : > { %2296 = vmatprep.mubr.msk.bf16.mxu1 %vm2977_vm1, %v2976_v57  ;;  %2295 = vmatpush3.bf16.msra.mxu1 %v3485_v38 }
 0x53a   : > { %2300 = vmatprep.subr.bf16.mxu1 %v2976_v57 }
 0x60b   : > { %v998_v27 = vpop.f32.mrb[0].mxu1 }
 0x60c   : > { %v999_v28 = vadd.f32 %v998_v27, %v3476_v26  ;;  %v2292_v29 = vpop.f32.mrb[1].mxu1 }
 0x60d   : > { %v1001_v30 = vpop.f32.mrb[2].mxu1 }
 0x60e   : > { %v2293_v31 = vpop.f32.mrb[3].mxu1  ;;  %v1005_v32 = vsel %vm1004_vm4, %v999_v28, -inf }
 0x60f   : > { %1006 = vmax.xlane.f32.xlu1 %v1005_v32 }
 0x69c   : > { %v1007_v33 = vpop.xlane.xlu1 %1006 }
 0x69d   : > { %v1008_v34 = vsub.f32 %v999_v28, %v1007_v33 }
 0x69f   : > { %v1009_v35 = vmul.f32 1.442695, %v1008_v34 }
 0x6a1   : > { %2609 = vpow2.f32 %v1009_v35 }
 0x6ab   : > { %v2610_v36 = vpop.eup %2609 }
 0x6ac   : > { %v1011_v37 = vsel %vm1004_vm4, %v2610_v36, 0.0 }
 0x6ad   : > { %1012 = vadd.xlane.f32.xlu1 %v1011_v37 }
 0x6be   : > { %1066 = vrot.lane.b32.xlu1 %v3459_v17, %s2978_s5 }
 0x73a   : > { %v1013_v39 = vpop.xlane.xlu1 %1012 }
 0x73b   : > { %2611 = vrcp.f32 %v1013_v39 }
 0x73e   : > { %v1067_v45 = vpop.permute.xlu1 %1066 }
 0x745   : > { %v2612_v40 = vpop.eup %2611 }
 0x746   : > { %v1015_v42 = vmul.f32 %v2612_v40, %v2610_v36 }
 0x748   : > { %v1016_v44 = vpack.c.bf16 %v1015_v42, %v1015_v42 }
 0x74a   : > { %2297 = vmatmul.mubr.msk.bf16.vlgmr.msra.gmra.mrb[4].mxu1 %vm1004_vm4, %v1016_v44 }
 0x74b   : > { %2301 = vmatpush3.bf16.xpose.msra.mxu1 %v1075_v43  ;;  %2302 = vmatprep.mubr.msk.bf16.mxu1 %vm2977_vm1, %v2976_v57 }
 0x74c   : > { %2306 = vmatprep.subr.bf16.mxu1 %v2976_v57 }
 0x752   : > { %2303 = vmatmul.mubr.msk.bf16.vlgmr.msra.gmra.mrb[8].mxu1 %vm957_vm2, %v1067_v45 }
 0x753   : > { %2308 = vmatprep.mubr.msk.bf16.mxu1 %vm2977_vm1, %v2976_v57 }
 0x81d   : > { %v1055_v46 = vpop.f32.mrb[4].mxu1 }
 0x81e   : > { %v1061_v47 = vpack.c.bf16 %v1055_v46, %v1055_v46  ;;  %v2298_v48 = vpop.f32.mrb[5].mxu1 }
 0x81f   : > { %v1058_v49 = vpop.f32.mrb[6].mxu1 }
 0x820   : > { %1063 = vst.msk [vmem:[#allocation4] sm:$0xf] %vm1062_vm5, %v1061_v47  ;;  %v2299_v50 = vpop.f32.mrb[7].mxu1 }
 0x825   : > { %v1111_v51 = vpop.f32.mrb[8].mxu1 }
 0x826   : > { %v1112_v52 = vadd.f32 %v1111_v51, %v3476_v26  ;;  %v2304_v53 = vpop.f32.mrb[9].mxu1 }
 0x827   : > { %v1114_v55 = vpop.f32.mrb[10].mxu1 }
 0x828   : > { %v2305_v56 = vpop.f32.mrb[11].mxu1  ;;  %v1117_v58 = vsel %vm1004_vm4, %v1112_v52, -inf }
 0x829   : > { %1118 = vmax.xlane.f32.xlu1 %v1117_v58 }
 0x83a   : > { %1190 = vrot.lane.b32.xlu1 %v3446_v4, %s2979_s28 }
 0x83e   : > { %1187 = vrot.lane.b32.xlu1 %v3459_v17, %s2979_s28 }
 0x8b6   : > { %v1119_v59 = vpop.xlane.xlu1 %1118 }
 0x8b7   : > { %v1120_v60 = vsub.f32 %v1112_v52, %v1119_v59  ;;  %v2559_v59 = vld [vmem:[#allocation13] sm:$0xff]  }
 0x8b8   : > { %2337 = vmatpush3.bf16.msra.mxu0 %v2559_v59 }
 0x8b9   : > { %v1121_v61 = vmul.f32 1.442695, %v1120_v60  ;;  %v2560_v60 = vld [vmem:[#allocation13 + $0x8] sm:$0xff]   ;;  %2338 = vmatprep.subr.bf16.mxu0 %v2976_v57 }
 0x8ba   : > { %v1191_v5 = vpop.permute.xlu1 %1190 }
 0x8bb   : > { %2613 = vpow2.f32 %v1121_v61  ;;  %v1196_v6 = vsel %vm957_vm2, %v1191_v5, 0  ;;  %v2561_v61 = vld [vmem:[#allocation13 + $0x10] sm:$0xff]   ;;  %v2569_v5 = vld [vmem:[#allocation14 + $0x4] ss:$8 sps:$4 sm:$0xff]  }
 0x8bc   : > { %2339 = vmatpush3.bf16.msra.mxu0 %v2560_v60 }
 0x8bd   : > { %2340 = vmatprep.subr.bf16.mxu0 %v2976_v57 }
 0x8be   : > { %v1188_v8 = vpop.permute.xlu1 %1187 }
 0x8c0   : > { %2341 = vmatpush3.bf16.msra.mxu0 %v2561_v61 }
 0x8c1   : > { %2342 = vmatprep.subr.bf16.mxu0 %v2976_v57 }
 0x8c5   : > { %v2614_v62 = vpop.eup %2613 }
 0x8c6   : > { %v1123_v63 = vsel %vm1004_vm4, %v2614_v62, 0.0 }
 0x8c7   : > { %1124 = vadd.xlane.f32.xlu0 %v1123_v63  ;;  %v2563_v63 = vld [vmem:[#allocation13 + $0x20] sm:$0xff]  }
 0x8dd   : > { %1131 = vrot.lane.b32.xlu0 %v3485_v38, %s2978_s5 }
 0x954   : > { %v1125_v0 = vpop.xlane.xlu0 %1124 }
 0x955   : > { %2615 = vrcp.f32 %v1125_v0  ;;  %v2564_v0 = vld [vmem:[#allocation13 + $0x28] sm:$0xff]  }
 0x958   : > { %v1132_v1 = vpop.permute.xlu0 %1131 }
 0x959   : > { %2307 = vmatpush3.bf16.msra.mxu1 %v1132_v1  ;;  %v2565_v1 = vld [vmem:[#allocation13 + $0x30] sm:$0xff]  }
 0x95a   : > { %2312 = vmatprep.subr.bf16.mxu1 %v2976_v57 }
 0x95f   : > { %v2616_v2 = vpop.eup %2615 }
 0x960   : > { %v1127_v3 = vmul.f32 %v2616_v2, %v2614_v62  ;;  %v2562_v62 = vld [vmem:[#allocation13 + $0x18] sm:$0xff]  }
 0x961   : > { %2343 = vmatpush3.bf16.msra.mxu0 %v2562_v62  ;;  %v2566_v2 = vld [vmem:[#allocation13 + $0x38] sm:$0xff]  }
 0x962   : > { %v1128_v7 = vpack.c.bf16 %v1127_v3, %v1127_v3  ;;  %2344 = vmatprep.subr.bf16.mxu0 %v2976_v57  ;;  %v2567_v3 = vld [vmem:[#allocation14] ss:$8 sps:$4 sm:$0xff]  }
 0x964   : > { %2309 = vmatmul.mubr.msk.bf16.vlgmr.msra.gmra.mrb[12].mxu1 %vm1004_vm4, %v1128_v7 }
 0x965   : > { %2313 = vmatpush3.bf16.xpose.msra.mxu1 %v1196_v6  ;;  %2314 = vmatprep.mubr.msk.bf16.mxu1 %vm2977_vm1, %v2976_v57  ;;  %v2572_v6 = vld [vmem:[#allocation14 + $0x14] ss:$8 sps:$4 sm:$0xff]  }
 0x966   : > { %2318 = vmatprep.subr.bf16.mxu1 %v2976_v57  ;;  %2345 = vmatpush3.bf16.msra.mxu0 %v2563_v63 }
 0x967   : > { %2346 = vmatprep.subr.bf16.mxu0 %v2976_v57 }
 0x96a   : > { %2347 = vmatpush3.bf16.msra.mxu0 %v2564_v0 }
 0x96b   : > { %2348 = vmatprep.subr.bf16.mxu0 %v2976_v57 }
 0x96c   : > { %2315 = vmatmul.mubr.msk.bf16.vlgmr.msra.gmra.mrb[16].mxu1 %vm957_vm2, %v1188_v8 }
 0x96d   : > { %2320 = vmatprep.mubr.msk.bf16.mxu1 %vm2977_vm1, %v2976_v57 }
 0x96e   : > { %2349 = vmatpush3.bf16.msra.mxu0 %v2565_v1 }
 0x96f   : > { %2350 = vmatprep.subr.bf16.mxu0 %v2976_v57 }
 0x972   : > { %2351 = vmatpush3.bf16.msra.mxu0 %v2566_v2 }
 0xa37   : > { %v3515_v9 = vpop.f32.mrb[12].mxu1 }
 0xa38   : > { %v2310_v10 = vpop.f32.mrb[13].mxu1  ;;  %v2151_v51 = vpack.c.bf16 %v3515_v9, %v3515_v9 }
 0xa39   : > { %v1174_v11 = vpop.f32.mrb[14].mxu1  ;;  %v2570_v10 = vld [vmem:[#allocation14 + $0x10] ss:$8 sps:$4 sm:$0xff]  }
 0xa3a   : > { %v2311_v12 = vpop.f32.mrb[15].mxu1 }
 0xa3b   : > { %v2575_v12 = vld [vmem:[#allocation14 + $0x24] ss:$8 sps:$4 sm:$0xff]  }
 0xa3f   : > { %v1232_v13 = vpop.f32.mrb[16].mxu1 }
 0xa40   : > { %v1233_v14 = vadd.f32 %v1232_v13, %v3476_v26  ;;  %v2316_v15 = vpop.f32.mrb[17].mxu1 }
 0xa41   : > { %v1235_v16 = vpop.f32.mrb[18].mxu1  ;;  %v2576_v15 = vld [vmem:[#allocation14 + $0x30] ss:$8 sps:$4 sm:$0xff]  }
 0xa42   : > { %v2317_v18 = vpop.f32.mrb[19].mxu1  ;;  %v1238_v19 = vsel %vm1004_vm4, %v1233_v14, -inf  ;;  %v2581_v16 = vld [vmem:[#allocation14 + $0x44] ss:$8 sps:$4 sm:$0xff]  }
 0xa43   : > { %1239 = vmax.xlane.f32.xlu1 %v1238_v19  ;;  %v2579_v18 = vld [vmem:[#allocation14 + $0x40] ss:$8 sps:$4 sm:$0xff]   ;;  %v2584_v19 = vld [vmem:[#allocation14 + $0x54] ss:$8 sps:$4 sm:$0xff]  }
 0xa54   : > { %1311 = vrot.lane.b32.xlu1 %v3446_v4, %s2980_s21 }
 0xa58   : > { %1308 = vrot.lane.b32.xlu1 %v3459_v17, %s2980_s21 }
 0xad0   : > { %v1240_v20 = vpop.xlane.xlu1 %1239 }
 0xad1   : > { %v1241_v21 = vsub.f32 %v1233_v14, %v1240_v20  ;;  %v2573_v14 = vld [vmem:[#allocation14 + $0x20] ss:$8 sps:$4 sm:$0xff]   ;;  %v2582_v20 = vld [vmem:[#allocation14 + $0x50] ss:$8 sps:$4 sm:$0xff]  }
 0xad3   : > { %v1242_v22 = vmul.f32 1.442695, %v1241_v21  ;;  %v2587_v21 = vld [vmem:[#allocation14 + $0x64] ss:$8 sps:$4 sm:$0xff]  }
 0xad4   : > { %v1312_v17 = vpop.permute.xlu1 %1311 }
 0xad5   : > { %2617 = vpow2.f32 %v1242_v22  ;;  %v1317_v31 = vsel %vm957_vm2, %v1312_v17, 0  ;;  %v2585_v22 = vld [vmem:[#allocation14 + $0x60] ss:$8 sps:$4 sm:$0xff]  }
 0xad6   : > { %v2592_v17 = vld [vmem:[#allocation16] sm:$0xff]  }
 0xad8   : > { %v1309_v33 = vpop.permute.xlu1 %1308 }
 0xadf   : > { %v2618_v25 = vpop.eup %2617 }
 0xae0   : > { %v1244_v27 = vsel %vm1004_vm4, %v2618_v25, 0.0 }
 0xae1   : > { %1245 = vadd.xlane.f32.xlu0 %v1244_v27 }
 0xaf7   : > { %1252 = vrot.lane.b32.xlu0 %v3485_v38, %s2979_s28 }
 0xb6e   : > { %v1246_v28 = vpop.xlane.xlu0 %1245 }
 0xb6f   : > { %2619 = vrcp.f32 %v1246_v28  ;;  %v2590_v28 = vld [vmem:[#allocation14 + $0x74] ss:$8 sps:$4 sm:$0xff]  }
 0xb72   : > { %v1253_v29 = vpop.permute.xlu0 %1252 }
 0xb73   : > { %2319 = vmatpush3.bf16.msra.mxu1 %v1253_v29  ;;  %v2588_v29 = vld [vmem:[#allocation14 + $0x70] ss:$8 sps:$4 sm:$0xff]  }
 0xb74   : > { %2324 = vmatprep.subr.bf16.mxu1 %v2976_v57 }
 0xb79   : > { %v2620_v4 = vpop.eup %2619 }
 0xb7a   : > { %v1248_v30 = vmul.f32 %v2620_v4, %v2618_v25  ;;  %v2981_v4 = vmov 0  }
 0xb7c   : > { %v1249_v32 = vpack.c.bf16 %v1248_v30, %v1248_v30  ;;  %v2591_v30 = vld [vmem:[#allocation16 + $0x40] sm:$0xff]  }
 0xb7d   : > { %2206 = vmatprep.subr.bf16.mxu0 %v2591_v30 }
 0xb7e   : > { %2321 = vmatmul.mubr.msk.bf16.vlgmr.msra.gmra.mrb[20].mxu1 %vm1004_vm4, %v1249_v32  ;;  %v2594_v32 = vld [vmem:[#allocation16 + $0x8] sm:$0xff]  }
 0xb7f   : > { %2325 = vmatpush3.bf16.xpose.msra.mxu1 %v1317_v31  ;;  %2326 = vmatprep.mubr.msk.bf16.mxu1 %vm2977_vm1, %v2976_v57  ;;  %v2593_v31 = vld [vmem:[#allocation16 + $0x48] sm:$0xff]  }
 0xb80   : > { %2330 = vmatprep.subr.bf16.mxu1 %v2976_v57 }
 0xb86   : > { %2327 = vmatmul.mubr.msk.bf16.vlgmr.msra.gmra.mrb[24].mxu1 %vm957_vm2, %v1309_v33 }
 0xb87   : > { %2332 = vmatprep.mubr.msk.bf16.mxu1 %vm2977_vm1, %v2976_v57  ;;  %v2578_v57 = vld [vmem:[#allocation14 + $0x34] ss:$8 sps:$4 sm:$0xff]  }
 0xc51   : > { %v1292_v34 = vpop.f32.mrb[20].mxu1 }
 0xc52   : > { %v2322_v35 = vpop.f32.mrb[21].mxu1  ;;  %v2152_v45 = vpack.c.bf16 %v1292_v34, %v1292_v34 }
 0xc53   : > { %v1295_v36 = vpop.f32.mrb[22].mxu1 }
 0xc54   : > { %v2323_v37 = vpop.f32.mrb[23].mxu1 }
 0xc59   : > { %v1353_v39 = vpop.f32.mrb[24].mxu1 }
 0xc5a   : > { %v1354_v40 = vadd.f32 %v1353_v39, %v3476_v26  ;;  %v2328_v41 = vpop.f32.mrb[25].mxu1 }
 0xc5b   : > { %v1356_v42 = vpop.f32.mrb[26].mxu1  ;;  %v2596_v41 = vld [vmem:[#allocation16 + $0x10] sm:$0xff]  }
 0xc5c   : > { %v2329_v43 = vpop.f32.mrb[27].mxu1  ;;  %v1359_v44 = vsel %vm1004_vm4, %v1354_v40, -inf  ;;  %v2597_v42 = vld [vmem:[#allocation16 + $0x58] sm:$0xff]  }
 0xc5d   : > { %1360 = vmax.xlane.f32.xlu0 %v1359_v44  ;;  %v2598_v43 = vld [vmem:[#allocation16 + $0x18] sm:$0xff]   ;;  %v2599_v44 = vld [vmem:[#allocation16 + $0x60] sm:$0xff]  }
 0xc73   : > { %1373 = vrot.lane.b32.xlu0 %v3485_v38, %s2980_s21 }
 0xc77   : > { %1302 = vrot.lane.b32.xlu0 %v2152_v45, %s2979_s28  ;;  %v2600_v45 = vld [vmem:[#allocation16 + $0x20] sm:$0xff]  }
 0xcea   : > { %v1361_v46 = vpop.xlane.xlu0 %1360 }
 0xceb   : > { %v1362_v47 = vsub.f32 %v1354_v40, %v1361_v46  ;;  %v2595_v40 = vld [vmem:[#allocation16 + $0x50] sm:$0xff]   ;;  %v2602_v46 = vld [vmem:[#allocation16 + $0x28] sm:$0xff]  }
 0xced   : > { %v1363_v48 = vmul.f32 1.442695, %v1362_v47  ;;  %v2603_v47 = vld [vmem:[#allocation16 + $0x70] sm:$0xff]  }
 0xcee   : > { %v1374_v49 = vpop.permute.xlu0 %1373 }
 0xcef   : > { %2621 = vpow2.f32 %v1363_v48  ;;  %2331 = vmatpush3.bf16.msra.mxu1 %v1374_v49  ;;  %v2604_v48 = vld [vmem:[#allocation16 + $0x30] sm:$0xff]   ;;  %v2605_v49 = vld [vmem:[#allocation16 + $0x78] sm:$0xff]  }
 0xcf0   : > { %1643 = vmatprep.subr.bf16.mxu1 %v2569_v5 }
 0xcf2   : > { %v1303_v53 = vpop.permute.xlu0 %1302 }
 0xcf9   : > { %v2622_v50 = vpop.eup %2621 }
 0xcfa   : > { %v1365_v26 = vsel %vm1004_vm4, %v2622_v50, 0.0 }
 0xcfb   : > { %1366 = vadd.xlane.f32.xlu1 %v1365_v26  ;;  %v1551_v26 = vld [vmem:[%s3720_s17] sm:$0x3] }
 0xd0c   : > { %1181 = vrot.lane.b32.xlu1 %v2151_v51, %s2980_s21  ;;  %v1559_v51 = vsub.s32 1, %v3470_v23  ;;  %s3722_s21 = sld [smem:[#allocation36_spill]] }
 0xd88   : > { %v1367_v52 = vpop.xlane.xlu1 %1366 }
 0xd89   : > { %2623 = vrcp.f32 %v1367_v52  ;;  %v1556_v52 = vrot.slane %v1551_v26, %v953_v24 }
 0xd8c   : > { %v1182_v38 = vpop.permute.xlu1 %1181 }
 0xd8d   : > { %1185 = vst.msk [vmem:[#allocation4] sm:$0xf] %vm1184_vm6, %v1182_v38  ;;  %v1560_v38 = vrot.slane %v1551_v26, %v1559_v51 }
 0xd8e   : > { %1306 = vst.msk [vmem:[#allocation4] sm:$0xf] %vm1305_vm7, %v1303_v53 }
 0xd93   : > { %v2624_v55 = vpop.eup %2623 }
 0xd94   : > { %v1369_v56 = vmul.f32 %v2624_v55, %v2622_v50  ;;  %v2606_v50 = vld [vmem:[#allocation16 + $0x38] sm:$0xff]  }
 0xd96   : > { %v1370_v58 = vpack.c.bf16 %v1369_v56, %v1369_v56 }
 0xd98   : > { %2333 = vmatmul.mubr.msk.bf16.vlgmr.msra.gmra.mrb[28].mxu1 %vm1004_vm4, %v1370_v58 }
 0xd99   : > { %1644 = vmatpush1.bf16.msra.mxu1 %v2567_v3  ;;  %1675 = vmatprep.mubr.bf16.mxu1 %v2981_v4 }
 0xd9a   : > { %1645 = vmatprep.subr.bf16.mxu1 %v2572_v6 }
 0xd9d   : > { %1646 = vmatpush1.bf16.msra.mxu1 %v2570_v10 }
 0xd9e   : > { %1647 = vmatprep.subr.bf16.mxu1 %v2575_v12 }
 0xda1   : > { %1648 = vmatpush1.bf16.msra.mxu1 %v2573_v14 }
 0xda2   : > { %1649 = vmatprep.subr.bf16.mxu1 %v2578_v57 }
 0xda5   : > { %1650 = vmatpush1.bf16.msra.mxu1 %v2576_v15 }
 0xda6   : > { %1651 = vmatprep.subr.bf16.mxu1 %v2581_v16 }
 0xda9   : > { %1652 = vmatpush1.bf16.msra.mxu1 %v2579_v18 }
 0xdaa   : > { %1653 = vmatprep.subr.bf16.mxu1 %v2584_v19 }
 0xdad   : > { %1654 = vmatpush1.bf16.msra.mxu1 %v2582_v20 }
 0xdae   : > { %1655 = vmatprep.subr.bf16.mxu1 %v2587_v21 }
 0xdb1   : > { %1656 = vmatpush1.bf16.msra.mxu1 %v2585_v22 }
 0xdb2   : > { %1657 = vmatprep.subr.bf16.mxu1 %v2590_v28 }
 0xdb5   : > { %1658 = vmatpush1.bf16.msra.mxu1 %v2588_v29 }
 0xe6b   : > { %v1413_v7 = vpop.f32.mrb[28].mxu1 }
 0xe6c   : > { %v2153_v8 = vpack.c.bf16 %v1413_v7, %v1413_v7  ;;  %v2334_v9 = vpop.f32.mrb[29].mxu1 }
 0xe6d   : > { %v1416_v11 = vpop.f32.mrb[30].mxu1 }
 0xe6e   : > { %1423 = vrot.lane.b32.xlu1 %v2153_v8, %s2978_s5  ;;  %v2335_v13 = vpop.f32.mrb[31].mxu1  ;;  %s2982_s5 = smov [#allocation17]  }
 0xe6f   : > { %v2144_v13 = vld [vmem:[%s3722_s21] ss:$0 sm:$0xff]  ;;  %s2831_s28 = sshll.u32 %s2982_s5, 4  ;;  %s2832_s28 = int_to_ptr.vmem [resolvable:$false] %s2831_s28 }
 0xe70   : > { %s2833_s14 = scalar_lea.vmem %s2832_s28, 256  ;;  %p2834_p1 = scmp.lt.s32.totalorder %s3577_s4, %s2832_s28 }
 0xe71   : > { %p2835_p0 = scmp.lt.s32.totalorder %s2833_s14, %s2827_s19 }
 0xe73   : > { %p2836_p7 = por %p2835_p0, %p2834_p1 }
 0xe75   : > { %p2837_p2 = pnand %p2836_p7, %p2830_p12 }
 0xee0   : > { %v1424_v25 = vpop.permute.xlu1 %1423 }
 0xee1   : > { %1427 = vst.msk [vmem:[#allocation4] sm:$0xf] %vm1426_vm8, %v1424_v25 }
 0xee8   : > { %v1428_v27 = vld [vmem:[#allocation4] sm:$0xf] }
 0xee9   : > { %2353 = vmatmul.mubr.bf16.vlgmr.msra.gmra.mrb[4].mxu0 %v1428_v27 }
 0xeea   : > { %2207 = vmatpush3.bf16.msra.mxu0 %v2592_v17 }
 0xeeb   : > { %2208 = vmatprep.subr.bf16.mxu0 %v2593_v31 }
 0xeee   : > { %2209 = vmatpush3.bf16.msra.mxu0 %v2594_v32 }
 0xeef   : > { %2210 = vmatprep.subr.bf16.mxu0 %v2595_v40 }
 0xef2   : > { %2211 = vmatpush3.bf16.msra.mxu0 %v2596_v41 }
 0xef3   : > { %2212 = vmatprep.subr.bf16.mxu0 %v2597_v42 }
 0xef6   : > { %2213 = vmatpush3.bf16.msra.mxu0 %v2598_v43 }
 0xef7   : > { %2214 = vmatprep.subr.bf16.mxu0 %v2599_v44 }
 0xefa   : > { %2215 = vmatpush3.bf16.msra.mxu0 %v2600_v45 }
 0xfbc   : > { %v1527_v33 = vpop.f32.mrb[4].mxu0 }
 0xfbd   : > { %v3554_v34 = vadd.f32 %v1527_v33, %v3428_v54  ;;  %v2354_v35 = vpop.f32.mrb[5].mxu0  ;;  %v2601_v54 = vld [vmem:[#allocation16 + $0x68] sm:$0xff]  }
 0xfbe   : > { %v1530_v36 = vpop.f32.mrb[6].mxu0  ;;  %2216 = vmatprep.subr.bf16.mxu0 %v2601_v54 }
 0xfbf   : > { %v1534_v37 = vpack.c.bf16 %v3554_v34, %v3554_v34  ;;  %v2355_v39 = vpop.f32.mrb[7].mxu0  ;;  %2217 = vmatpush3.bf16.msra.mxu0 %v2602_v46 }
 0xfc0   : > { %2218 = vmatprep.subr.bf16.mxu0 %v2603_v47 }
 0xfc1   : > { %1676 = vmatmul.mubr.bf16.vlgmr.msra.gmra.mrb[32].mxu1 %v1534_v37 }
 0xfc3   : > { %2219 = vmatpush3.bf16.msra.mxu0 %v2604_v48 }
 0xfc4   : > { %2220 = vmatprep.subr.bf16.mxu0 %v2605_v49 }
 0xfc7   : > { %2221 = vmatpush3.bf16.msra.mxu0 %v2606_v50 }
0x1094   : > { %v1677_v53 = vpop.f32.mrb[32].mxu1 }
0x1095   : > { %v1678_v55 = vadd.f32 %v1677_v53, %v1556_v52  ;;  %v1679_v56 = vpop.f32.mrb[33].mxu1 }
0x1096   : > { %v1680_v58 = vadd.f32 %v1679_v56, %v1560_v38  ;;  %v1681_v59 = vpop.f32.mrb[34].mxu1 }
0x1097   : > { %v1686_v60 = vmul.f32 0.70710677, %v1678_v55  ;;  %v1682_v61 = vpop.f32.mrb[35].mxu1  ;;  %v1684_v1 = vmul.f32 0.5, %v1678_v55 }
0x1098   : > { %v1687_v62 = vmul.f32 0.70710677, %v1680_v58  ;;  %v1685_v3 = vmul.f32 0.5, %v1680_v58 }
0x1099   : > { %2625 = verf.f32 %v1686_v60 }
0x109a   : > { %2627 = verf.f32 %v1687_v62 }
0x10a3   : > { %v2626_v63 = vpop.eup %2625 }
0x10a4   : > { %v2628_v0 = vpop.eup %2627  ;;  %v1690_v2 = vadd.f32 1.0, %v2626_v63 }
0x10a5   : > { %v1691_v23 = vadd.f32 1.0, %v2628_v0 }
0x10a6   : > { %v1692_v24 = vmul.f32 %v1690_v2, %v1684_v1 }
0x10a7   : > { %v1693_v5 = vmul.f32 %v1691_v23, %v1685_v3 }
0x10a8   : > { %v1694_v7 = vpack.c.bf16 %v1692_v24, %v1692_v24 }
0x10a9   : > { %v1695_v6 = vpack.c.bf16 %v1693_v5, %v1693_v5 }
0x10ab   : > { %1856 = vmatprep.mubr.bf16.mxu0 %v1695_v6 }
0x10ac   : > { %1857 = vmatmul.mubr.bf16.vlgmr.msra.gmra.mrb[8].mxu0 %v1694_v7 }
0x117f   : > { %v2222_v8 = vpop.f32.mrb[8].mxu0 }
0x1180   : > { %v2223_v9 = vpop.f32.mrb[9].mxu0 }
0x1181   : > { %v2224_v10 = vadd.f32 %v2223_v9, %v2222_v8  ;;  %v2225_v11 = vpop.f32.mrb[10].mxu0 }
0x1182   : > { %v2226_v12 = vpop.f32.mrb[11].mxu0 }
0x1183   : > { %v1864_v14 = vadd.f32 %v2224_v10, %v3554_v34 }
0x1185   : > { %v1872_v57 = vadd.f32 %v2144_v13, %v1864_v14 }
0x1187   : > { %1873 = vst [vmem:[%s543_s1] sm:$0xff] %v1872_v57 }
0x1188   : > { %2840 = shalt.err (!%p2837_p2)
}
0x1189   : > { %s2841_s12 = scalar_lea.hbm %s3575_s6, 128  ;;  %s2845_s24 = scalar_lea.hbm %s3723_s3, 512 }
0x118a   : > { %p2842_p4 = scmp.ne.s32.totalorder %s3575_s6, %s2841_s12  ;;  %p2846_p8 = scmp.lt.u32.totalorder %s3575_s6, %s3723_s3 }
0x118b   : > { %p2847_p5 = scmp.lt.u32.totalorder %s2845_s24, %s2841_s12  ;;  %p2849_p6 = scmp.lt.u32.totalorder %s2841_s12, %s3575_s6 }
0x118c   : > { %p2843_p10 = pnand %p2842_p4, %p3725_p9 }
0x118d   : > { %p2848_p13 = por %p2847_p5, %p2846_p8 }
0x118e   : > { %p2844_p3 = pneg %p2843_p10 }
0x118f   : > { %p2850_p11 = por %p2849_p6, %p2848_p13 }
0x1191   : > { %p2851_p12 = pnand %p2850_p11, %p2844_p3 }
0x1193   : > { %2854 = shalt.err (!%p2851_p12)
}
0x1194   : > { %2382 = dma.vmem_to_hbm [thread:$0]  (%p3725_p9), %s3577_s4, 128, %s3575_s6, %s1875_s2  }
0x1195 PF: > { %s3726_s19 = sld [smem:[#allocation23_spill]]  ;;  %p2424_p1 = scmp.ge.s32.totalorder %s2961_s13, 2 }
0x1196   : > { %p3727_p0 = scmp.ne.s32.totalorder %s3703_s0, 0 }
0x1198   : > { %p2408_p7 = pnand %p2424_p1, %p3727_p0 }
0x119b   : > { %s1902_s5 = sand.u32 1, %s3726_s19  }
0x119c   : > { %s1903_s28 = scalar_lea.sflag [#allocation7], %s1902_s5 }
0x119d   : > { %2916 = dma.done.wait (!%p2408_p7), %s1903_s28, 128  }
0x119e   : > { %2918 = vsyncadd (!%p2408_p7), %s1903_s28, 4294967168  ;;  %s31_s13 = sadd.s32 1, %s2961_s13   ;;  %s3728_s21 = smov %s2925_s22 }
0x119f   : > { %p28_p2 = scmp.ge.s32.totalorder %s31_s13, 6   ;;  %s3729_s22 = smov %s2929_s23 }
0x11a0   : > { %s3730_s23 = smov %s3329_s11  ;;  %s3731_s24 = smov %s2937_s25 }
0x11a1   : > { %s3732_s25 = smov %s2941_s26  ;;  %s3733_s26 = smov %s3326_s27 }
0x11a2   : > { %s3734_s27 = smov %s2953_s29  ;;  %s3735_s28 = smov %s2957_s30 }
0x11a3   : > { %s3736_s29 = smov %s3739_s20  ;;  %s3737_s30 = smov %s3743_s18 }
0x11a4   :  { %30 = sbr.rel (!%p28_p2) target bundleno = 23 (0x17), region = 145 }
0x11ab   :  { %1908 = vsyncpa [#allocation6], 1 }
0x11ac   :  { %1910 = vsyncpa [#allocation6 + $0x1], 1 }
0x11ad   :  { %1911 = vsyncpa [#allocation9], 1 }
0x11ae   :  { %1912 = vsyncpa [#allocation12], 1 }
0x11af   :  { %1913 = vsyncpa [#allocation15], 1 }
0x11b0   :  { %1914 = vsyncpa [#allocation7], 1 }
0x11b1   :  { %1916 = vsyncpa [#allocation7 + $0x1], 1 }

// kernel: tpu_custom_call.1
= control target key start
LH: loop header
LB: loop body
LE: loop exit
PB: predicated region body
PF: predicated region fallthrough
CT: control target
= control target key end

     0   :  { %s3641_s0 = inlined_call_operand.hbm [shape: f32[2,16,128], index: 0, kind: input, shape index: {}]   ;;  %s3642_s1 = inlined_call_operand.vmem [shape: f32[2,1,16], index: 1, kind: input, shape index: {}]   ;;  %s3643_s2 = inlined_call_operand.vmem [shape: f32[1,128], index: 2, kind: input, shape index: {}]   ;;  %s3644_s3 = inlined_call_operand.vmem [shape: f32[1,128], index: 3, kind: input, shape index: {}]   ;;  %s3645_s4 = inlined_call_operand.hbm [shape: bf16[128,128], index: 4, kind: input, shape index: {}]   ;;  %s3646_s5 = inlined_call_operand.hbm [shape: bf16[128,128], index: 5, kind: input, shape index: {}]   ;;  %s3647_s6 = inlined_call_operand.hbm [shape: bf16[128,128], index: 6, kind: input, shape index: {}]   ;;  %s3648_s7 = inlined_call_operand.hbm [shape: bf16[128,128], index: 7, kind: input, shape index: {}]   ;;  %s3649_s8 = inlined_call_operand.hbm [shape: bf16[128,256], index: 8, kind: input, shape index: {}]   ;;  %s3650_s9 = inlined_call_operand.vmem [shape: f32[1,256], index: 9, kind: input, shape index: {}]   ;;  %s3651_s10 = inlined_call_operand.hbm [shape: bf16[256,128], index: 10, kind: input, shape index: {}]   ;;  %s3652_s11 = inlined_call_operand.vmem [shape: f32[1,128], index: 11, kind: input, shape index: {}]   ;;  %s3653_s12 = inlined_call_operand.hbm [shape: f32[2,16,128], index: 12, kind: output, shape index: {}]  }
   0x1   :  { %3671 = sst [smem:[#allocation28_spill]] %s3641_s0 }
   0x2   :  { %3672 = sst [smem:[#allocation29_spill]] %s3642_s1 }
   0x3   :  { %3673 = sst [smem:[#allocation30_spill]] %s3643_s2 }
   0x4   :  { %3674 = sst [smem:[#allocation31_spill]] %s3644_s3 }
   0x5   :  { %3675 = sst [smem:[#allocation32_spill]] %s3645_s4 }
   0x6   :  { %3676 = sst [smem:[#allocation33_spill]] %s3646_s5 }
   0x7   :  { %3677 = sst [smem:[#allocation34_spill]] %s3647_s6 }
   0x8   :  { %3678 = sst [smem:[#allocation35_spill]] %s3650_s9 }
   0x9   :  { %3679 = sst [smem:[#allocation36_spill]] %s3652_s11 }
   0xa   :  { %3680 = sst [smem:[#allocation37_spill]] %s3653_s12 }
   0xb   :  { %17 = vsyncpa [#allocation6], 0 }
   0xc   :  { %19 = vsyncpa [#allocation6 + $0x1], 0 }
   0xd   :  { %20 = vsyncpa [#allocation9], 0 }
   0xe   :  { %21 = vsyncpa [#allocation12], 0 }
   0xf   :  { %22 = vsyncpa [#allocation15], 0 }
  0x10   :  { %23 = vsyncpa [#allocation7], 0 }
  0x11   :  { %25 = vsyncpa [#allocation7 + $0x1], 0  ;;  %s3048_s21 = smov 0   ;;  %s3050_s22 = smov 0  }
  0x12   :  { %s3052_s23 = smov 0   ;;  %s3054_s24 = smov 0  }
  0x13   :  { %s3056_s25 = smov 0   ;;  %s3058_s26 = smov 0  }
  0x14   :  { %s3060_s27 = smov 0   ;;  %s3062_s28 = smov 0  }
  0x15   :  { %s3064_s29 = smov 0   ;;  %s3066_s30 = smov 0  }
  0x16   :  { %s3068_s13 = smov 0  }
  0x17 LB: > { %3681 = sst [smem:[#allocation23_spill]] %s2921_s21  ;;  %s2041_s14 = sadd.s32 4294967295, %s2961_s13   ;;  %s2961_s13 = sphi %s3068_s13, %s31_s13   ;;  %s2957_s30 = sphi %s3066_s30, %s3737_s30   ;;  %s2953_s29 = sphi %s3064_s29, %s3736_s29   ;;  %s2949_s28 = sphi %s3062_s28, %s3735_s28   ;;  %s2945_s27 = sphi %s3060_s27, %s3734_s27   ;;  %s2941_s26 = sphi %s3058_s26, %s3733_s26   ;;  %s2937_s25 = sphi %s3056_s25, %s3732_s25   ;;  %s2933_s24 = sphi %s3054_s24, %s3731_s24   ;;  %s2929_s23 = sphi %s3052_s23, %s3730_s23   ;;  %s2925_s22 = sphi %s3050_s22, %s3729_s22   ;;  %s2921_s21 = sphi %s3048_s21, %s3728_s21  }
  0x18   : > { %3682 = sst [smem:[#allocation24_spill]] %s2945_s27  ;;  %p2043_p0 = scmp.ge.s32.totalorder %s2961_s13, 1 }
  0x19   : > { %3683 = sst [smem:[#allocation25_spill]] %s2949_s28  ;;  %p3105_p1 = scmp.eq.s32.totalorder %s2041_s14, 0 }
  0x1a   : > { %p3109_p2 = scmp.eq.s32.totalorder %s2041_s14, 3  ;;  %p338_p3 = scmp.lt.s32.totalorder %s2961_s13, 5 }
  0x1b   : > { %s3684_s15 = scalar_select %p3105_p1, 1, 0 }
  0x1c   : > { %s3685_s16 = scalar_select %p3109_p2, 1, 0 }
  0x1d   : > { %p3114_p4 = pnand %p2043_p0, %p338_p3  ;;  %s2963_s18 = smov [#allocation8]  }
  0x1e   : > { %3686 = sst [smem:[#allocation26_spill]] %s3685_s16  ;;  %s356_s19 = sshll.u32 %s2963_s18, 4  ;;  %s3118_s19 = int_to_ptr.vmem [resolvable:$true] %s356_s19 }
  0x1f   : > { %s3687_s17 = scalar_select %p3114_p4, 1, 0 }
  0x20   : > { %p2384_p5 = pneg %p3114_p4  ;;  %s2964_s14 = smov [#allocation11]  }
  0x21   : > { %3688 = sst [smem:[#allocation27_spill]] %s3687_s17  ;;  %s382_s12 = sshll.u32 %s2964_s14, 4  ;;  %s3128_s12 = int_to_ptr.vmem [resolvable:$true] %s382_s12 }
  0x22   : > { %p3124_p6 = pnand %p2384_p5, %p3105_p1  ;;  %s2965_s11 = smov [#allocation14]  }
  0x23   : > { %s408_s9 = sshll.u32 %s2965_s11, 4  ;;  %s3690_s4 = sld [smem:[#allocation32_spill]]  ;;  %s3130_s9 = int_to_ptr.vmem [resolvable:$true] %s408_s9 }
  0x24   : > { %p3140_p8 = pneg %p3124_p6 }
  0x29   : > { %s2629_s2 = scalar_lea.hbm %s3690_s4, 1024 }
  0x2a   : > { %p2630_p7 = scmp.ne.s32.totalorder %s3690_s4, %s2629_s2  ;;  %p2636_p11 = scmp.lt.u32.totalorder %s2629_s2, %s3690_s4 }
  0x2c   : > { %p2632_p9 = pnand %p3140_p8, %p2630_p7 }
  0x2e   : > { %p2633_p10 = pneg %p2632_p9 }
  0x30   : > { %p2638_p12 = pnand %p2636_p11, %p2633_p10 }
  0x32   : > { %2641 = shalt.err (!%p2638_p12)
}
  0x33   : > { %s2642_s1 = scalar_lea.vmem %s3118_s19, 1024  ;;  %p2650_p5 = scmp.lt.s32.totalorder %s3118_s19, %s3118_s19 }
  0x34   : > { %p2643_p13 = scmp.ne.s32.totalorder %s3118_s19, %s2642_s1  ;;  %p2651_p4 = scmp.lt.s32.totalorder %s2642_s1, %s2642_s1 }
  0x36   : > { %p2645_p0 = pnand %p2643_p13, %p3140_p8  ;;  %p2652_p7 = por %p2651_p4, %p2650_p5 }
  0x38   : > { %p2646_p3 = pneg %p2645_p0 }
  0x3a   : > { %p2653_p9 = pnand %p2652_p7, %p2646_p3 }
  0x3c   : > { %2656 = shalt.err (!%p2653_p9)
}
  0x3d   : > { %s3661_s3 = smov 64   ;;  %s3663_s2 = smov 4  }
  0x3e   : > { %2387 = dma.hbm_to_vmem [thread:$0]  (!%p3124_p6), %s3690_s4, 1024, %s3118_s19, [#allocation9], %s3661_s3, %s3661_s3, %s3663_s2  }
  0x3f   : > { %s3692_s6 = sld [smem:[#allocation34_spill]] }
  0x45   : > { %s2657_s1 = scalar_lea.hbm %s3692_s6, 1024 }
  0x46   : > { %p2658_p4 = scmp.ne.s32.totalorder %s3692_s6, %s2657_s1  ;;  %p2664_p12 = scmp.lt.u32.totalorder %s2657_s1, %s3692_s6 }
  0x48   : > { %p2660_p10 = pnand %p2658_p4, %p3140_p8 }
  0x4a   : > { %p2661_p11 = pneg %p2660_p10 }
  0x4c   : > { %p2666_p13 = pnand %p2664_p12, %p2661_p11 }
  0x4e   : > { %2669 = shalt.err (!%p2666_p13)
}
  0x4f   : > { %s2670_s19 = scalar_lea.vmem %s3128_s12, 1024  ;;  %p2678_p7 = scmp.lt.s32.totalorder %s3128_s12, %s3128_s12 }
  0x50   : > { %p2671_p0 = scmp.ne.s32.totalorder %s3128_s12, %s2670_s19  ;;  %p2679_p9 = scmp.lt.s32.totalorder %s2670_s19, %s2670_s19 }
  0x52   : > { %p2673_p3 = pnand %p2671_p0, %p3140_p8  ;;  %p2680_p4 = por %p2679_p9, %p2678_p7 }
  0x54   : > { %p2674_p5 = pneg %p2673_p3 }
  0x56   : > { %p2681_p10 = pnand %p2680_p4, %p2674_p5 }
  0x58   : > { %2684 = shalt.err (!%p2681_p10)
}
  0x59   : > { %2393 = dma.hbm_to_vmem [thread:$0]  (!%p3124_p6), %s3692_s6, 1024, %s3128_s12, [#allocation12], %s3661_s3, %s3661_s3, %s3663_s2  }
  0x5a   : > { %s2685_s27 = scalar_lea.hbm %s3649_s8, 2048 }
  0x5b   : > { %p2686_p11 = scmp.ne.s32.totalorder %s3649_s8, %s2685_s27  ;;  %p2692_p0 = scmp.lt.u32.totalorder %s2685_s27, %s3649_s8 }
  0x5d   : > { %p2688_p12 = pnand %p2686_p11, %p3140_p8 }
  0x5f   : > { %p2689_p13 = pneg %p2688_p12 }
  0x61   : > { %p2694_p3 = pnand %p2692_p0, %p2689_p13 }
  0x63   : > { %2697 = shalt.err (!%p2694_p3)
}
  0x64   : > { %s2698_s12 = scalar_lea.vmem %s3130_s9, 2048  ;;  %p2706_p4 = scmp.lt.s32.totalorder %s3130_s9, %s3130_s9 }
  0x65   : > { %p2699_p5 = scmp.ne.s32.totalorder %s3130_s9, %s2698_s12  ;;  %p2707_p10 = scmp.lt.s32.totalorder %s2698_s12, %s2698_s12 }
  0x67   : > { %p2701_p7 = pnand %p2699_p5, %p3140_p8  ;;  %p2708_p11 = por %p2707_p10, %p2706_p4 }
  0x69   : > { %p2702_p9 = pneg %p2701_p7 }
  0x6b   : > { %p2709_p12 = pnand %p2708_p11, %p2702_p9 }
  0x6d   : > { %2712 = shalt.err (!%p2709_p12)
}
  0x6e   : > { %s3667_s19 = smov 128   ;;  %s3668_s0 = smov 8  }
  0x6f   : > { %2399 = dma.hbm_to_vmem [thread:$0]  (!%p3124_p6), %s3649_s8, 2048, %s3130_s9, [#allocation15], %s3667_s19, %s3667_s19, %s3668_s0  }
  0x70   : > { %s2970_s17 = smov [#allocation10]   ;;  %s2971_s18 = smov [#allocation13]  }
  0x71   : > { %s369_s27 = sshll.u32 %s2970_s17, 4  ;;  %s395_s11 = sshll.u32 %s2971_s18, 4  ;;  %s370_s27 = int_to_ptr.vmem [resolvable:$true] %s369_s27  ;;  %s3216_s11 = int_to_ptr.vmem [resolvable:$true] %s395_s11 }
  0x72   : > { %s3693_s5 = sld [smem:[#allocation33_spill]] }
  0x78   : > { %s2713_s12 = scalar_lea.hbm %s3693_s5, 1024 }
  0x79   : > { %p2714_p13 = scmp.ne.s32.totalorder %s3693_s5, %s2713_s12  ;;  %p2720_p5 = scmp.lt.u32.totalorder %s2713_s12, %s3693_s5 }
  0x7b   : > { %p2716_p0 = pnand %p2714_p13, %p3140_p8 }
  0x7d   : > { %p2717_p3 = pneg %p2716_p0 }
  0x7f   : > { %p2722_p7 = pnand %p2720_p5, %p2717_p3 }
  0x81   : > { %2725 = shalt.err (!%p2722_p7)
}
  0x82   : > { %s2726_s16 = scalar_lea.vmem %s370_s27, 1024  ;;  %p2734_p11 = scmp.lt.s32.totalorder %s370_s27, %s370_s27 }
  0x83   : > { %p2727_p9 = scmp.ne.s32.totalorder %s370_s27, %s2726_s16  ;;  %p2735_p12 = scmp.lt.s32.totalorder %s2726_s16, %s2726_s16 }
  0x85   : > { %p2729_p4 = pnand %p2727_p9, %p3140_p8  ;;  %p2736_p2 = por %p2735_p12, %p2734_p11 }
  0x87   : > { %p2730_p10 = pneg %p2729_p4 }
  0x89   : > { %p2737_p1 = pnand %p2736_p2, %p2730_p10 }
  0x8b   : > { %2740 = shalt.err (!%p2737_p1)
}
  0x8c   : > { %s3694_s3 = smov 4   ;;  %s3695_s2 = smov 64  }
  0x8d   : > { %2390 = dma.hbm_to_vmem [thread:$0]  (!%p3124_p6), %s3693_s5, 1024, %s370_s27, [#allocation9], %s3695_s2, %s3695_s2, %s3694_s3  }
  0x8e   : > { %s2741_s12 = scalar_lea.hbm %s3648_s7, 1024 }
  0x8f   : > { %p2742_p13 = scmp.ne.s32.totalorder %s3648_s7, %s2741_s12  ;;  %p2748_p0 = scmp.lt.u32.totalorder %s2741_s12, %s3648_s7 }
  0x91   : > { %p2744_p1 = pnand %p2742_p13, %p3140_p8 }
  0x93   : > { %p2745_p2 = pneg %p2744_p1 }
  0x95   : > { %p2750_p3 = pnand %p2748_p0, %p2745_p2 }
  0x97   : > { %2753 = shalt.err (!%p2750_p3)
}
  0x98   : > { %s2754_s27 = scalar_lea.vmem %s3216_s11, 1024  ;;  %p2762_p4 = scmp.lt.s32.totalorder %s3216_s11, %s3216_s11 }
  0x99   : > { %p2755_p5 = scmp.ne.s32.totalorder %s3216_s11, %s2754_s27  ;;  %p2763_p10 = scmp.lt.s32.totalorder %s2754_s27, %s2754_s27 }
  0x9b   : > { %p2757_p7 = pnand %p2755_p5, %p3140_p8  ;;  %p2764_p11 = por %p2763_p10, %p2762_p4 }
  0x9d   : > { %p2758_p9 = pneg %p2757_p7 }
  0x9f   : > { %p2765_p12 = pnand %p2764_p11, %p2758_p9 }
  0xa1   : > { %2768 = shalt.err (!%p2765_p12)
}
  0xa2   : > { %2396 = dma.hbm_to_vmem [thread:$0]  (!%p3124_p6), %s3648_s7, 1024, %s3216_s11, [#allocation12], %s3695_s2, %s3695_s2, %s3694_s3  }
  0xa3   : > { %s2972_s18 = smov [#allocation16]   ;;  %s2769_s21 = scalar_lea.hbm %s3651_s10, 2048 }
  0xa4   : > { %s424_s14 = sshll.u32 %s2972_s18, 4  ;;  %p2770_p13 = scmp.ne.s32.totalorder %s3651_s10, %s2769_s21  ;;  %s425_s14 = int_to_ptr.vmem [resolvable:$true] %s424_s14 }
  0xa5   : > { %p2776_p0 = scmp.lt.u32.totalorder %s2769_s21, %s3651_s10 }
  0xa6   : > { %p2772_p1 = pnand %p2770_p13, %p3140_p8 }
  0xa8   : > { %p2773_p2 = pneg %p2772_p1 }
  0xaa   : > { %p2778_p3 = pnand %p2776_p0, %p2773_p2 }
  0xac   : > { %2781 = shalt.err (!%p2778_p3)
}
  0xad   : > { %s2782_s11 = scalar_lea.vmem %s425_s14, 2048  ;;  %p2790_p4 = scmp.lt.s32.totalorder %s425_s14, %s425_s14 }
  0xae   : > { %p2783_p5 = scmp.ne.s32.totalorder %s425_s14, %s2782_s11  ;;  %p2791_p10 = scmp.lt.s32.totalorder %s2782_s11, %s2782_s11 }
  0xb0   : > { %p2785_p7 = pnand %p2783_p5, %p3140_p8  ;;  %p2792_p11 = por %p2791_p10, %p2790_p4 }
  0xb2   : > { %p2786_p9 = pneg %p2785_p7 }
  0xb4   : > { %p2793_p12 = pnand %p2792_p11, %p2786_p9 }
  0xb6   : > { %2796 = shalt.err (!%p2793_p12)
}
  0xb7   : > { %2402 = dma.hbm_to_vmem [thread:$0]  (!%p3124_p6), %s3651_s10, 2048, %s425_s14, [#allocation15], %s3695_s2, %s3695_s2, %s3694_s3  }
  0xb8   : > { %s2042_s28 = sadd.s32 4294967294, %s2961_s13   ;;  %s40_s20 = sadd.s32 1, %s2953_s29 }
  0xb9   : > { %s3696_s17 = sld [smem:[#allocation23_spill]]  ;;  %s43_s18 = sadd.s32 1, %s2957_s30 }
  0xba   : > { %p41_p8 = scmp.ge.s32.totalorder %s40_s20, 2  ;;  %s50_s1 = sadd.s32 1, %s2941_s26 }
  0xbb   : > { %p57_p13 = scmp.ne.s32.totalorder %s2941_s26, %s2937_s25  ;;  %p58_p1 = scmp.eq.s32.totalorder %s2961_s13, 0 }
  0xbc   : > { %s3739_s20 = smov (%p41_p8, %s40_s20), 0  ;;  %s3697_s12 = sld [smem:[#allocation26_spill]] }
  0xbd   : > { %s3741_s18 = smov (!%p41_p8, %s43_s18), %s2957_s30  ;;  %p3296_p2 = por %p58_p1, %p57_p13 }
  0xbe   : > { %p63_p6 = scmp.ne.s32.totalorder %s2937_s25, %s2933_s24  ;;  %p45_p0 = scmp.ge.s32.totalorder %s3741_s18, 2 }
  0xbf   : > { %s310_s2 = ssub.s32 %s2953_s29, %s3739_s20  ;;  %p3699_p3 = scmp.ne.s32.totalorder %s3684_s15, 0 }
  0xc0   : > { %s314_s21 = sadd.s32 1, %s2929_s23  ;;  %s3743_s18 = smov (%p45_p0, %s3741_s18), 0 }
  0xc1   : > { %p3306_p5 = por %p3699_p3, %p63_p6  ;;  %p324_p7 = scmp.ne.s32.totalorder %s2929_s23, %s2925_s22 }
  0xc2   : > { %p330_p9 = scmp.ne.s32.totalorder %s2925_s22, %s3696_s17  ;;  %s47_s9 = ssub.s32 %s2957_s30, %s3743_s18 }
  0xc3   : > { %p331_p4 = scmp.eq.s32.totalorder %s2042_s28, 3  ;;  %p48_p10 = scmp.eq.s32.totalorder %s47_s9, 0 }
  0xc4   : > { %s311_s24 = sor.u32 %s310_s2, %s47_s9  ;;  %p3701_p12 = scmp.ne.s32.totalorder %s3697_s12, 0 }
  0xc5   : > { %p312_p11 = scmp.eq.s32.totalorder %s311_s24, 0  ;;  %p3331_p13 = por %p331_p4, %p330_p9 }
  0xc6   : > { %p3321_p8 = por %p3701_p12, %p324_p7  ;;  %p2417_p1 = scmp.lt.s32.totalorder %s2961_s13, 4 }
  0xc7   : > { %s3326_s27 = scalar_select %p48_p10, %s2941_s26, %s50_s1  }
  0xc8   : > { %s3702_s16 = scalar_select %p3321_p8, 1, 0 }
  0xc9   : > { %s3329_s11 = scalar_select %p312_p11, %s2929_s23, %s314_s21  }
  0xca   : > { %s3703_s0 = scalar_select %p3331_p13, 1, 0 }
  0xcb   : > { %s441_s19 = sand.u32 1, %s2941_s26   ;;  %s2150_s17 = sshll.u32 %s2957_s30, 8 }
  0xcc   : > { %s2051_s28 = sshll.u32 %s441_s19, 4  ;;  %s3704_s9 = sld [smem:[#allocation28_spill]] }
  0xcd   : > { %s445_s1 = scalar_lea.vmem [#allocation5], %s2051_s28  ;;  %p3345_p6 = pnand %p2417_p1, %p3296_p2 }
  0xce   : > { %s452_s21 = sshll.u32 %s445_s1, 4  ;;  %s3351_s5 = scalar_lea.sflag [#allocation6], %s441_s19  ;;  %s3349_s21 = int_to_ptr.vmem [resolvable:$true] %s452_s21 }
  0xcf   : > { %p2799_p3 = pneg %p3345_p6 }
  0xd2   : > { %s3341_s12 = scalar_lea.hbm %s3704_s9, %s2150_s17  ;;  %s2802_s28 = scalar_lea.hbm %s3704_s9, 512 }
  0xd3   : > { %s2797_s4 = scalar_lea.hbm %s3341_s12, 256  ;;  %p2803_p2 = scmp.lt.u32.totalorder %s3341_s12, %s3704_s9 }
  0xd4   : > { %p2798_p0 = scmp.ne.s32.totalorder %s3341_s12, %s2797_s4  ;;  %p2804_p4 = scmp.lt.u32.totalorder %s2802_s28, %s2797_s4 }
  0xd5   : > { %p2806_p11 = scmp.lt.u32.totalorder %s2797_s4, %s3341_s12 }
  0xd6   : > { %p2800_p7 = pnand %p2799_p3, %p2798_p0  ;;  %p2805_p10 = por %p2804_p4, %p2803_p2 }
  0xd8   : > { %p2801_p9 = pneg %p2800_p7  ;;  %p2807_p12 = por %p2806_p11, %p2805_p10 }
  0xda   : > { %p2808_p1 = pnand %p2807_p12, %p2801_p9 }
  0xdc   : > { %2811 = shalt.err (!%p2808_p1)
}
  0xdd   : > { %s2812_s19 = scalar_lea.vmem %s3349_s21, 256  ;;  %s2973_s17 = smov [#allocation5]  }
  0xde   : > { %p2813_p0 = scmp.ne.s32.totalorder %s3349_s21, %s2812_s19  ;;  %s2817_s3 = sshll.u32 %s2973_s17, 4  ;;  %s2818_s3 = int_to_ptr.vmem [resolvable:$false] %s2817_s3 }
  0xdf   : > { %s2819_s2 = scalar_lea.vmem %s2818_s3, 512  ;;  %p2820_p8 = scmp.lt.s32.totalorder %s3349_s21, %s2818_s3 }
  0xe0   : > { %p2815_p7 = pnand %p2813_p0, %p2799_p3  ;;  %p2821_p2 = scmp.lt.s32.totalorder %s2819_s2, %s2812_s19 }
  0xe2   : > { %p2816_p13 = pneg %p2815_p7  ;;  %p2822_p4 = por %p2821_p2, %p2820_p8 }
  0xe4   : > { %p2823_p10 = pnand %p2822_p4, %p2816_p13 }
  0xe6   : > { %2826 = shalt.err (!%p2823_p10)
}
  0xe7   : > { %s3706_s4 = smov 8   ;;  %s3707_s28 = smov 128  }
  0xe8   : > { %2406 = dma.hbm_to_vmem [thread:$0]  (!%p3345_p6), %s3341_s12, 256, %s3349_s21, %s3351_s5, %s3707_s28, %s3707_s28, %s3706_s4  }
  0xe9   : > { %s3708_s1 = sld [smem:[#allocation27_spill]] }
  0xef   : > { %p3709_p3 = scmp.ne.s32.totalorder %s3708_s1, 0 }
  0xf0   : > { %s472_s17 = sand.u32 (!%p3709_p3), 1, %s2937_s25  }
  0xf1   : > { %470 = sbr.rel (%p3709_p3) target bundleno = 4501 (0x1195), region = 68  ;;  %s2055_s3 = sshll.u32 (!%p3709_p3), %s472_s17, 4 }
  0xf2   : > { %s473_s19 = scalar_lea.sflag (!%p3709_p3), [#allocation6], %s472_s17  ;;  %s3385_s2 = scalar_lea.vmem (!%p3709_p3), [#allocation5], %s2055_s3 }
  0xf8   : > { %2900 = dma.done.wait (%p3306_p5), %s473_s19, 256  }
  0xf9   : > { %2902 = vsyncadd (%p3306_p5), %s473_s19, 4294967040  ;;  %p3710_p8 = scmp.ne.s32.totalorder %s3684_s15, 0 }
  0xfb   : > { %2904 = dma.done.wait (%p3710_p8), [#allocation9], 2048  }
  0xfc   : > { %2906 = vsyncadd (%p3710_p8), [#allocation9], 4294965248 }
  0xfd   : > { %2908 = dma.done.wait (%p3710_p8), [#allocation12], 2048  }
  0xfe   : > { %2910 = vsyncadd (%p3710_p8), [#allocation12], 4294965248 }
  0xff   : > { %2912 = dma.done.wait (%p3710_p8), [#allocation15], 4096  }
 0x100   : > { %2914 = vsyncadd (%p3710_p8), [#allocation15], 4294963200  ;;  %s3711_s5 = sld [smem:[#allocation25_spill]]  ;;  %s3670_s14 = sand.u32 1, %s2925_s22  }
 0x101   : > { %s3407_s12 = sshll.u32 %s3670_s14, 3  ;;  %s3712_s4 = sld [smem:[#allocation29_spill]] }
 0x102   : > { %s543_s1 = scalar_lea.vmem [#allocation17], %s3407_s12  ;;  %s3713_s15 = sld [smem:[#allocation24_spill]] }
 0x106   : > { %p544_p5 = scmp.lt.s32.totalorder %s3711_s5, 1 }
 0x108   : > { %s3745_s5 = smov (!%p544_p5, %s3711_s5), 1  ;;  %p2063_p13 = scmp.ne.s32.totalorder %s3713_s15, 0 }
 0x109   : > { %s546_s28 = scalar_lea.vmem %s3712_s4, %s3745_s5  ;;  %v552_v0 = vld [vmem:[%s3385_s2] sm:$0xff] (!%p2063_p13)  ;;  %v553_v1 = vld [vmem:[%s3385_s2 + $0x8] sm:$0xff] (!%p2063_p13)  ;;  %v2974_v4 = vmov (!%p2063_p13), 0.0   ;;  %vm2975_vm0 = vmmov (!%p2063_p13), 0   ;;  %s3714_s19 = sld [smem:[#allocation30_spill]] (!%p2063_p13) }
 0x10a   : > { %551 = sbr.rel (%p2063_p13) target bundleno = 800 (0x320), region = 100  ;;  %554 = vadd.xlane.f32.xlu0 (!%p2063_p13), %v552_v0  ;;  %v2531_v2 = vld [vmem:[#allocation10] sm:$0xff] (!%p2063_p13)   ;;  %2228 = vmatprep.subr.bf16.mxu0 (!%p2063_p13), %v2974_v4  ;;  %v2533_v13 = vld [vmem:[#allocation10 + $0x8] sm:$0xff] (!%p2063_p13)   ;;  %v2535_v15 = vld [vmem:[#allocation10 + $0x10] sm:$0xff] (!%p2063_p13)   ;;  %s3715_s4 = sld [smem:[#allocation31_spill]] (!%p2063_p13) }
 0x10b   : > { %v2532_v3 = vld [vmem:[#allocation11] sm:$0xff] (!%p2063_p13)   ;;  %2248 = vmatprep.subr.bf16.mxu1 (!%p2063_p13), %v2974_v4  ;;  %2229 = vmatpush3.bf16.msra.mxu0 (!%p2063_p13), %v2531_v2  ;;  %v2534_v14 = vld [vmem:[#allocation11 + $0x8] sm:$0xff] (!%p2063_p13)   ;;  %v2536_v16 = vld [vmem:[#allocation11 + $0x10] sm:$0xff] (!%p2063_p13)  }
 0x10c   : > { %2249 = vmatpush3.bf16.msra.mxu1 (!%p2063_p13), %v2532_v3  ;;  %2230 = vmatprep.subr.bf16.mxu0 (!%p2063_p13), %v2974_v4  ;;  %v2537_v17 = vld [vmem:[#allocation10 + $0x18] sm:$0xff] (!%p2063_p13)   ;;  %v2539_v19 = vld [vmem:[#allocation10 + $0x20] sm:$0xff] (!%p2063_p13)   ;;  %v2541_v21 = vld [vmem:[#allocation10 + $0x28] sm:$0xff] (!%p2063_p13)  }
 0x10d   : > { %2250 = vmatprep.subr.bf16.mxu1 (!%p2063_p13), %v2974_v4  ;;  %v2538_v18 = vld [vmem:[#allocation11 + $0x18] sm:$0xff] (!%p2063_p13)   ;;  %v2540_v20 = vld [vmem:[#allocation11 + $0x20] sm:$0xff] (!%p2063_p13)   ;;  %2244 = vmatprep.mubr.msk.bf16.mxu0 (!%p2063_p13), %vm2975_vm0, %v2974_v4  ;;  %v2542_v22 = vld [vmem:[#allocation11 + $0x28] sm:$0xff] (!%p2063_p13)  }
 0x10e   : > { %556 = vadd.xlane.f32.xlu0 (!%p2063_p13), %v553_v1  ;;  %2264 = vmatprep.mubr.msk.bf16.mxu1 (!%p2063_p13), %vm2975_vm0, %v2974_v4  ;;  %v2543_v23 = vld [vmem:[#allocation10 + $0x30] sm:$0xff] (!%p2063_p13)   ;;  %v2545_v25 = vld [vmem:[#allocation10 + $0x38] sm:$0xff] (!%p2063_p13)  }
 0x10f   : > { %2231 = vmatpush3.bf16.msra.mxu0 (!%p2063_p13), %v2533_v13  ;;  %v2544_v24 = vld [vmem:[#allocation11 + $0x30] sm:$0xff] (!%p2063_p13)   ;;  %v2546_v26 = vld [vmem:[#allocation11 + $0x38] sm:$0xff] (!%p2063_p13)   ;;  %v2064_v35 = vld [vmem:[%s3714_s19] ss:$0 sm:$0xff] (!%p2063_p13) }
 0x110   : > { %2251 = vmatpush3.bf16.msra.mxu1 (!%p2063_p13), %v2534_v14  ;;  %2232 = vmatprep.subr.bf16.mxu0 (!%p2063_p13), %v2974_v4  ;;  %v2065_v39 = vld [vmem:[%s3715_s4] ss:$0 sm:$0xff] (!%p2063_p13) }
 0x111   : > { %2252 = vmatprep.subr.bf16.mxu1 %v2974_v4 }
 0x113   : > { %2233 = vmatpush3.bf16.msra.mxu0 %v2535_v15 }
 0x114   : > { %2253 = vmatpush3.bf16.msra.mxu1 %v2536_v16  ;;  %2234 = vmatprep.subr.bf16.mxu0 %v2974_v4 }
 0x115   : > { %2254 = vmatprep.subr.bf16.mxu1 %v2974_v4 }
 0x117   : > { %2235 = vmatpush3.bf16.msra.mxu0 %v2537_v17 }
 0x118   : > { %2255 = vmatpush3.bf16.msra.mxu1 %v2538_v18  ;;  %2236 = vmatprep.subr.bf16.mxu0 %v2974_v4 }
 0x119   : > { %2256 = vmatprep.subr.bf16.mxu1 %v2974_v4 }
 0x11b   : > { %2237 = vmatpush3.bf16.msra.mxu0 %v2539_v19 }
 0x11c   : > { %2257 = vmatpush3.bf16.msra.mxu1 %v2540_v20  ;;  %2238 = vmatprep.subr.bf16.mxu0 %v2974_v4 }
 0x11d   : > { %2258 = vmatprep.subr.bf16.mxu1 %v2974_v4 }
 0x11f   : > { %2239 = vmatpush3.bf16.msra.mxu0 %v2541_v21 }
 0x120   : > { %2259 = vmatpush3.bf16.msra.mxu1 %v2542_v22  ;;  %2240 = vmatprep.subr.bf16.mxu0 %v2974_v4 }
 0x121   : > { %2260 = vmatprep.subr.bf16.mxu1 %v2974_v4 }
 0x123   : > { %2241 = vmatpush3.bf16.msra.mxu0 %v2543_v23 }
 0x124   : > { %2261 = vmatpush3.bf16.msra.mxu1 %v2544_v24  ;;  %2242 = vmatprep.subr.bf16.mxu0 %v2974_v4 }
 0x125   : > { %2262 = vmatprep.subr.bf16.mxu1 %v2974_v4 }
 0x127   : > { %2243 = vmatpush3.bf16.msra.mxu0 %v2545_v25 }
 0x128   : > { %2263 = vmatpush3.bf16.msra.mxu1 %v2546_v26 }
 0x197   : > { %v555_v5 = vpop.xlane.xlu0 %554 }
 0x198   : > { %v559_v6 = vmul.f32 0.0078125, %v555_v5 }
 0x19a   : > { %v561_v7 = vsub.f32 %v552_v0, %v559_v6 }
 0x19b   : > { %v557_v8 = vpop.xlane.xlu0 %556 }
 0x19c   : > { %v560_v9 = vmul.f32 0.0078125, %v557_v8  ;;  %v563_v10 = vmul.f32 %v561_v7, %v561_v7 }
 0x19e   : > { %v562_v11 = vsub.f32 %v553_v1, %v560_v9  ;;  %565 = vadd.xlane.f32.xlu1 %v563_v10 }
 0x1a0   : > { %v564_v12 = vmul.f32 %v562_v11, %v562_v11 }
 0x1a2   : > { %567 = vadd.xlane.f32.xlu1 %v564_v12 }
 0x22b   : > { %v566_v27 = vpop.xlane.xlu1 %565 }
 0x22c   : > { %v569_v28 = vmul.f32 0.0078125, %v566_v27 }
 0x22e   : > { %v571_v29 = vadd.f32 1e-05, %v569_v28 }
 0x22f   : > { %v568_v30 = vpop.xlane.xlu1 %567 }
 0x230   : > { %2547 = vrsqrt.f32 %v571_v29  ;;  %v570_v31 = vmul.f32 0.0078125, %v568_v30 }
 0x232   : > { %v572_v32 = vadd.f32 1e-05, %v570_v31 }
 0x234   : > { %2549 = vrsqrt.f32 %v572_v32 }
 0x23a   : > { %v2548_v33 = vpop.eup %2547 }
 0x23b   : > { %v575_v34 = vmul.f32 %v2548_v33, %v561_v7 }
 0x23d   : > { %v584_v38 = vmul.f32 %v2064_v35, %v575_v34 }
 0x23e   : > { %v2550_v36 = vpop.eup %2549 }
 0x23f   : > { %v576_v37 = vmul.f32 %v2550_v36, %v562_v11  ;;  %v593_v41 = vadd.f32 %v2065_v39, %v584_v38 }
 0x241   : > { %v585_v40 = vmul.f32 %v2064_v35, %v576_v37 }
 0x243   : > { %v594_v42 = vadd.f32 %v2065_v39, %v585_v40 }
 0x245   : > { %v595_v43 = vpack.c.bf16 %v594_v42, %v593_v41 }
 0x247   : > { %2245 = vmatmul.mubr.bf16.vlgmr.msra.gmra.mrb[0].mxu0 %v595_v43  ;;  %2265 = vmatmul.mubr.bf16.vlgmr.msra.gmra.mrb[0].mxu1 %v595_v43 }
 0x31a   : > { %v694_v44 = vpop.f32.mrb[0].mxu0  ;;  %v801_v45 = vpop.f32.mrb[0].mxu1 }
 0x31b   : > { %v2246_v46 = vpop.f32.mrb[1].mxu0  ;;  %v2266_v47 = vpop.f32.mrb[1].mxu1 }
 0x31c   : > { %v697_v48 = vpop.f32.mrb[2].mxu0  ;;  %v804_v49 = vpop.f32.mrb[2].mxu1 }
 0x31d   : > { %v701_v50 = vpack.c.bf16 %v697_v48, %v694_v44  ;;  %v808_v51 = vpack.c.bf16 %v804_v49, %v801_v45  ;;  %v2247_v52 = vpop.f32.mrb[3].mxu0  ;;  %v2267_v53 = vpop.f32.mrb[3].mxu1 }
 0x31f   : > { %702 = vst [vmem:[#allocation2] sm:$0xff] %v701_v50  ;;  %809 = vst [vmem:[#allocation3] sm:$0xff] %v808_v51 }
 0x320 PF: > { %s3716_s15 = sld [smem:[#allocation24_spill]]  ;;  %v2551_v55 = vld [vmem:[#allocation8] sm:$0xff]   ;;  %v2552_v56 = vld [vmem:[#allocation8 + $0x8] sm:$0xff]   ;;  %v2976_v57 = vmov 0.0   ;;  %v2553_v62 = vld [vmem:[#allocation8 + $0x10] sm:$0xff]   ;;  %vm2977_vm1 = vmmov 0   ;;  %v951_v21 = vlaneseq }
 0x321   : > { %2268 = vmatprep.subr.bf16.mxu0 %v2976_v57  ;;  %2288 = vmatprep.subr.bf16.mxu1 %v2976_v57  ;;  %v2554_v63 = vld [vmem:[#allocation8 + $0x18] sm:$0xff]   ;;  %v2555_v0 = vld [vmem:[#allocation8 + $0x20] sm:$0xff]   ;;  %v2556_v1 = vld [vmem:[#allocation8 + $0x28] sm:$0xff]   ;;  %vm957_vm2 = vcmask 261120   ;;  %s3717_s21 = sld [smem:[#allocation30_spill]]  ;;  %vm1004_vm4 = vcmask 130048  }
 0x322   : > { %2269 = vmatpush3.bf16.msra.mxu0 %v2551_v55  ;;  %2284 = vmatprep.mubr.msk.bf16.mxu0 %vm2977_vm1, %v2976_v57  ;;  %v2557_v2 = vld [vmem:[#allocation8 + $0x30] sm:$0xff]   ;;  %v2558_v3 = vld [vmem:[#allocation8 + $0x38] sm:$0xff]   ;;  %v947_v22 = vld [vmem:[%s546_s28] sm:$0x1]  ;;  %v3470_v23 = vshrl.u32 %v951_v21, 7  ;;  %s2978_s5 = smov 96  }
 0x323   : > { %2270 = vmatprep.subr.bf16.mxu0 %v2976_v57  ;;  %2290 = vmatprep.mubr.msk.bf16.mxu1 %vm2977_vm1, %v2976_v57  ;;  %vm948_vm3 = vcmp.eq.f32.partialorder %v947_v22, 0.0  ;;  %vm1062_vm5 = vcmask 257024   ;;  %s2979_s28 = smov 64   ;;  %vm1184_vm6 = vcmask 519424   ;;  %vm1305_vm7 = vcmask 781824   ;;  %s1890_s4 = sshll.u32 %s543_s1, 4  ;;  %s3577_s4 = int_to_ptr.vmem [resolvable:$true] %s1890_s4 }
 0x324   : > { %v953_v24 = vsub.s32 0, %v3470_v23  ;;  %v949_v25 = vsel %vm948_vm3, -1e+09, %v2976_v57  ;;  %vm1426_vm8 = vcmask 1044224   ;;  %p3725_p9 = scmp.ne.s32.totalorder %s3702_s16, 0 }
 0x326   : > { %s2082_s17 = sshll.u32 %s3716_s15, 3  ;;  %2271 = vmatpush3.bf16.msra.mxu0 %v2552_v56  ;;  %v3446_v4 = vld [vmem:[#allocation2] sm:$0xff]  ;;  %v3476_v26 = vrot.slane %v949_v25, %v953_v24  ;;  %v3485_v38 = vld [vmem:[#allocation3] sm:$0xff] }
 0x327   : > { %s811_s3 = scalar_lea.vmem %s3385_s2, %s2082_s17 [#allocation5]  ;;  %2272 = vmatprep.subr.bf16.mxu0 %v2976_v57  ;;  %v962_v5 = vsel %vm957_vm2, %v3446_v4, 0  ;;  %v2083_v10 = vld [vmem:[%s3717_s21] ss:$0 sm:$0xff]  ;;  %s3718_s17 = sld [smem:[#allocation31_spill]] }
 0x328   : > { %v3428_v54 = vld [vmem:[%s811_s3] sm:$0xff]  ;;  %2289 = vmatpush3.bf16.xpose.msra.mxu1 %v962_v5  ;;  %s2980_s21 = smov 32   ;;  %s3721_s3 = sld [smem:[#allocation25_spill]] }
 0x329   : > { %813 = vadd.xlane.f32.xlu0 %v3428_v54  ;;  %2294 = vmatprep.subr.bf16.mxu1 %v2976_v57 }
 0x32a   : > { %2273 = vmatpush3.bf16.msra.mxu0 %v2553_v62 }
 0x32b   : > { %2274 = vmatprep.subr.bf16.mxu0 %v2976_v57 }
 0x32d   : > { %v2084_v12 = vld [vmem:[%s3718_s17] ss:$0 sm:$0xff]  ;;  %s3720_s17 = sld [smem:[#allocation35_spill]] }
 0x32e   : > { %2275 = vmatpush3.bf16.msra.mxu0 %v2554_v63  ;;  %s2146_s2 = sshll.u32 %s3721_s3, 1  ;;  %s3723_s3 = sld [smem:[#allocation37_spill]] }
 0x32f   : > { %2276 = vmatprep.subr.bf16.mxu0 %v2976_v57  ;;  %s1886_s19 = sadd.s32 %s3716_s15, %s2146_s2  ;;  %s3724_s15 = sand.u32 1, %s2925_s22  }
 0x330   : > { %s2147_s24 = sshll.u32 %s1886_s19, 7  ;;  %s1875_s2 = scalar_lea.sflag [#allocation7], %s3724_s15 }
 0x331   : > { %s2827_s19 = scalar_lea.vmem %s3577_s4, 128 }
 0x332   : > { %2277 = vmatpush3.bf16.msra.mxu0 %v2555_v0  ;;  %p2828_p6 = scmp.ne.s32.totalorder %s3577_s4, %s2827_s19 }
 0x333   : > { %2278 = vmatprep.subr.bf16.mxu0 %v2976_v57 }
 0x334   : > { %s3575_s6 = scalar_lea.hbm %s3723_s3, %s2147_s24  ;;  %p2829_p11 = pnand %p2828_p6, %p3725_p9 }
 0x336   : > { %2279 = vmatpush3.bf16.msra.mxu0 %v2556_v1  ;;  %p2830_p12 = pneg %p2829_p11 }
 0x337   : > { %2280 = vmatprep.subr.bf16.mxu0 %v2976_v57 }
 0x33a   : > { %2281 = vmatpush3.bf16.msra.mxu0 %v2557_v2 }
 0x33b   : > { %2282 = vmatprep.subr.bf16.mxu0 %v2976_v57 }
 0x33e   : > { %2283 = vmatpush3.bf16.msra.mxu0 %v2558_v3 }
 0x33f   : > { %2336 = vmatprep.subr.bf16.mxu0 %v2976_v57 }
 0x3b6   : > { %v814_v58 = vpop.xlane.xlu0 %813 }
 0x3b7   : > { %v816_v59 = vmul.f32 0.0078125, %v814_v58 }
 0x3b9   : > { %v817_v60 = vsub.f32 %v3428_v54, %v816_v59 }
 0x3bb   : > { %v818_v61 = vmul.f32 %v817_v60, %v817_v60 }
 0x3bd   : > { %819 = vadd.xlane.f32.xlu0 %v818_v61 }
 0x3d3   : > { %1069 = vrot.lane.b32.xlu0 %v3446_v4, %s2978_s5 }
 0x44a   : > { %v820_v6 = vpop.xlane.xlu0 %819 }
 0x44b   : > { %v821_v7 = vmul.f32 0.0078125, %v820_v6 }
 0x44d   : > { %v822_v8 = vadd.f32 1e-05, %v821_v7 }
 0x44e   : > { %v1070_v41 = vpop.permute.xlu0 %1069 }
 0x44f   : > { %2607 = vrsqrt.f32 %v822_v8  ;;  %v1075_v43 = vsel %vm957_vm2, %v1070_v41, 0 }
 0x459   : > { %v2608_v9 = vpop.eup %2607 }
 0x45a   : > { %v824_v11 = vmul.f32 %v2608_v9, %v817_v60 }
 0x45c   : > { %v832_v13 = vmul.f32 %v2083_v10, %v824_v11 }
 0x45e   : > { %v840_v14 = vadd.f32 %v2084_v12, %v832_v13 }
 0x460   : > { %v841_v15 = vpack.c.bf16 %v840_v14, %v840_v14 }
 0x462   : > { %2285 = vmatmul.mubr.bf16.vlgmr.msra.gmra.mrb[0].mxu0 %v841_v15 }
 0x463   : > { %2352 = vmatprep.mubr.msk.bf16.mxu0 %vm2977_vm1, %v2976_v57 }
 0x535   : > { %v940_v16 = vpop.f32.mrb[0].mxu0 }
 0x536   : > { %v3459_v17 = vpack.c.bf16 %v940_v16, %v940_v16  ;;  %v2286_v18 = vpop.f32.mrb[1].mxu0 }
 0x537   : > { %v943_v19 = vpop.f32.mrb[2].mxu0 }
 0x538   : > { %v2287_v20 = vpop.f32.mrb[3].mxu0  ;;  %2291 = vmatmul.mubr.msk.bf16.vlgmr.msra.gmra.mrb[0].mxu1 %vm957_vm2, %v3459_v17 }
 0x539   : > { %2296 = vmatprep.mubr.msk.bf16.mxu1 %vm2977_vm1, %v2976_v57  ;;  %2295 = vmatpush3.bf16.msra.mxu1 %v3485_v38 }
 0x53a   : > { %2300 = vmatprep.subr.bf16.mxu1 %v2976_v57 }
 0x60b   : > { %v998_v27 = vpop.f32.mrb[0].mxu1 }
 0x60c   : > { %v999_v28 = vadd.f32 %v998_v27, %v3476_v26  ;;  %v2292_v29 = vpop.f32.mrb[1].mxu1 }
 0x60d   : > { %v1001_v30 = vpop.f32.mrb[2].mxu1 }
 0x60e   : > { %v2293_v31 = vpop.f32.mrb[3].mxu1  ;;  %v1005_v32 = vsel %vm1004_vm4, %v999_v28, -inf }
 0x60f   : > { %1006 = vmax.xlane.f32.xlu1 %v1005_v32 }
 0x69c   : > { %v1007_v33 = vpop.xlane.xlu1 %1006 }
 0x69d   : > { %v1008_v34 = vsub.f32 %v999_v28, %v1007_v33 }
 0x69f   : > { %v1009_v35 = vmul.f32 1.442695, %v1008_v34 }
 0x6a1   : > { %2609 = vpow2.f32 %v1009_v35 }
 0x6ab   : > { %v2610_v36 = vpop.eup %2609 }
 0x6ac   : > { %v1011_v37 = vsel %vm1004_vm4, %v2610_v36, 0.0 }
 0x6ad   : > { %1012 = vadd.xlane.f32.xlu1 %v1011_v37 }
 0x6be   : > { %1066 = vrot.lane.b32.xlu1 %v3459_v17, %s2978_s5 }
 0x73a   : > { %v1013_v39 = vpop.xlane.xlu1 %1012 }
 0x73b   : > { %2611 = vrcp.f32 %v1013_v39 }
 0x73e   : > { %v1067_v45 = vpop.permute.xlu1 %1066 }
 0x745   : > { %v2612_v40 = vpop.eup %2611 }
 0x746   : > { %v1015_v42 = vmul.f32 %v2612_v40, %v2610_v36 }
 0x748   : > { %v1016_v44 = vpack.c.bf16 %v1015_v42, %v1015_v42 }
 0x74a   : > { %2297 = vmatmul.mubr.msk.bf16.vlgmr.msra.gmra.mrb[4].mxu1 %vm1004_vm4, %v1016_v44 }
 0x74b   : > { %2301 = vmatpush3.bf16.xpose.msra.mxu1 %v1075_v43  ;;  %2302 = vmatprep.mubr.msk.bf16.mxu1 %vm2977_vm1, %v2976_v57 }
 0x74c   : > { %2306 = vmatprep.subr.bf16.mxu1 %v2976_v57 }
 0x752   : > { %2303 = vmatmul.mubr.msk.bf16.vlgmr.msra.gmra.mrb[8].mxu1 %vm957_vm2, %v1067_v45 }
 0x753   : > { %2308 = vmatprep.mubr.msk.bf16.mxu1 %vm2977_vm1, %v2976_v57 }
 0x81d   : > { %v1055_v46 = vpop.f32.mrb[4].mxu1 }
 0x81e   : > { %v1061_v47 = vpack.c.bf16 %v1055_v46, %v1055_v46  ;;  %v2298_v48 = vpop.f32.mrb[5].mxu1 }
 0x81f   : > { %v1058_v49 = vpop.f32.mrb[6].mxu1 }
 0x820   : > { %1063 = vst.msk [vmem:[#allocation4] sm:$0xf] %vm1062_vm5, %v1061_v47  ;;  %v2299_v50 = vpop.f32.mrb[7].mxu1 }
 0x825   : > { %v1111_v51 = vpop.f32.mrb[8].mxu1 }
 0x826   : > { %v1112_v52 = vadd.f32 %v1111_v51, %v3476_v26  ;;  %v2304_v53 = vpop.f32.mrb[9].mxu1 }
 0x827   : > { %v1114_v55 = vpop.f32.mrb[10].mxu1 }
 0x828   : > { %v2305_v56 = vpop.f32.mrb[11].mxu1  ;;  %v1117_v58 = vsel %vm1004_vm4, %v1112_v52, -inf }
 0x829   : > { %1118 = vmax.xlane.f32.xlu1 %v1117_v58 }
 0x83a   : > { %1190 = vrot.lane.b32.xlu1 %v3446_v4, %s2979_s28 }
 0x83e   : > { %1187 = vrot.lane.b32.xlu1 %v3459_v17, %s2979_s28 }
 0x8b6   : > { %v1119_v59 = vpop.xlane.xlu1 %1118 }
 0x8b7   : > { %v1120_v60 = vsub.f32 %v1112_v52, %v1119_v59  ;;  %v2559_v59 = vld [vmem:[#allocation13] sm:$0xff]  }
 0x8b8   : > { %2337 = vmatpush3.bf16.msra.mxu0 %v2559_v59 }
 0x8b9   : > { %v1121_v61 = vmul.f32 1.442695, %v1120_v60  ;;  %v2560_v60 = vld [vmem:[#allocation13 + $0x8] sm:$0xff]   ;;  %2338 = vmatprep.subr.bf16.mxu0 %v2976_v57 }
 0x8ba   : > { %v1191_v5 = vpop.permute.xlu1 %1190 }
 0x8bb   : > { %2613 = vpow2.f32 %v1121_v61  ;;  %v1196_v6 = vsel %vm957_vm2, %v1191_v5, 0  ;;  %v2561_v61 = vld [vmem:[#allocation13 + $0x10] sm:$0xff]   ;;  %v2569_v5 = vld [vmem:[#allocation14 + $0x4] ss:$8 sps:$4 sm:$0xff]  }
 0x8bc   : > { %2339 = vmatpush3.bf16.msra.mxu0 %v2560_v60 }
 0x8bd   : > { %2340 = vmatprep.subr.bf16.mxu0 %v2976_v57 }
 0x8be   : > { %v1188_v8 = vpop.permute.xlu1 %1187 }
 0x8c0   : > { %2341 = vmatpush3.bf16.msra.mxu0 %v2561_v61 }
 0x8c1   : > { %2342 = vmatprep.subr.bf16.mxu0 %v2976_v57 }
 0x8c5   : > { %v2614_v62 = vpop.eup %2613 }
 0x8c6   : > { %v1123_v63 = vsel %vm1004_vm4, %v2614_v62, 0.0 }
 0x8c7   : > { %1124 = vadd.xlane.f32.xlu0 %v1123_v63  ;;  %v2563_v63 = vld [vmem:[#allocation13 + $0x20] sm:$0xff]  }
 0x8dd   : > { %1131 = vrot.lane.b32.xlu0 %v3485_v38, %s2978_s5 }
 0x954   : > { %v1125_v0 = vpop.xlane.xlu0 %1124 }
 0x955   : > { %2615 = vrcp.f32 %v1125_v0  ;;  %v2564_v0 = vld [vmem:[#allocation13 + $0x28] sm:$0xff]  }
 0x958   : > { %v1132_v1 = vpop.permute.xlu0 %1131 }
 0x959   : > { %2307 = vmatpush3.bf16.msra.mxu1 %v1132_v1  ;;  %v2565_v1 = vld [vmem:[#allocation13 + $0x30] sm:$0xff]  }
 0x95a   : > { %2312 = vmatprep.subr.bf16.mxu1 %v2976_v57 }
 0x95f   : > { %v2616_v2 = vpop.eup %2615 }
 0x960   : > { %v1127_v3 = vmul.f32 %v2616_v2, %v2614_v62  ;;  %v2562_v62 = vld [vmem:[#allocation13 + $0x18] sm:$0xff]  }
 0x961   : > { %2343 = vmatpush3.bf16.msra.mxu0 %v2562_v62  ;;  %v2566_v2 = vld [vmem:[#allocation13 + $0x38] sm:$0xff]  }
 0x962   : > { %v1128_v7 = vpack.c.bf16 %v1127_v3, %v1127_v3  ;;  %2344 = vmatprep.subr.bf16.mxu0 %v2976_v57  ;;  %v2567_v3 = vld [vmem:[#allocation14] ss:$8 sps:$4 sm:$0xff]  }
 0x964   : > { %2309 = vmatmul.mubr.msk.bf16.vlgmr.msra.gmra.mrb[12].mxu1 %vm1004_vm4, %v1128_v7 }
 0x965   : > { %2313 = vmatpush3.bf16.xpose.msra.mxu1 %v1196_v6  ;;  %2314 = vmatprep.mubr.msk.bf16.mxu1 %vm2977_vm1, %v2976_v57  ;;  %v2572_v6 = vld [vmem:[#allocation14 + $0x14] ss:$8 sps:$4 sm:$0xff]  }
 0x966   : > { %2318 = vmatprep.subr.bf16.mxu1 %v2976_v57  ;;  %2345 = vmatpush3.bf16.msra.mxu0 %v2563_v63 }
 0x967   : > { %2346 = vmatprep.subr.bf16.mxu0 %v2976_v57 }
 0x96a   : > { %2347 = vmatpush3.bf16.msra.mxu0 %v2564_v0 }
 0x96b   : > { %2348 = vmatprep.subr.bf16.mxu0 %v2976_v57 }
 0x96c   : > { %2315 = vmatmul.mubr.msk.bf16.vlgmr.msra.gmra.mrb[16].mxu1 %vm957_vm2, %v1188_v8 }
 0x96d   : > { %2320 = vmatprep.mubr.msk.bf16.mxu1 %vm2977_vm1, %v2976_v57 }
 0x96e   : > { %2349 = vmatpush3.bf16.msra.mxu0 %v2565_v1 }
 0x96f   : > { %2350 = vmatprep.subr.bf16.mxu0 %v2976_v57 }
 0x972   : > { %2351 = vmatpush3.bf16.msra.mxu0 %v2566_v2 }
 0xa37   : > { %v3515_v9 = vpop.f32.mrb[12].mxu1 }
 0xa38   : > { %v2310_v10 = vpop.f32.mrb[13].mxu1  ;;  %v2151_v51 = vpack.c.bf16 %v3515_v9, %v3515_v9 }
 0xa39   : > { %v1174_v11 = vpop.f32.mrb[14].mxu1  ;;  %v2570_v10 = vld [vmem:[#allocation14 + $0x10] ss:$8 sps:$4 sm:$0xff]  }
 0xa3a   : > { %v2311_v12 = vpop.f32.mrb[15].mxu1 }
 0xa3b   : > { %v2575_v12 = vld [vmem:[#allocation14 + $0x24] ss:$8 sps:$4 sm:$0xff]  }
 0xa3f   : > { %v1232_v13 = vpop.f32.mrb[16].mxu1 }
 0xa40   : > { %v1233_v14 = vadd.f32 %v1232_v13, %v3476_v26  ;;  %v2316_v15 = vpop.f32.mrb[17].mxu1 }
 0xa41   : > { %v1235_v16 = vpop.f32.mrb[18].mxu1  ;;  %v2576_v15 = vld [vmem:[#allocation14 + $0x30] ss:$8 sps:$4 sm:$0xff]  }
 0xa42   : > { %v2317_v18 = vpop.f32.mrb[19].mxu1  ;;  %v1238_v19 = vsel %vm1004_vm4, %v1233_v14, -inf  ;;  %v2581_v16 = vld [vmem:[#allocation14 + $0x44] ss:$8 sps:$4 sm:$0xff]  }
 0xa43   : > { %1239 = vmax.xlane.f32.xlu1 %v1238_v19  ;;  %v2579_v18 = vld [vmem:[#allocation14 + $0x40] ss:$8 sps:$4 sm:$0xff]   ;;  %v2584_v19 = vld [vmem:[#allocation14 + $0x54] ss:$8 sps:$4 sm:$0xff]  }
 0xa54   : > { %1311 = vrot.lane.b32.xlu1 %v3446_v4, %s2980_s21 }
 0xa58   : > { %1308 = vrot.lane.b32.xlu1 %v3459_v17, %s2980_s21 }
 0xad0   : > { %v1240_v20 = vpop.xlane.xlu1 %1239 }
 0xad1   : > { %v1241_v21 = vsub.f32 %v1233_v14, %v1240_v20  ;;  %v2573_v14 = vld [vmem:[#allocation14 + $0x20] ss:$8 sps:$4 sm:$0xff]   ;;  %v2582_v20 = vld [vmem:[#allocation14 + $0x50] ss:$8 sps:$4 sm:$0xff]  }
 0xad3   : > { %v1242_v22 = vmul.f32 1.442695, %v1241_v21  ;;  %v2587_v21 = vld [vmem:[#allocation14 + $0x64] ss:$8 sps:$4 sm:$0xff]  }
 0xad4   : > { %v1312_v17 = vpop.permute.xlu1 %1311 }
 0xad5   : > { %2617 = vpow2.f32 %v1242_v22  ;;  %v1317_v31 = vsel %vm957_vm2, %v1312_v17, 0  ;;  %v2585_v22 = vld [vmem:[#allocation14 + $0x60] ss:$8 sps:$4 sm:$0xff]  }
 0xad6   : > { %v2592_v17 = vld [vmem:[#allocation16] sm:$0xff]  }
 0xad8   : > { %v1309_v33 = vpop.permute.xlu1 %1308 }
 0xadf   : > { %v2618_v25 = vpop.eup %2617 }
 0xae0   : > { %v1244_v27 = vsel %vm1004_vm4, %v2618_v25, 0.0 }
 0xae1   : > { %1245 = vadd.xlane.f32.xlu0 %v1244_v27 }
 0xaf7   : > { %1252 = vrot.lane.b32.xlu0 %v3485_v38, %s2979_s28 }
 0xb6e   : > { %v1246_v28 = vpop.xlane.xlu0 %1245 }
 0xb6f   : > { %2619 = vrcp.f32 %v1246_v28  ;;  %v2590_v28 = vld [vmem:[#allocation14 + $0x74] ss:$8 sps:$4 sm:$0xff]  }
 0xb72   : > { %v1253_v29 = vpop.permute.xlu0 %1252 }
 0xb73   : > { %2319 = vmatpush3.bf16.msra.mxu1 %v1253_v29  ;;  %v2588_v29 = vld [vmem:[#allocation14 + $0x70] ss:$8 sps:$4 sm:$0xff]  }
 0xb74   : > { %2324 = vmatprep.subr.bf16.mxu1 %v2976_v57 }
 0xb79   : > { %v2620_v4 = vpop.eup %2619 }
 0xb7a   : > { %v1248_v30 = vmul.f32 %v2620_v4, %v2618_v25  ;;  %v2981_v4 = vmov 0  }
 0xb7c   : > { %v1249_v32 = vpack.c.bf16 %v1248_v30, %v1248_v30  ;;  %v2591_v30 = vld [vmem:[#allocation16 + $0x40] sm:$0xff]  }
 0xb7d   : > { %2206 = vmatprep.subr.bf16.mxu0 %v2591_v30 }
 0xb7e   : > { %2321 = vmatmul.mubr.msk.bf16.vlgmr.msra.gmra.mrb[20].mxu1 %vm1004_vm4, %v1249_v32  ;;  %v2594_v32 = vld [vmem:[#allocation16 + $0x8] sm:$0xff]  }
 0xb7f   : > { %2325 = vmatpush3.bf16.xpose.msra.mxu1 %v1317_v31  ;;  %2326 = vmatprep.mubr.msk.bf16.mxu1 %vm2977_vm1, %v2976_v57  ;;  %v2593_v31 = vld [vmem:[#allocation16 + $0x48] sm:$0xff]  }
 0xb80   : > { %2330 = vmatprep.subr.bf16.mxu1 %v2976_v57 }
 0xb86   : > { %2327 = vmatmul.mubr.msk.bf16.vlgmr.msra.gmra.mrb[24].mxu1 %vm957_vm2, %v1309_v33 }
 0xb87   : > { %2332 = vmatprep.mubr.msk.bf16.mxu1 %vm2977_vm1, %v2976_v57  ;;  %v2578_v57 = vld [vmem:[#allocation14 + $0x34] ss:$8 sps:$4 sm:$0xff]  }
 0xc51   : > { %v1292_v34 = vpop.f32.mrb[20].mxu1 }
 0xc52   : > { %v2322_v35 = vpop.f32.mrb[21].mxu1  ;;  %v2152_v45 = vpack.c.bf16 %v1292_v34, %v1292_v34 }
 0xc53   : > { %v1295_v36 = vpop.f32.mrb[22].mxu1 }
 0xc54   : > { %v2323_v37 = vpop.f32.mrb[23].mxu1 }
 0xc59   : > { %v1353_v39 = vpop.f32.mrb[24].mxu1 }
 0xc5a   : > { %v1354_v40 = vadd.f32 %v1353_v39, %v3476_v26  ;;  %v2328_v41 = vpop.f32.mrb[25].mxu1 }
 0xc5b   : > { %v1356_v42 = vpop.f32.mrb[26].mxu1  ;;  %v2596_v41 = vld [vmem:[#allocation16 + $0x10] sm:$0xff]  }
 0xc5c   : > { %v2329_v43 = vpop.f32.mrb[27].mxu1  ;;  %v1359_v44 = vsel %vm1004_vm4, %v1354_v40, -inf  ;;  %v2597_v42 = vld [vmem:[#allocation16 + $0x58] sm:$0xff]  }
 0xc5d   : > { %1360 = vmax.xlane.f32.xlu0 %v1359_v44  ;;  %v2598_v43 = vld [vmem:[#allocation16 + $0x18] sm:$0xff]   ;;  %v2599_v44 = vld [vmem:[#allocation16 + $0x60] sm:$0xff]  }
 0xc73   : > { %1373 = vrot.lane.b32.xlu0 %v3485_v38, %s2980_s21 }
 0xc77   : > { %1302 = vrot.lane.b32.xlu0 %v2152_v45, %s2979_s28  ;;  %v2600_v45 = vld [vmem:[#allocation16 + $0x20] sm:$0xff]  }
 0xcea   : > { %v1361_v46 = vpop.xlane.xlu0 %1360 }
 0xceb   : > { %v1362_v47 = vsub.f32 %v1354_v40, %v1361_v46  ;;  %v2595_v40 = vld [vmem:[#allocation16 + $0x50] sm:$0xff]   ;;  %v2602_v46 = vld [vmem:[#allocation16 + $0x28] sm:$0xff]  }
 0xced   : > { %v1363_v48 = vmul.f32 1.442695, %v1362_v47  ;;  %v2603_v47 = vld [vmem:[#allocation16 + $0x70] sm:$0xff]  }
 0xcee   : > { %v1374_v49 = vpop.permute.xlu0 %1373 }
 0xcef   : > { %2621 = vpow2.f32 %v1363_v48  ;;  %2331 = vmatpush3.bf16.msra.mxu1 %v1374_v49  ;;  %v2604_v48 = vld [vmem:[#allocation16 + $0x30] sm:$0xff]   ;;  %v2605_v49 = vld [vmem:[#allocation16 + $0x78] sm:$0xff]  }
 0xcf0   : > { %1643 = vmatprep.subr.bf16.mxu1 %v2569_v5 }
 0xcf2   : > { %v1303_v53 = vpop.permute.xlu0 %1302 }
 0xcf9   : > { %v2622_v50 = vpop.eup %2621 }
 0xcfa   : > { %v1365_v26 = vsel %vm1004_vm4, %v2622_v50, 0.0 }
 0xcfb   : > { %1366 = vadd.xlane.f32.xlu1 %v1365_v26  ;;  %v1551_v26 = vld [vmem:[%s3720_s17] sm:$0x3] }
 0xd0c   : > { %1181 = vrot.lane.b32.xlu1 %v2151_v51, %s2980_s21  ;;  %v1559_v51 = vsub.s32 1, %v3470_v23  ;;  %s3722_s21 = sld [smem:[#allocation36_spill]] }
 0xd88   : > { %v1367_v52 = vpop.xlane.xlu1 %1366 }
 0xd89   : > { %2623 = vrcp.f32 %v1367_v52  ;;  %v1556_v52 = vrot.slane %v1551_v26, %v953_v24 }
 0xd8c   : > { %v1182_v38 = vpop.permute.xlu1 %1181 }
 0xd8d   : > { %1185 = vst.msk [vmem:[#allocation4] sm:$0xf] %vm1184_vm6, %v1182_v38  ;;  %v1560_v38 = vrot.slane %v1551_v26, %v1559_v51 }
 0xd8e   : > { %1306 = vst.msk [vmem:[#allocation4] sm:$0xf] %vm1305_vm7, %v1303_v53 }
 0xd93   : > { %v2624_v55 = vpop.eup %2623 }
 0xd94   : > { %v1369_v56 = vmul.f32 %v2624_v55, %v2622_v50  ;;  %v2606_v50 = vld [vmem:[#allocation16 + $0x38] sm:$0xff]  }
 0xd96   : > { %v1370_v58 = vpack.c.bf16 %v1369_v56, %v1369_v56 }
 0xd98   : > { %2333 = vmatmul.mubr.msk.bf16.vlgmr.msra.gmra.mrb[28].mxu1 %vm1004_vm4, %v1370_v58 }
 0xd99   : > { %1644 = vmatpush1.bf16.msra.mxu1 %v2567_v3  ;;  %1675 = vmatprep.mubr.bf16.mxu1 %v2981_v4 }
 0xd9a   : > { %1645 = vmatprep.subr.bf16.mxu1 %v2572_v6 }
 0xd9d   : > { %1646 = vmatpush1.bf16.msra.mxu1 %v2570_v10 }
 0xd9e   : > { %1647 = vmatprep.subr.bf16.mxu1 %v2575_v12 }
 0xda1   : > { %1648 = vmatpush1.bf16.msra.mxu1 %v2573_v14 }
 0xda2   : > { %1649 = vmatprep.subr.bf16.mxu1 %v2578_v57 }
 0xda5   : > { %1650 = vmatpush1.bf16.msra.mxu1 %v2576_v15 }
 0xda6   : > { %1651 = vmatprep.subr.bf16.mxu1 %v2581_v16 }
 0xda9   : > { %1652 = vmatpush1.bf16.msra.mxu1 %v2579_v18 }
 0xdaa   : > { %1653 = vmatprep.subr.bf16.mxu1 %v2584_v19 }
 0xdad   : > { %1654 = vmatpush1.bf16.msra.mxu1 %v2582_v20 }
 0xdae   : > { %1655 = vmatprep.subr.bf16.mxu1 %v2587_v21 }
 0xdb1   : > { %1656 = vmatpush1.bf16.msra.mxu1 %v2585_v22 }
 0xdb2   : > { %1657 = vmatprep.subr.bf16.mxu1 %v2590_v28 }
 0xdb5   : > { %1658 = vmatpush1.bf16.msra.mxu1 %v2588_v29 }
 0xe6b   : > { %v1413_v7 = vpop.f32.mrb[28].mxu1 }
 0xe6c   : > { %v2153_v8 = vpack.c.bf16 %v1413_v7, %v1413_v7  ;;  %v2334_v9 = vpop.f32.mrb[29].mxu1 }
 0xe6d   : > { %v1416_v11 = vpop.f32.mrb[30].mxu1 }
 0xe6e   : > { %1423 = vrot.lane.b32.xlu1 %v2153_v8, %s2978_s5  ;;  %v2335_v13 = vpop.f32.mrb[31].mxu1  ;;  %s2982_s5 = smov [#allocation17]  }
 0xe6f   : > { %v2144_v13 = vld [vmem:[%s3722_s21] ss:$0 sm:$0xff]  ;;  %s2831_s28 = sshll.u32 %s2982_s5, 4  ;;  %s2832_s28 = int_to_ptr.vmem [resolvable:$false] %s2831_s28 }
 0xe70   : > { %s2833_s14 = scalar_lea.vmem %s2832_s28, 256  ;;  %p2834_p1 = scmp.lt.s32.totalorder %s3577_s4, %s2832_s28 }
 0xe71   : > { %p2835_p0 = scmp.lt.s32.totalorder %s2833_s14, %s2827_s19 }
 0xe73   : > { %p2836_p7 = por %p2835_p0, %p2834_p1 }
 0xe75   : > { %p2837_p2 = pnand %p2836_p7, %p2830_p12 }
 0xee0   : > { %v1424_v25 = vpop.permute.xlu1 %1423 }
 0xee1   : > { %1427 = vst.msk [vmem:[#allocation4] sm:$0xf] %vm1426_vm8, %v1424_v25 }
 0xee8   : > { %v1428_v27 = vld [vmem:[#allocation4] sm:$0xf] }
 0xee9   : > { %2353 = vmatmul.mubr.bf16.vlgmr.msra.gmra.mrb[4].mxu0 %v1428_v27 }
 0xeea   : > { %2207 = vmatpush3.bf16.msra.mxu0 %v2592_v17 }
 0xeeb   : > { %2208 = vmatprep.subr.bf16.mxu0 %v2593_v31 }
 0xeee   : > { %2209 = vmatpush3.bf16.msra.mxu0 %v2594_v32 }
 0xeef   : > { %2210 = vmatprep.subr.bf16.mxu0 %v2595_v40 }
 0xef2   : > { %2211 = vmatpush3.bf16.msra.mxu0 %v2596_v41 }
 0xef3   : > { %2212 = vmatprep.subr.bf16.mxu0 %v2597_v42 }
 0xef6   : > { %2213 = vmatpush3.bf16.msra.mxu0 %v2598_v43 }
 0xef7   : > { %2214 = vmatprep.subr.bf16.mxu0 %v2599_v44 }
 0xefa   : > { %2215 = vmatpush3.bf16.msra.mxu0 %v2600_v45 }
 0xfbc   : > { %v1527_v33 = vpop.f32.mrb[4].mxu0 }
 0xfbd   : > { %v3554_v34 = vadd.f32 %v1527_v33, %v3428_v54  ;;  %v2354_v35 = vpop.f32.mrb[5].mxu0  ;;  %v2601_v54 = vld [vmem:[#allocation16 + $0x68] sm:$0xff]  }
 0xfbe   : > { %v1530_v36 = vpop.f32.mrb[6].mxu0  ;;  %2216 = vmatprep.subr.bf16.mxu0 %v2601_v54 }
 0xfbf   : > { %v1534_v37 = vpack.c.bf16 %v3554_v34, %v3554_v34  ;;  %v2355_v39 = vpop.f32.mrb[7].mxu0  ;;  %2217 = vmatpush3.bf16.msra.mxu0 %v2602_v46 }
 0xfc0   : > { %2218 = vmatprep.subr.bf16.mxu0 %v2603_v47 }
 0xfc1   : > { %1676 = vmatmul.mubr.bf16.vlgmr.msra.gmra.mrb[32].mxu1 %v1534_v37 }
 0xfc3   : > { %2219 = vmatpush3.bf16.msra.mxu0 %v2604_v48 }
 0xfc4   : > { %2220 = vmatprep.subr.bf16.mxu0 %v2605_v49 }
 0xfc7   : > { %2221 = vmatpush3.bf16.msra.mxu0 %v2606_v50 }
0x1094   : > { %v1677_v53 = vpop.f32.mrb[32].mxu1 }
0x1095   : > { %v1678_v55 = vadd.f32 %v1677_v53, %v1556_v52  ;;  %v1679_v56 = vpop.f32.mrb[33].mxu1 }
0x1096   : > { %v1680_v58 = vadd.f32 %v1679_v56, %v1560_v38  ;;  %v1681_v59 = vpop.f32.mrb[34].mxu1 }
0x1097   : > { %v1686_v60 = vmul.f32 0.70710677, %v1678_v55  ;;  %v1682_v61 = vpop.f32.mrb[35].mxu1  ;;  %v1684_v1 = vmul.f32 0.5, %v1678_v55 }
0x1098   : > { %v1687_v62 = vmul.f32 0.70710677, %v1680_v58  ;;  %v1685_v3 = vmul.f32 0.5, %v1680_v58 }
0x1099   : > { %2625 = verf.f32 %v1686_v60 }
0x109a   : > { %2627 = verf.f32 %v1687_v62 }
0x10a3   : > { %v2626_v63 = vpop.eup %2625 }
0x10a4   : > { %v2628_v0 = vpop.eup %2627  ;;  %v1690_v2 = vadd.f32 1.0, %v2626_v63 }
0x10a5   : > { %v1691_v23 = vadd.f32 1.0, %v2628_v0 }
0x10a6   : > { %v1692_v24 = vmul.f32 %v1690_v2, %v1684_v1 }
0x10a7   : > { %v1693_v5 = vmul.f32 %v1691_v23, %v1685_v3 }
0x10a8   : > { %v1694_v7 = vpack.c.bf16 %v1692_v24, %v1692_v24 }
0x10a9   : > { %v1695_v6 = vpack.c.bf16 %v1693_v5, %v1693_v5 }
0x10ab   : > { %1856 = vmatprep.mubr.bf16.mxu0 %v1695_v6 }
0x10ac   : > { %1857 = vmatmul.mubr.bf16.vlgmr.msra.gmra.mrb[8].mxu0 %v1694_v7 }
0x117f   : > { %v2222_v8 = vpop.f32.mrb[8].mxu0 }
0x1180   : > { %v2223_v9 = vpop.f32.mrb[9].mxu0 }
0x1181   : > { %v2224_v10 = vadd.f32 %v2223_v9, %v2222_v8  ;;  %v2225_v11 = vpop.f32.mrb[10].mxu0 }
0x1182   : > { %v2226_v12 = vpop.f32.mrb[11].mxu0 }
0x1183   : > { %v1864_v14 = vadd.f32 %v2224_v10, %v3554_v34 }
0x1185   : > { %v1872_v57 = vadd.f32 %v2144_v13, %v1864_v14 }
0x1187   : > { %1873 = vst [vmem:[%s543_s1] sm:$0xff] %v1872_v57 }
0x1188   : > { %2840 = shalt.err (!%p2837_p2)
}
0x1189   : > { %s2841_s12 = scalar_lea.hbm %s3575_s6, 128  ;;  %s2845_s24 = scalar_lea.hbm %s3723_s3, 512 }
0x118a   : > { %p2842_p4 = scmp.ne.s32.totalorder %s3575_s6, %s2841_s12  ;;  %p2846_p8 = scmp.lt.u32.totalorder %s3575_s6, %s3723_s3 }
0x118b   : > { %p2847_p5 = scmp.lt.u32.totalorder %s2845_s24, %s2841_s12  ;;  %p2849_p6 = scmp.lt.u32.totalorder %s2841_s12, %s3575_s6 }
0x118c   : > { %p2843_p10 = pnand %p2842_p4, %p3725_p9 }
0x118d   : > { %p2848_p13 = por %p2847_p5, %p2846_p8 }
0x118e   : > { %p2844_p3 = pneg %p2843_p10 }
0x118f   : > { %p2850_p11 = por %p2849_p6, %p2848_p13 }
0x1191   : > { %p2851_p12 = pnand %p2850_p11, %p2844_p3 }
0x1193   : > { %2854 = shalt.err (!%p2851_p12)
}
0x1194   : > { %2382 = dma.vmem_to_hbm [thread:$0]  (%p3725_p9), %s3577_s4, 128, %s3575_s6, %s1875_s2  }
0x1195 PF: > { %s3726_s19 = sld [smem:[#allocation23_spill]]  ;;  %p2424_p1 = scmp.ge.s32.totalorder %s2961_s13, 2 }
0x1196   : > { %p3727_p0 = scmp.ne.s32.totalorder %s3703_s0, 0 }
0x1198   : > { %p2408_p7 = pnand %p2424_p1, %p3727_p0 }
0x119b   : > { %s1902_s5 = sand.u32 1, %s3726_s19  }
0x119c   : > { %s1903_s28 = scalar_lea.sflag [#allocation7], %s1902_s5 }
0x119d   : > { %2916 = dma.done.wait (!%p2408_p7), %s1903_s28, 128  }
0x119e   : > { %2918 = vsyncadd (!%p2408_p7), %s1903_s28, 4294967168  ;;  %s31_s13 = sadd.s32 1, %s2961_s13   ;;  %s3728_s21 = smov %s2925_s22 }
0x119f   : > { %p28_p2 = scmp.ge.s32.totalorder %s31_s13, 6   ;;  %s3729_s22 = smov %s2929_s23 }
0x11a0   : > { %s3730_s23 = smov %s3329_s11  ;;  %s3731_s24 = smov %s2937_s25 }
0x11a1   : > { %s3732_s25 = smov %s2941_s26  ;;  %s3733_s26 = smov %s3326_s27 }
0x11a2   : > { %s3734_s27 = smov %s2953_s29  ;;  %s3735_s28 = smov %s2957_s30 }
0x11a3   : > { %s3736_s29 = smov %s3739_s20  ;;  %s3737_s30 = smov %s3743_s18 }
0x11a4   :  { %30 = sbr.rel (!%p28_p2) target bundleno = 23 (0x17), region = 145 }
0x11ab   :  { %1908 = vsyncpa [#allocation6], 1 }
0x11ac   :  { %1910 = vsyncpa [#allocation6 + $0x1], 1 }
0x11ad   :  { %1911 = vsyncpa [#allocation9], 1 }
0x11ae   :  { %1912 = vsyncpa [#allocation12], 1 }
0x11af   :  { %1913 = vsyncpa [#allocation15], 1 }
0x11b0   :  { %1914 = vsyncpa [#allocation7], 1 }
0x11b1   :  { %1916 = vsyncpa [#allocation7 + $0x1], 1 }

</bundles_post_ra>
